<compile_context>
chip_gen: v7x
topology: tpu7x:2x2x1
jax: 0.10.0
libtpu: 0.0.40
codegen_flags: <defaults>
</compile_context>

<pallas_src>
import functools

import jax
import jax.numpy as jnp
from jax.experimental import pallas as pl
from jax.experimental.pallas import tpu as pltpu


# --------------------------------------------------------------------------
# Pallas kernel: full model forward (n_layers LSTM + FC on last timestep)
# --------------------------------------------------------------------------
def _fused_lstm_fc_kernel(x_ref, wih_ref, whh_ref, b_ref, wfc_ref, bfc_ref,
                          out_ref, seq_a, seq_b):
    """
    x_ref   : (T*Bp, Hp)     f32   time-major padded input, row block t = rows [t*Bp,(t+1)*Bp)
    wih_ref : (L, Hp, 4*Hp)  bf16  per-layer input->gates weights (gate blocks lane-padded)
    whh_ref : (L, Hp, 4*Hp)  bf16  per-layer hidden->gates weights
    b_ref   : (L, 1, 4*Hp)   f32   per-layer bias (b_ih + b_hh), gate blocks lane-padded
    wfc_ref : (Hp, Op)       bf16  FC weight (transposed, padded)
    bfc_ref : (1, Op)        f32   FC bias (padded)
    out_ref : (Bp, Op)       f32   FC output (padded, lane-dense)
    seq_a/b : (T*Bp, Hp)     f32   VMEM scratch for inter-layer hidden sequences
    """
    L = wih_ref.shape[0]
    Hp = whh_ref.shape[1]
    Bp, _ = out_ref.shape
    TB = x_ref.shape[0]
    T = TB // Bp

    bufs = (seq_a, seq_b)

    inp = x_ref[...]                                     # (T*Bp, Hp) f32

    for layer in range(L):
        wih = wih_ref[layer]                             # (Hp, 4Hp) bf16
        whh = whh_ref[layer]                             # (Hp, 4Hp) bf16
        b = b_ref[layer]                                 # (1, 4Hp)  f32

        # Hoisted input projection for every timestep: one big MXU matmul.
        gates_x = (jnp.dot(inp.astype(jnp.bfloat16), wih,
                           preferred_element_type=jnp.float32)
                   + b)                                  # (T*Bp, 4Hp) f32

        is_top = (layer == L - 1)
        out_buf = bufs[layer % 2]

        h = jnp.zeros((Bp, Hp), jnp.float32)
        c = jnp.zeros((Bp, Hp), jnp.float32)

        # Serial recurrence: only h @ Whh on the critical path.  Fully
        # unrolled (T static & small) so indices are static slices.
        for t in range(T):
            g = (gates_x[t * Bp:(t + 1) * Bp, :]
                 + jnp.dot(h.astype(jnp.bfloat16), whh,
                           preferred_element_type=jnp.float32))   # (Bp, 4Hp)
            i_g = jax.nn.sigmoid(g[:, 0 * Hp:1 * Hp])
            f_g = jax.nn.sigmoid(g[:, 1 * Hp:2 * Hp])
            g_g = jnp.tanh(g[:, 2 * Hp:3 * Hp])
            o_g = jax.nn.sigmoid(g[:, 3 * Hp:4 * Hp])
            c = f_g * c + i_g * g_g
            h = o_g * jnp.tanh(c)
            if not is_top:
                out_buf[t * Bp:(t + 1) * Bp, :] = h      # (8,128) f32 tile store

        if not is_top:
            inp = out_buf[...]                           # next layer's input
        else:
            # FC head on the last timestep of the top layer (lane-dense out).
            out_ref[...] = (jnp.dot(h.astype(jnp.bfloat16), wfc_ref[...],
                                    preferred_element_type=jnp.float32)
                            + bfc_ref[...]).astype(out_ref.dtype)


# --------------------------------------------------------------------------
# Parameter init (PyTorch layout/init) and packing for the kernel
# --------------------------------------------------------------------------
def _round_up(n, m):
    return ((n + m - 1) // m) * m


def init_params(key, input_size, output_size, hidden_dim, n_layers):
    """PyTorch-layout params with U(-1/sqrt(H), 1/sqrt(H)) init."""
    k = 1.0 / float(jnp.sqrt(jnp.float32(hidden_dim)))
    lstm = []
    for layer in range(n_layers):
        d_in = input_size if layer == 0 else hidden_dim
        key, k1, k2, k3, k4 = jax.random.split(key, 5)
        w_ih = jax.random.uniform(k1, (4 * hidden_dim, d_in), jnp.float32, -k, k)
        w_hh = jax.random.uniform(k2, (4 * hidden_dim, hidden_dim), jnp.float32, -k, k)
        b_ih = jax.random.uniform(k3, (4 * hidden_dim,), jnp.float32, -k, k)
        b_hh = jax.random.uniform(k4, (4 * hidden_dim,), jnp.float32, -k, k)
        lstm.append((w_ih, w_hh, b_ih, b_hh))
    key, k5, k6 = jax.random.split(key, 3)
    w_fc = jax.random.uniform(k5, (output_size, hidden_dim), jnp.float32, -k, k)
    b_fc = jax.random.uniform(k6, (output_size,), jnp.float32, -k, k)
    return {"lstm": lstm, "fc": (w_fc, b_fc)}


def pack_params(raw, input_size, hidden_dim, output_size):
    """Pad each gate block to Hp=128 lanes, stack layers, cast weights to bf16."""
    H = hidden_dim
    Hp = _round_up(max(H, 1), 128)
    Op = _round_up(max(output_size, 1), 128)
    n_layers = len(raw["lstm"])

    wih_list, whh_list, b_list = [], [], []
    for layer in range(n_layers):
        w_ih, w_hh, b_ih, b_hh = raw["lstm"][layer]
        d_in = input_size if layer == 0 else H
        wih_t = w_ih.T                                   # (d_in, 4H)
        whh_t = w_hh.T                                   # (H, 4H)
        bias = b_ih + b_hh                               # (4H,)

        wih_p = jnp.zeros((Hp, 4 * Hp), jnp.float32)
        whh_p = jnp.zeros((Hp, 4 * Hp), jnp.float32)
        b_p = jnp.zeros((1, 4 * Hp), jnp.float32)
        for g in range(4):  # gate order i, f, g, o (PyTorch)
            wih_p = wih_p.at[:d_in, g * Hp:g * Hp + H].set(wih_t[:, g * H:(g + 1) * H])
            whh_p = whh_p.at[:H, g * Hp:g * Hp + H].set(whh_t[:, g * H:(g + 1) * H])
            b_p = b_p.at[0, g * Hp:g * Hp + H].set(bias[g * H:(g + 1) * H])
        wih_list.append(wih_p)
        whh_list.append(whh_p)
        b_list.append(b_p)

    w_fc, b_fc = raw["fc"]                               # (O, H), (O,)
    wfc_p = jnp.zeros((Hp, Op), jnp.float32).at[:H, :output_size].set(w_fc.T)
    bfc_p = jnp.zeros((1, Op), jnp.float32).at[0, :output_size].set(b_fc)

    return {
        "wih": jnp.stack(wih_list).astype(jnp.bfloat16),     # (L, Hp, 4Hp)
        "whh": jnp.stack(whh_list).astype(jnp.bfloat16),     # (L, Hp, 4Hp)
        "b": jnp.stack(b_list),                              # (L, 1, 4Hp) f32
        "wfc": wfc_p.astype(jnp.bfloat16),                   # (Hp, Op)
        "bfc": bfc_p,                                        # (1, Op) f32
    }


# --------------------------------------------------------------------------
# Wrapper
# --------------------------------------------------------------------------
_VMEM_SPEC = pl.BlockSpec(memory_space=pltpu.MemorySpace.VMEM)


@functools.partial(jax.jit, static_argnames=("output_size",))
def model_forward(x, packed, output_size):
    """x: (batch, seq, input_size) f32 -> (batch, output_size) f32."""
    B, T, Din = x.shape
    Hp = packed["whh"].shape[1]
    Op = packed["wfc"].shape[1]
    Bp = _round_up(max(B, 1), 8)

    # Single cheap layout prep: time-major, pad (B->Bp sublanes, Din->Hp lanes).
    x_tm = jnp.transpose(x, (1, 0, 2))                       # (T, B, Din)
    x_pad = jnp.zeros((T, Bp, Hp), jnp.float32).at[:, :B, :Din].set(x_tm)
    x_flat = x_pad.reshape(T * Bp, Hp)                       # (T*Bp, Hp)

    out_p = pl.pallas_call(
        _fused_lstm_fc_kernel,
        out_shape=jax.ShapeDtypeStruct((Bp, Op), jnp.float32),
        in_specs=[_VMEM_SPEC] * 6,
        out_specs=_VMEM_SPEC,
        scratch_shapes=[
            pltpu.VMEM((T * Bp, Hp), jnp.float32),           # inter-layer seq (ping)
            pltpu.VMEM((T * Bp, Hp), jnp.float32),           # inter-layer seq (pong)
        ],
    )(x_flat, packed["wih"], packed["whh"], packed["b"],
      packed["wfc"], packed["bfc"])

    return out_p[:B, :output_size]


# --------------------------------------------------------------------------
# Pure-JAX reference (f32) for a sanity check
# --------------------------------------------------------------------------
def _reference_forward(x, raw):
    B, T, _ = x.shape
    h_seq = x
    for (w_ih, w_hh, b_ih, b_hh) in raw["lstm"]:
        H = w_hh.shape[1]
        h = jnp.zeros((B, H), jnp.float32)
        c = jnp.zeros((B, H), jnp.float32)
        outs = []
        for t in range(T):
            g = h_seq[:, t, :] @ w_ih.T + h @ w_hh.T + b_ih + b_hh
            i = jax.nn.sigmoid(g[:, :H])
            f = jax.nn.sigmoid(g[:, H:2 * H])
            gg = jnp.tanh(g[:, 2 * H:3 * H])
            o = jax.nn.sigmoid(g[:, 3 * H:])
            c = f * c + i * gg
            h = o * jnp.tanh(c)
            outs.append(h)
        h_seq = jnp.stack(outs, axis=1)
    w_fc, b_fc = raw["fc"]
    return h_seq[:, -1, :] @ w_fc.T + b_fc


# --------------------------------------------------------------------------
if __name__ == "__main__":
    batch = 2
    seq = 8
    input_size = 4
    hidden_dim = 32
    output_size = 4
    n_layers = 2

    key = jax.random.PRNGKey(0)
    key, xk = jax.random.split(key)
    x = jax.random.normal(xk, (batch, seq, input_size), jnp.float32)

    raw = init_params(key, input_size, output_size, hidden_dim, n_layers)
    packed = pack_params(raw, input_size, hidden_dim, output_size)

    y = model_forward(x, packed, output_size)
    y = jax.block_until_ready(y)
    assert y.shape == (batch, output_size)

    # Sanity check against f32 pure-JAX reference (bf16 weights => small dev).
    y_ref = jax.block_until_ready(_reference_forward(x, raw))
    assert jnp.max(jnp.abs(y - y_ref)) < 1e-1

    print("KERNEL_OK")
</pallas_src>

<mosaic_0001>
module attributes {stable_mosaic.version = 11 : i64} {
  func.func @_fused_lstm_fc_kernel(%arg0: memref<64x128xf32, #tpu.memory_space<vmem>>, %arg1: memref<2x128x512xbf16, #tpu.memory_space<vmem>>, %arg2: memref<2x128x512xbf16, #tpu.memory_space<vmem>>, %arg3: memref<2x1x512xf32, #tpu.memory_space<vmem>>, %arg4: memref<128x128xbf16, #tpu.memory_space<vmem>>, %arg5: memref<1x128xf32, #tpu.memory_space<vmem>>, %arg6: memref<8x128xf32, #tpu.memory_space<vmem>>, %arg7: memref<64x128xf32, #tpu.memory_space<vmem>>, %arg8: memref<64x128xf32, #tpu.memory_space<vmem>>) attributes {dimension_semantics = [], scalar_prefetch = 0 : i64, scratch_operands = 2 : i64, tpu.core_type = #tpu.core_type<tc>} {
    %c0 = arith.constant 0 : index
    %c0_0 = arith.constant 0 : index
    %0 = vector.load %arg0[%c0, %c0_0] : memref<64x128xf32, #tpu.memory_space<vmem>>, vector<64x128xf32>
    %c0_1 = arith.constant 0 : index
    %c0_2 = arith.constant 0 : index
    %c0_3 = arith.constant 0 : index
    %1 = vector.load %arg1[%c0_1, %c0_2, %c0_3] : memref<2x128x512xbf16, #tpu.memory_space<vmem>>, vector<1x128x512xbf16>
    %2 = vector.shape_cast %1 : vector<1x128x512xbf16> to vector<128x512xbf16>
    %c0_4 = arith.constant 0 : index
    %c0_5 = arith.constant 0 : index
    %c0_6 = arith.constant 0 : index
    %3 = vector.load %arg2[%c0_4, %c0_5, %c0_6] : memref<2x128x512xbf16, #tpu.memory_space<vmem>>, vector<1x128x512xbf16>
    %4 = vector.shape_cast %3 : vector<1x128x512xbf16> to vector<128x512xbf16>
    %c0_7 = arith.constant 0 : index
    %c0_8 = arith.constant 0 : index
    %c0_9 = arith.constant 0 : index
    %5 = vector.load %arg3[%c0_7, %c0_8, %c0_9] : memref<2x1x512xf32, #tpu.memory_space<vmem>>, vector<1x1x512xf32>
    %6 = vector.shape_cast %5 : vector<1x1x512xf32> to vector<1x512xf32>
    %7 = arith.truncf %0 : vector<64x128xf32> to vector<64x128xbf16>
    %cst = arith.constant dense<0.000000e+00> : vector<64x512xf32>
    %8 = tpu.matmul %7, %2, %cst {dimension_numbers = #tpu.dot_dimension_numbers<[1], [0], [0], [1], [0, 0, 1, 1], [], []>} : vector<64x128xbf16>, vector<128x512xbf16>, vector<64x512xf32> -> vector<64x512xf32>
    %9 = vector.broadcast %6 : vector<1x512xf32> to vector<64x512xf32>
    %10 = arith.addf %8, %9 : vector<64x512xf32>
    %cst_10 = arith.constant 0.000000e+00 : f32
    %11 = vector.broadcast %cst_10 : f32 to vector<8x128xf32>
    %cst_11 = arith.constant 0.000000e+00 : f32
    %12 = vector.broadcast %cst_11 : f32 to vector<8x128xf32>
    %13 = vector.extract_strided_slice %10 {offsets = [0, 0], sizes = [8, 512], strides = [1, 1]} : vector<64x512xf32> to vector<8x512xf32>
    %14 = arith.truncf %11 : vector<8x128xf32> to vector<8x128xbf16>
    %cst_12 = arith.constant dense<0.000000e+00> : vector<8x512xf32>
    %15 = tpu.matmul %14, %4, %cst_12 {dimension_numbers = #tpu.dot_dimension_numbers<[1], [0], [0], [1], [0, 0, 1, 1], [], []>} : vector<8x128xbf16>, vector<128x512xbf16>, vector<8x512xf32> -> vector<8x512xf32>
    %16 = arith.addf %13, %15 : vector<8x512xf32>
    %17 = vector.extract_strided_slice %16 {offsets = [0, 0], sizes = [8, 128], strides = [1, 1]} : vector<8x512xf32> to vector<8x128xf32>
    %18 = arith.negf %17 : vector<8x128xf32>
    %19 = math.exp %18 : vector<8x128xf32>
    %cst_13 = arith.constant 1.000000e+00 : f32
    %20 = vector.broadcast %cst_13 : f32 to vector<8x128xf32>
    %21 = arith.addf %20, %19 : vector<8x128xf32>
    %22 = arith.divf %20, %21 : vector<8x128xf32>
    %23 = vector.extract_strided_slice %16 {offsets = [0, 128], sizes = [8, 128], strides = [1, 1]} : vector<8x512xf32> to vector<8x128xf32>
    %24 = arith.negf %23 : vector<8x128xf32>
    %25 = math.exp %24 : vector<8x128xf32>
    %cst_14 = arith.constant 1.000000e+00 : f32
    %26 = vector.broadcast %cst_14 : f32 to vector<8x128xf32>
    %27 = arith.addf %26, %25 : vector<8x128xf32>
    %28 = arith.divf %26, %27 : vector<8x128xf32>
    %29 = vector.extract_strided_slice %16 {offsets = [0, 256], sizes = [8, 128], strides = [1, 1]} : vector<8x512xf32> to vector<8x128xf32>
    %30 = math.tanh %29 : vector<8x128xf32>
    %31 = vector.extract_strided_slice %16 {offsets = [0, 384], sizes = [8, 128], strides = [1, 1]} : vector<8x512xf32> to vector<8x128xf32>
    %32 = arith.negf %31 : vector<8x128xf32>
    %33 = math.exp %32 : vector<8x128xf32>
    %cst_15 = arith.constant 1.000000e+00 : f32
    %34 = vector.broadcast %cst_15 : f32 to vector<8x128xf32>
    %35 = arith.addf %34, %33 : vector<8x128xf32>
    %36 = arith.divf %34, %35 : vector<8x128xf32>
    %37 = arith.mulf %28, %12 : vector<8x128xf32>
    %38 = arith.mulf %22, %30 : vector<8x128xf32>
    %39 = arith.addf %37, %38 : vector<8x128xf32>
    %40 = math.tanh %39 : vector<8x128xf32>
    %41 = arith.mulf %36, %40 : vector<8x128xf32>
    %c0_16 = arith.constant 0 : index
    %c0_17 = arith.constant 0 : index
    %42 = vector.load %arg7[%c0_16, %c0_17] : memref<64x128xf32, #tpu.memory_space<vmem>>, vector<8x128xf32>
    tpu.vector_store %arg7[%c0_16, %c0_17], %41 {strides = array<i32>} : memref<64x128xf32, #tpu.memory_space<vmem>>, vector<8x128xf32>,
    %43 = vector.extract_strided_slice %10 {offsets = [8, 0], sizes = [8, 512], strides = [1, 1]} : vector<64x512xf32> to vector<8x512xf32>
    %44 = arith.truncf %41 : vector<8x128xf32> to vector<8x128xbf16>
    %cst_18 = arith.constant dense<0.000000e+00> : vector<8x512xf32>
    %45 = tpu.matmul %44, %4, %cst_18 {dimension_numbers = #tpu.dot_dimension_numbers<[1], [0], [0], [1], [0, 0, 1, 1], [], []>} : vector<8x128xbf16>, vector<128x512xbf16>, vector<8x512xf32> -> vector<8x512xf32>
    %46 = arith.addf %43, %45 : vector<8x512xf32>
    %47 = vector.extract_strided_slice %46 {offsets = [0, 0], sizes = [8, 128], strides = [1, 1]} : vector<8x512xf32> to vector<8x128xf32>
    %48 = arith.negf %47 : vector<8x128xf32>
    %49 = math.exp %48 : vector<8x128xf32>
    %cst_19 = arith.constant 1.000000e+00 : f32
    %50 = vector.broadcast %cst_19 : f32 to vector<8x128xf32>
    %51 = arith.addf %50, %49 : vector<8x128xf32>
    %52 = arith.divf %50, %51 : vector<8x128xf32>
    %53 = vector.extract_strided_slice %46 {offsets = [0, 128], sizes = [8, 128], strides = [1, 1]} : vector<8x512xf32> to vector<8x128xf32>
    %54 = arith.negf %53 : vector<8x128xf32>
    %55 = math.exp %54 : vector<8x128xf32>
    %cst_20 = arith.constant 1.000000e+00 : f32
    %56 = vector.broadcast %cst_20 : f32 to vector<8x128xf32>
    %57 = arith.addf %56, %55 : vector<8x128xf32>
    %58 = arith.divf %56, %57 : vector<8x128xf32>
    %59 = vector.extract_strided_slice %46 {offsets = [0, 256], sizes = [8, 128], strides = [1, 1]} : vector<8x512xf32> to vector<8x128xf32>
    %60 = math.tanh %59 : vector<8x128xf32>
    %61 = vector.extract_strided_slice %46 {offsets = [0, 384], sizes = [8, 128], strides = [1, 1]} : vector<8x512xf32> to vector<8x128xf32>
    %62 = arith.negf %61 : vector<8x128xf32>
    %63 = math.exp %62 : vector<8x128xf32>
    %cst_21 = arith.constant 1.000000e+00 : f32
    %64 = vector.broadcast %cst_21 : f32 to vector<8x128xf32>
    %65 = arith.addf %64, %63 : vector<8x128xf32>
    %66 = arith.divf %64, %65 : vector<8x128xf32>
    %67 = arith.mulf %58, %39 : vector<8x128xf32>
    %68 = arith.mulf %52, %60 : vector<8x128xf32>
    %69 = arith.addf %67, %68 : vector<8x128xf32>
    %70 = math.tanh %69 : vector<8x128xf32>
    %71 = arith.mulf %66, %70 : vector<8x128xf32>
    %c8 = arith.constant 8 : index
    %c0_22 = arith.constant 0 : index
    %72 = vector.load %arg7[%c8, %c0_22] : memref<64x128xf32, #tpu.memory_space<vmem>>, vector<8x128xf32>
    tpu.vector_store %arg7[%c8, %c0_22], %71 {strides = array<i32>} : memref<64x128xf32, #tpu.memory_space<vmem>>, vector<8x128xf32>,
    %73 = vector.extract_strided_slice %10 {offsets = [16, 0], sizes = [8, 512], strides = [1, 1]} : vector<64x512xf32> to vector<8x512xf32>
    %74 = arith.truncf %71 : vector<8x128xf32> to vector<8x128xbf16>
    %cst_23 = arith.constant dense<0.000000e+00> : vector<8x512xf32>
    %75 = tpu.matmul %74, %4, %cst_23 {dimension_numbers = #tpu.dot_dimension_numbers<[1], [0], [0], [1], [0, 0, 1, 1], [], []>} : vector<8x128xbf16>, vector<128x512xbf16>, vector<8x512xf32> -> vector<8x512xf32>
    %76 = arith.addf %73, %75 : vector<8x512xf32>
    %77 = vector.extract_strided_slice %76 {offsets = [0, 0], sizes = [8, 128], strides = [1, 1]} : vector<8x512xf32> to vector<8x128xf32>
    %78 = arith.negf %77 : vector<8x128xf32>
    %79 = math.exp %78 : vector<8x128xf32>
    %cst_24 = arith.constant 1.000000e+00 : f32
    %80 = vector.broadcast %cst_24 : f32 to vector<8x128xf32>
    %81 = arith.addf %80, %79 : vector<8x128xf32>
    %82 = arith.divf %80, %81 : vector<8x128xf32>
    %83 = vector.extract_strided_slice %76 {offsets = [0, 128], sizes = [8, 128], strides = [1, 1]} : vector<8x512xf32> to vector<8x128xf32>
    %84 = arith.negf %83 : vector<8x128xf32>
    %85 = math.exp %84 : vector<8x128xf32>
    %cst_25 = arith.constant 1.000000e+00 : f32
    %86 = vector.broadcast %cst_25 : f32 to vector<8x128xf32>
    %87 = arith.addf %86, %85 : vector<8x128xf32>
    %88 = arith.divf %86, %87 : vector<8x128xf32>
    %89 = vector.extract_strided_slice %76 {offsets = [0, 256], sizes = [8, 128], strides = [1, 1]} : vector<8x512xf32> to vector<8x128xf32>
    %90 = math.tanh %89 : vector<8x128xf32>
    %91 = vector.extract_strided_slice %76 {offsets = [0, 384], sizes = [8, 128], strides = [1, 1]} : vector<8x512xf32> to vector<8x128xf32>
    %92 = arith.negf %91 : vector<8x128xf32>
    %93 = math.exp %92 : vector<8x128xf32>
    %cst_26 = arith.constant 1.000000e+00 : f32
    %94 = vector.broadcast %cst_26 : f32 to vector<8x128xf32>
    %95 = arith.addf %94, %93 : vector<8x128xf32>
    %96 = arith.divf %94, %95 : vector<8x128xf32>
    %97 = arith.mulf %88, %69 : vector<8x128xf32>
    %98 = arith.mulf %82, %90 : vector<8x128xf32>
    %99 = arith.addf %97, %98 : vector<8x128xf32>
    %100 = math.tanh %99 : vector<8x128xf32>
    %101 = arith.mulf %96, %100 : vector<8x128xf32>
    %c16 = arith.constant 16 : index
    %c0_27 = arith.constant 0 : index
    %102 = vector.load %arg7[%c16, %c0_27] : memref<64x128xf32, #tpu.memory_space<vmem>>, vector<8x128xf32>
    tpu.vector_store %arg7[%c16, %c0_27], %101 {strides = array<i32>} : memref<64x128xf32, #tpu.memory_space<vmem>>, vector<8x128xf32>,
    %103 = vector.extract_strided_slice %10 {offsets = [24, 0], sizes = [8, 512], strides = [1, 1]} : vector<64x512xf32> to vector<8x512xf32>
    %104 = arith.truncf %101 : vector<8x128xf32> to vector<8x128xbf16>
    %cst_28 = arith.constant dense<0.000000e+00> : vector<8x512xf32>
    %105 = tpu.matmul %104, %4, %cst_28 {dimension_numbers = #tpu.dot_dimension_numbers<[1], [0], [0], [1], [0, 0, 1, 1], [], []>} : vector<8x128xbf16>, vector<128x512xbf16>, vector<8x512xf32> -> vector<8x512xf32>
    %106 = arith.addf %103, %105 : vector<8x512xf32>
    %107 = vector.extract_strided_slice %106 {offsets = [0, 0], sizes = [8, 128], strides = [1, 1]} : vector<8x512xf32> to vector<8x128xf32>
    %108 = arith.negf %107 : vector<8x128xf32>
    %109 = math.exp %108 : vector<8x128xf32>
    %cst_29 = arith.constant 1.000000e+00 : f32
    %110 = vector.broadcast %cst_29 : f32 to vector<8x128xf32>
    %111 = arith.addf %110, %109 : vector<8x128xf32>
    %112 = arith.divf %110, %111 : vector<8x128xf32>
    %113 = vector.extract_strided_slice %106 {offsets = [0, 128], sizes = [8, 128], strides = [1, 1]} : vector<8x512xf32> to vector<8x128xf32>
    %114 = arith.negf %113 : vector<8x128xf32>
    %115 = math.exp %114 : vector<8x128xf32>
    %cst_30 = arith.constant 1.000000e+00 : f32
    %116 = vector.broadcast %cst_30 : f32 to vector<8x128xf32>
    %117 = arith.addf %116, %115 : vector<8x128xf32>
    %118 = arith.divf %116, %117 : vector<8x128xf32>
    %119 = vector.extract_strided_slice %106 {offsets = [0, 256], sizes = [8, 128], strides = [1, 1]} : vector<8x512xf32> to vector<8x128xf32>
    %120 = math.tanh %119 : vector<8x128xf32>
    %121 = vector.extract_strided_slice %106 {offsets = [0, 384], sizes = [8, 128], strides = [1, 1]} : vector<8x512xf32> to vector<8x128xf32>
    %122 = arith.negf %121 : vector<8x128xf32>
    %123 = math.exp %122 : vector<8x128xf32>
    %cst_31 = arith.constant 1.000000e+00 : f32
    %124 = vector.broadcast %cst_31 : f32 to vector<8x128xf32>
    %125 = arith.addf %124, %123 : vector<8x128xf32>
    %126 = arith.divf %124, %125 : vector<8x128xf32>
    %127 = arith.mulf %118, %99 : vector<8x128xf32>
    %128 = arith.mulf %112, %120 : vector<8x128xf32>
    %129 = arith.addf %127, %128 : vector<8x128xf32>
    %130 = math.tanh %129 : vector<8x128xf32>
    %131 = arith.mulf %126, %130 : vector<8x128xf32>
    %c24 = arith.constant 24 : index
    %c0_32 = arith.constant 0 : index
    %132 = vector.load %arg7[%c24, %c0_32] : memref<64x128xf32, #tpu.memory_space<vmem>>, vector<8x128xf32>
    tpu.vector_store %arg7[%c24, %c0_32], %131 {strides = array<i32>} : memref<64x128xf32, #tpu.memory_space<vmem>>, vector<8x128xf32>,
    %133 = vector.extract_strided_slice %10 {offsets = [32, 0], sizes = [8, 512], strides = [1, 1]} : vector<64x512xf32> to vector<8x512xf32>
    %134 = arith.truncf %131 : vector<8x128xf32> to vector<8x128xbf16>
    %cst_33 = arith.constant dense<0.000000e+00> : vector<8x512xf32>
    %135 = tpu.matmul %134, %4, %cst_33 {dimension_numbers = #tpu.dot_dimension_numbers<[1], [0], [0], [1], [0, 0, 1, 1], [], []>} : vector<8x128xbf16>, vector<128x512xbf16>, vector<8x512xf32> -> vector<8x512xf32>
    %136 = arith.addf %133, %135 : vector<8x512xf32>
    %137 = vector.extract_strided_slice %136 {offsets = [0, 0], sizes = [8, 128], strides = [1, 1]} : vector<8x512xf32> to vector<8x128xf32>
    %138 = arith.negf %137 : vector<8x128xf32>
    %139 = math.exp %138 : vector<8x128xf32>
    %cst_34 = arith.constant 1.000000e+00 : f32
    %140 = vector.broadcast %cst_34 : f32 to vector<8x128xf32>
    %141 = arith.addf %140, %139 : vector<8x128xf32>
    %142 = arith.divf %140, %141 : vector<8x128xf32>
    %143 = vector.extract_strided_slice %136 {offsets = [0, 128], sizes = [8, 128], strides = [1, 1]} : vector<8x512xf32> to vector<8x128xf32>
    %144 = arith.negf %143 : vector<8x128xf32>
    %145 = math.exp %144 : vector<8x128xf32>
    %cst_35 = arith.constant 1.000000e+00 : f32
    %146 = vector.broadcast %cst_35 : f32 to vector<8x128xf32>
    %147 = arith.addf %146, %145 : vector<8x128xf32>
    %148 = arith.divf %146, %147 : vector<8x128xf32>
    %149 = vector.extract_strided_slice %136 {offsets = [0, 256], sizes = [8, 128], strides = [1, 1]} : vector<8x512xf32> to vector<8x128xf32>
    %150 = math.tanh %149 : vector<8x128xf32>
    %151 = vector.extract_strided_slice %136 {offsets = [0, 384], sizes = [8, 128], strides = [1, 1]} : vector<8x512xf32> to vector<8x128xf32>
    %152 = arith.negf %151 : vector<8x128xf32>
    %153 = math.exp %152 : vector<8x128xf32>
    %cst_36 = arith.constant 1.000000e+00 : f32
    %154 = vector.broadcast %cst_36 : f32 to vector<8x128xf32>
    %155 = arith.addf %154, %153 : vector<8x128xf32>
    %156 = arith.divf %154, %155 : vector<8x128xf32>
    %157 = arith.mulf %148, %129 : vector<8x128xf32>
    %158 = arith.mulf %142, %150 : vector<8x128xf32>
    %159 = arith.addf %157, %158 : vector<8x128xf32>
    %160 = math.tanh %159 : vector<8x128xf32>
    %161 = arith.mulf %156, %160 : vector<8x128xf32>
    %c32 = arith.constant 32 : index
    %c0_37 = arith.constant 0 : index
    %162 = vector.load %arg7[%c32, %c0_37] : memref<64x128xf32, #tpu.memory_space<vmem>>, vector<8x128xf32>
    tpu.vector_store %arg7[%c32, %c0_37], %161 {strides = array<i32>} : memref<64x128xf32, #tpu.memory_space<vmem>>, vector<8x128xf32>,
    %163 = vector.extract_strided_slice %10 {offsets = [40, 0], sizes = [8, 512], strides = [1, 1]} : vector<64x512xf32> to vector<8x512xf32>
    %164 = arith.truncf %161 : vector<8x128xf32> to vector<8x128xbf16>
    %cst_38 = arith.constant dense<0.000000e+00> : vector<8x512xf32>
    %165 = tpu.matmul %164, %4, %cst_38 {dimension_numbers = #tpu.dot_dimension_numbers<[1], [0], [0], [1], [0, 0, 1, 1], [], []>} : vector<8x128xbf16>, vector<128x512xbf16>, vector<8x512xf32> -> vector<8x512xf32>
    %166 = arith.addf %163, %165 : vector<8x512xf32>
    %167 = vector.extract_strided_slice %166 {offsets = [0, 0], sizes = [8, 128], strides = [1, 1]} : vector<8x512xf32> to vector<8x128xf32>
    %168 = arith.negf %167 : vector<8x128xf32>
    %169 = math.exp %168 : vector<8x128xf32>
    %cst_39 = arith.constant 1.000000e+00 : f32
    %170 = vector.broadcast %cst_39 : f32 to vector<8x128xf32>
    %171 = arith.addf %170, %169 : vector<8x128xf32>
    %172 = arith.divf %170, %171 : vector<8x128xf32>
    %173 = vector.extract_strided_slice %166 {offsets = [0, 128], sizes = [8, 128], strides = [1, 1]} : vector<8x512xf32> to vector<8x128xf32>
    %174 = arith.negf %173 : vector<8x128xf32>
    %175 = math.exp %174 : vector<8x128xf32>
    %cst_40 = arith.constant 1.000000e+00 : f32
    %176 = vector.broadcast %cst_40 : f32 to vector<8x128xf32>
    %177 = arith.addf %176, %175 : vector<8x128xf32>
    %178 = arith.divf %176, %177 : vector<8x128xf32>
    %179 = vector.extract_strided_slice %166 {offsets = [0, 256], sizes = [8, 128], strides = [1, 1]} : vector<8x512xf32> to vector<8x128xf32>
    %180 = math.tanh %179 : vector<8x128xf32>
    %181 = vector.extract_strided_slice %166 {offsets = [0, 384], sizes = [8, 128], strides = [1, 1]} : vector<8x512xf32> to vector<8x128xf32>
    %182 = arith.negf %181 : vector<8x128xf32>
    %183 = math.exp %182 : vector<8x128xf32>
    %cst_41 = arith.constant 1.000000e+00 : f32
    %184 = vector.broadcast %cst_41 : f32 to vector<8x128xf32>
    %185 = arith.addf %184, %183 : vector<8x128xf32>
    %186 = arith.divf %184, %185 : vector<8x128xf32>
    %187 = arith.mulf %178, %159 : vector<8x128xf32>
    %188 = arith.mulf %172, %180 : vector<8x128xf32>
    %189 = arith.addf %187, %188 : vector<8x128xf32>
    %190 = math.tanh %189 : vector<8x128xf32>
    %191 = arith.mulf %186, %190 : vector<8x128xf32>
    %c40 = arith.constant 40 : index
    %c0_42 = arith.constant 0 : index
    %192 = vector.load %arg7[%c40, %c0_42] : memref<64x128xf32, #tpu.memory_space<vmem>>, vector<8x128xf32>
    tpu.vector_store %arg7[%c40, %c0_42], %191 {strides = array<i32>} : memref<64x128xf32, #tpu.memory_space<vmem>>, vector<8x128xf32>,
    %193 = vector.extract_strided_slice %10 {offsets = [48, 0], sizes = [8, 512], strides = [1, 1]} : vector<64x512xf32> to vector<8x512xf32>
    %194 = arith.truncf %191 : vector<8x128xf32> to vector<8x128xbf16>
    %cst_43 = arith.constant dense<0.000000e+00> : vector<8x512xf32>
    %195 = tpu.matmul %194, %4, %cst_43 {dimension_numbers = #tpu.dot_dimension_numbers<[1], [0], [0], [1], [0, 0, 1, 1], [], []>} : vector<8x128xbf16>, vector<128x512xbf16>, vector<8x512xf32> -> vector<8x512xf32>
    %196 = arith.addf %193, %195 : vector<8x512xf32>
    %197 = vector.extract_strided_slice %196 {offsets = [0, 0], sizes = [8, 128], strides = [1, 1]} : vector<8x512xf32> to vector<8x128xf32>
    %198 = arith.negf %197 : vector<8x128xf32>
    %199 = math.exp %198 : vector<8x128xf32>
    %cst_44 = arith.constant 1.000000e+00 : f32
    %200 = vector.broadcast %cst_44 : f32 to vector<8x128xf32>
    %201 = arith.addf %200, %199 : vector<8x128xf32>
    %202 = arith.divf %200, %201 : vector<8x128xf32>
    %203 = vector.extract_strided_slice %196 {offsets = [0, 128], sizes = [8, 128], strides = [1, 1]} : vector<8x512xf32> to vector<8x128xf32>
    %204 = arith.negf %203 : vector<8x128xf32>
    %205 = math.exp %204 : vector<8x128xf32>
    %cst_45 = arith.constant 1.000000e+00 : f32
    %206 = vector.broadcast %cst_45 : f32 to vector<8x128xf32>
    %207 = arith.addf %206, %205 : vector<8x128xf32>
    %208 = arith.divf %206, %207 : vector<8x128xf32>
    %209 = vector.extract_strided_slice %196 {offsets = [0, 256], sizes = [8, 128], strides = [1, 1]} : vector<8x512xf32> to vector<8x128xf32>
    %210 = math.tanh %209 : vector<8x128xf32>
    %211 = vector.extract_strided_slice %196 {offsets = [0, 384], sizes = [8, 128], strides = [1, 1]} : vector<8x512xf32> to vector<8x128xf32>
    %212 = arith.negf %211 : vector<8x128xf32>
    %213 = math.exp %212 : vector<8x128xf32>
    %cst_46 = arith.constant 1.000000e+00 : f32
    %214 = vector.broadcast %cst_46 : f32 to vector<8x128xf32>
    %215 = arith.addf %214, %213 : vector<8x128xf32>
    %216 = arith.divf %214, %215 : vector<8x128xf32>
    %217 = arith.mulf %208, %189 : vector<8x128xf32>
    %218 = arith.mulf %202, %210 : vector<8x128xf32>
    %219 = arith.addf %217, %218 : vector<8x128xf32>
    %220 = math.tanh %219 : vector<8x128xf32>
    %221 = arith.mulf %216, %220 : vector<8x128xf32>
    %c48 = arith.constant 48 : index
    %c0_47 = arith.constant 0 : index
    %222 = vector.load %arg7[%c48, %c0_47] : memref<64x128xf32, #tpu.memory_space<vmem>>, vector<8x128xf32>
    tpu.vector_store %arg7[%c48, %c0_47], %221 {strides = array<i32>} : memref<64x128xf32, #tpu.memory_space<vmem>>, vector<8x128xf32>,
    %223 = vector.extract_strided_slice %10 {offsets = [56, 0], sizes = [8, 512], strides = [1, 1]} : vector<64x512xf32> to vector<8x512xf32>
    %224 = arith.truncf %221 : vector<8x128xf32> to vector<8x128xbf16>
    %cst_48 = arith.constant dense<0.000000e+00> : vector<8x512xf32>
    %225 = tpu.matmul %224, %4, %cst_48 {dimension_numbers = #tpu.dot_dimension_numbers<[1], [0], [0], [1], [0, 0, 1, 1], [], []>} : vector<8x128xbf16>, vector<128x512xbf16>, vector<8x512xf32> -> vector<8x512xf32>
    %226 = arith.addf %223, %225 : vector<8x512xf32>
    %227 = vector.extract_strided_slice %226 {offsets = [0, 0], sizes = [8, 128], strides = [1, 1]} : vector<8x512xf32> to vector<8x128xf32>
    %228 = arith.negf %227 : vector<8x128xf32>
    %229 = math.exp %228 : vector<8x128xf32>
    %cst_49 = arith.constant 1.000000e+00 : f32
    %230 = vector.broadcast %cst_49 : f32 to vector<8x128xf32>
    %231 = arith.addf %230, %229 : vector<8x128xf32>
    %232 = arith.divf %230, %231 : vector<8x128xf32>
    %233 = vector.extract_strided_slice %226 {offsets = [0, 128], sizes = [8, 128], strides = [1, 1]} : vector<8x512xf32> to vector<8x128xf32>
    %234 = arith.negf %233 : vector<8x128xf32>
    %235 = math.exp %234 : vector<8x128xf32>
    %cst_50 = arith.constant 1.000000e+00 : f32
    %236 = vector.broadcast %cst_50 : f32 to vector<8x128xf32>
    %237 = arith.addf %236, %235 : vector<8x128xf32>
    %238 = arith.divf %236, %237 : vector<8x128xf32>
    %239 = vector.extract_strided_slice %226 {offsets = [0, 256], sizes = [8, 128], strides = [1, 1]} : vector<8x512xf32> to vector<8x128xf32>
    %240 = math.tanh %239 : vector<8x128xf32>
    %241 = vector.extract_strided_slice %226 {offsets = [0, 384], sizes = [8, 128], strides = [1, 1]} : vector<8x512xf32> to vector<8x128xf32>
    %242 = arith.negf %241 : vector<8x128xf32>
    %243 = math.exp %242 : vector<8x128xf32>
    %cst_51 = arith.constant 1.000000e+00 : f32
    %244 = vector.broadcast %cst_51 : f32 to vector<8x128xf32>
    %245 = arith.addf %244, %243 : vector<8x128xf32>
    %246 = arith.divf %244, %245 : vector<8x128xf32>
    %247 = arith.mulf %238, %219 : vector<8x128xf32>
    %248 = arith.mulf %232, %240 : vector<8x128xf32>
    %249 = arith.addf %247, %248 : vector<8x128xf32>
    %250 = math.tanh %249 : vector<8x128xf32>
    %251 = arith.mulf %246, %250 : vector<8x128xf32>
    %c56 = arith.constant 56 : index
    %c0_52 = arith.constant 0 : index
    %252 = vector.load %arg7[%c56, %c0_52] : memref<64x128xf32, #tpu.memory_space<vmem>>, vector<8x128xf32>
    tpu.vector_store %arg7[%c56, %c0_52], %251 {strides = array<i32>} : memref<64x128xf32, #tpu.memory_space<vmem>>, vector<8x128xf32>,
    %c0_53 = arith.constant 0 : index
    %c0_54 = arith.constant 0 : index
    %253 = vector.load %arg7[%c0_53, %c0_54] : memref<64x128xf32, #tpu.memory_space<vmem>>, vector<64x128xf32>
    %c1 = arith.constant 1 : index
    %c0_55 = arith.constant 0 : index
    %c0_56 = arith.constant 0 : index
    %254 = vector.load %arg1[%c1, %c0_55, %c0_56] : memref<2x128x512xbf16, #tpu.memory_space<vmem>>, vector<1x128x512xbf16>
    %255 = vector.shape_cast %254 : vector<1x128x512xbf16> to vector<128x512xbf16>
    %c1_57 = arith.constant 1 : index
    %c0_58 = arith.constant 0 : index
    %c0_59 = arith.constant 0 : index
    %256 = vector.load %arg2[%c1_57, %c0_58, %c0_59] : memref<2x128x512xbf16, #tpu.memory_space<vmem>>, vector<1x128x512xbf16>
    %257 = vector.shape_cast %256 : vector<1x128x512xbf16> to vector<128x512xbf16>
    %c1_60 = arith.constant 1 : index
    %c0_61 = arith.constant 0 : index
    %c0_62 = arith.constant 0 : index
    %258 = vector.load %arg3[%c1_60, %c0_61, %c0_62] : memref<2x1x512xf32, #tpu.memory_space<vmem>>, vector<1x1x512xf32>
    %259 = vector.shape_cast %258 : vector<1x1x512xf32> to vector<1x512xf32>
    %260 = arith.truncf %253 : vector<64x128xf32> to vector<64x128xbf16>
    %cst_63 = arith.constant dense<0.000000e+00> : vector<64x512xf32>
    %261 = tpu.matmul %260, %255, %cst_63 {dimension_numbers = #tpu.dot_dimension_numbers<[1], [0], [0], [1], [0, 0, 1, 1], [], []>} : vector<64x128xbf16>, vector<128x512xbf16>, vector<64x512xf32> -> vector<64x512xf32>
    %262 = vector.broadcast %259 : vector<1x512xf32> to vector<64x512xf32>
    %263 = arith.addf %261, %262 : vector<64x512xf32>
    %cst_64 = arith.constant 0.000000e+00 : f32
    %264 = vector.broadcast %cst_64 : f32 to vector<8x128xf32>
    %cst_65 = arith.constant 0.000000e+00 : f32
    %265 = vector.broadcast %cst_65 : f32 to vector<8x128xf32>
    %266 = vector.extract_strided_slice %263 {offsets = [0, 0], sizes = [8, 512], strides = [1, 1]} : vector<64x512xf32> to vector<8x512xf32>
    %267 = arith.truncf %264 : vector<8x128xf32> to vector<8x128xbf16>
    %cst_66 = arith.constant dense<0.000000e+00> : vector<8x512xf32>
    %268 = tpu.matmul %267, %257, %cst_66 {dimension_numbers = #tpu.dot_dimension_numbers<[1], [0], [0], [1], [0, 0, 1, 1], [], []>} : vector<8x128xbf16>, vector<128x512xbf16>, vector<8x512xf32> -> vector<8x512xf32>
    %269 = arith.addf %266, %268 : vector<8x512xf32>
    %270 = vector.extract_strided_slice %269 {offsets = [0, 0], sizes = [8, 128], strides = [1, 1]} : vector<8x512xf32> to vector<8x128xf32>
    %271 = arith.negf %270 : vector<8x128xf32>
    %272 = math.exp %271 : vector<8x128xf32>
    %cst_67 = arith.constant 1.000000e+00 : f32
    %273 = vector.broadcast %cst_67 : f32 to vector<8x128xf32>
    %274 = arith.addf %273, %272 : vector<8x128xf32>
    %275 = arith.divf %273, %274 : vector<8x128xf32>
    %276 = vector.extract_strided_slice %269 {offsets = [0, 128], sizes = [8, 128], strides = [1, 1]} : vector<8x512xf32> to vector<8x128xf32>
    %277 = arith.negf %276 : vector<8x128xf32>
    %278 = math.exp %277 : vector<8x128xf32>
    %cst_68 = arith.constant 1.000000e+00 : f32
    %279 = vector.broadcast %cst_68 : f32 to vector<8x128xf32>
    %280 = arith.addf %279, %278 : vector<8x128xf32>
    %281 = arith.divf %279, %280 : vector<8x128xf32>
    %282 = vector.extract_strided_slice %269 {offsets = [0, 256], sizes = [8, 128], strides = [1, 1]} : vector<8x512xf32> to vector<8x128xf32>
    %283 = math.tanh %282 : vector<8x128xf32>
    %284 = vector.extract_strided_slice %269 {offsets = [0, 384], sizes = [8, 128], strides = [1, 1]} : vector<8x512xf32> to vector<8x128xf32>
    %285 = arith.negf %284 : vector<8x128xf32>
    %286 = math.exp %285 : vector<8x128xf32>
    %cst_69 = arith.constant 1.000000e+00 : f32
    %287 = vector.broadcast %cst_69 : f32 to vector<8x128xf32>
    %288 = arith.addf %287, %286 : vector<8x128xf32>
    %289 = arith.divf %287, %288 : vector<8x128xf32>
    %290 = arith.mulf %281, %265 : vector<8x128xf32>
    %291 = arith.mulf %275, %283 : vector<8x128xf32>
    %292 = arith.addf %290, %291 : vector<8x128xf32>
    %293 = math.tanh %292 : vector<8x128xf32>
    %294 = arith.mulf %289, %293 : vector<8x128xf32>
    %295 = vector.extract_strided_slice %263 {offsets = [8, 0], sizes = [8, 512], strides = [1, 1]} : vector<64x512xf32> to vector<8x512xf32>
    %296 = arith.truncf %294 : vector<8x128xf32> to vector<8x128xbf16>
    %cst_70 = arith.constant dense<0.000000e+00> : vector<8x512xf32>
    %297 = tpu.matmul %296, %257, %cst_70 {dimension_numbers = #tpu.dot_dimension_numbers<[1], [0], [0], [1], [0, 0, 1, 1], [], []>} : vector<8x128xbf16>, vector<128x512xbf16>, vector<8x512xf32> -> vector<8x512xf32>
    %298 = arith.addf %295, %297 : vector<8x512xf32>
    %299 = vector.extract_strided_slice %298 {offsets = [0, 0], sizes = [8, 128], strides = [1, 1]} : vector<8x512xf32> to vector<8x128xf32>
    %300 = arith.negf %299 : vector<8x128xf32>
    %301 = math.exp %300 : vector<8x128xf32>
    %cst_71 = arith.constant 1.000000e+00 : f32
    %302 = vector.broadcast %cst_71 : f32 to vector<8x128xf32>
    %303 = arith.addf %302, %301 : vector<8x128xf32>
    %304 = arith.divf %302, %303 : vector<8x128xf32>
    %305 = vector.extract_strided_slice %298 {offsets = [0, 128], sizes = [8, 128], strides = [1, 1]} : vector<8x512xf32> to vector<8x128xf32>
    %306 = arith.negf %305 : vector<8x128xf32>
    %307 = math.exp %306 : vector<8x128xf32>
    %cst_72 = arith.constant 1.000000e+00 : f32
    %308 = vector.broadcast %cst_72 : f32 to vector<8x128xf32>
    %309 = arith.addf %308, %307 : vector<8x128xf32>
    %310 = arith.divf %308, %309 : vector<8x128xf32>
    %311 = vector.extract_strided_slice %298 {offsets = [0, 256], sizes = [8, 128], strides = [1, 1]} : vector<8x512xf32> to vector<8x128xf32>
    %312 = math.tanh %311 : vector<8x128xf32>
    %313 = vector.extract_strided_slice %298 {offsets = [0, 384], sizes = [8, 128], strides = [1, 1]} : vector<8x512xf32> to vector<8x128xf32>
    %314 = arith.negf %313 : vector<8x128xf32>
    %315 = math.exp %314 : vector<8x128xf32>
    %cst_73 = arith.constant 1.000000e+00 : f32
    %316 = vector.broadcast %cst_73 : f32 to vector<8x128xf32>
    %317 = arith.addf %316, %315 : vector<8x128xf32>
    %318 = arith.divf %316, %317 : vector<8x128xf32>
    %319 = arith.mulf %310, %292 : vector<8x128xf32>
    %320 = arith.mulf %304, %312 : vector<8x128xf32>
    %321 = arith.addf %319, %320 : vector<8x128xf32>
    %322 = math.tanh %321 : vector<8x128xf32>
    %323 = arith.mulf %318, %322 : vector<8x128xf32>
    %324 = vector.extract_strided_slice %263 {offsets = [16, 0], sizes = [8, 512], strides = [1, 1]} : vector<64x512xf32> to vector<8x512xf32>
    %325 = arith.truncf %323 : vector<8x128xf32> to vector<8x128xbf16>
    %cst_74 = arith.constant dense<0.000000e+00> : vector<8x512xf32>
    %326 = tpu.matmul %325, %257, %cst_74 {dimension_numbers = #tpu.dot_dimension_numbers<[1], [0], [0], [1], [0, 0, 1, 1], [], []>} : vector<8x128xbf16>, vector<128x512xbf16>, vector<8x512xf32> -> vector<8x512xf32>
    %327 = arith.addf %324, %326 : vector<8x512xf32>
    %328 = vector.extract_strided_slice %327 {offsets = [0, 0], sizes = [8, 128], strides = [1, 1]} : vector<8x512xf32> to vector<8x128xf32>
    %329 = arith.negf %328 : vector<8x128xf32>
    %330 = math.exp %329 : vector<8x128xf32>
    %cst_75 = arith.constant 1.000000e+00 : f32
    %331 = vector.broadcast %cst_75 : f32 to vector<8x128xf32>
    %332 = arith.addf %331, %330 : vector<8x128xf32>
    %333 = arith.divf %331, %332 : vector<8x128xf32>
    %334 = vector.extract_strided_slice %327 {offsets = [0, 128], sizes = [8, 128], strides = [1, 1]} : vector<8x512xf32> to vector<8x128xf32>
    %335 = arith.negf %334 : vector<8x128xf32>
    %336 = math.exp %335 : vector<8x128xf32>
    %cst_76 = arith.constant 1.000000e+00 : f32
    %337 = vector.broadcast %cst_76 : f32 to vector<8x128xf32>
    %338 = arith.addf %337, %336 : vector<8x128xf32>
    %339 = arith.divf %337, %338 : vector<8x128xf32>
    %340 = vector.extract_strided_slice %327 {offsets = [0, 256], sizes = [8, 128], strides = [1, 1]} : vector<8x512xf32> to vector<8x128xf32>
    %341 = math.tanh %340 : vector<8x128xf32>
    %342 = vector.extract_strided_slice %327 {offsets = [0, 384], sizes = [8, 128], strides = [1, 1]} : vector<8x512xf32> to vector<8x128xf32>
    %343 = arith.negf %342 : vector<8x128xf32>
    %344 = math.exp %343 : vector<8x128xf32>
    %cst_77 = arith.constant 1.000000e+00 : f32
    %345 = vector.broadcast %cst_77 : f32 to vector<8x128xf32>
    %346 = arith.addf %345, %344 : vector<8x128xf32>
    %347 = arith.divf %345, %346 : vector<8x128xf32>
    %348 = arith.mulf %339, %321 : vector<8x128xf32>
    %349 = arith.mulf %333, %341 : vector<8x128xf32>
    %350 = arith.addf %348, %349 : vector<8x128xf32>
    %351 = math.tanh %350 : vector<8x128xf32>
    %352 = arith.mulf %347, %351 : vector<8x128xf32>
    %353 = vector.extract_strided_slice %263 {offsets = [24, 0], sizes = [8, 512], strides = [1, 1]} : vector<64x512xf32> to vector<8x512xf32>
    %354 = arith.truncf %352 : vector<8x128xf32> to vector<8x128xbf16>
    %cst_78 = arith.constant dense<0.000000e+00> : vector<8x512xf32>
    %355 = tpu.matmul %354, %257, %cst_78 {dimension_numbers = #tpu.dot_dimension_numbers<[1], [0], [0], [1], [0, 0, 1, 1], [], []>} : vector<8x128xbf16>, vector<128x512xbf16>, vector<8x512xf32> -> vector<8x512xf32>
    %356 = arith.addf %353, %355 : vector<8x512xf32>
    %357 = vector.extract_strided_slice %356 {offsets = [0, 0], sizes = [8, 128], strides = [1, 1]} : vector<8x512xf32> to vector<8x128xf32>
    %358 = arith.negf %357 : vector<8x128xf32>
    %359 = math.exp %358 : vector<8x128xf32>
    %cst_79 = arith.constant 1.000000e+00 : f32
    %360 = vector.broadcast %cst_79 : f32 to vector<8x128xf32>
    %361 = arith.addf %360, %359 : vector<8x128xf32>
    %362 = arith.divf %360, %361 : vector<8x128xf32>
    %363 = vector.extract_strided_slice %356 {offsets = [0, 128], sizes = [8, 128], strides = [1, 1]} : vector<8x512xf32> to vector<8x128xf32>
    %364 = arith.negf %363 : vector<8x128xf32>
    %365 = math.exp %364 : vector<8x128xf32>
    %cst_80 = arith.constant 1.000000e+00 : f32
    %366 = vector.broadcast %cst_80 : f32 to vector<8x128xf32>
    %367 = arith.addf %366, %365 : vector<8x128xf32>
    %368 = arith.divf %366, %367 : vector<8x128xf32>
    %369 = vector.extract_strided_slice %356 {offsets = [0, 256], sizes = [8, 128], strides = [1, 1]} : vector<8x512xf32> to vector<8x128xf32>
    %370 = math.tanh %369 : vector<8x128xf32>
    %371 = vector.extract_strided_slice %356 {offsets = [0, 384], sizes = [8, 128], strides = [1, 1]} : vector<8x512xf32> to vector<8x128xf32>
    %372 = arith.negf %371 : vector<8x128xf32>
    %373 = math.exp %372 : vector<8x128xf32>
    %cst_81 = arith.constant 1.000000e+00 : f32
    %374 = vector.broadcast %cst_81 : f32 to vector<8x128xf32>
    %375 = arith.addf %374, %373 : vector<8x128xf32>
    %376 = arith.divf %374, %375 : vector<8x128xf32>
    %377 = arith.mulf %368, %350 : vector<8x128xf32>
    %378 = arith.mulf %362, %370 : vector<8x128xf32>
    %379 = arith.addf %377, %378 : vector<8x128xf32>
    %380 = math.tanh %379 : vector<8x128xf32>
    %381 = arith.mulf %376, %380 : vector<8x128xf32>
    %382 = vector.extract_strided_slice %263 {offsets = [32, 0], sizes = [8, 512], strides = [1, 1]} : vector<64x512xf32> to vector<8x512xf32>
    %383 = arith.truncf %381 : vector<8x128xf32> to vector<8x128xbf16>
    %cst_82 = arith.constant dense<0.000000e+00> : vector<8x512xf32>
    %384 = tpu.matmul %383, %257, %cst_82 {dimension_numbers = #tpu.dot_dimension_numbers<[1], [0], [0], [1], [0, 0, 1, 1], [], []>} : vector<8x128xbf16>, vector<128x512xbf16>, vector<8x512xf32> -> vector<8x512xf32>
    %385 = arith.addf %382, %384 : vector<8x512xf32>
    %386 = vector.extract_strided_slice %385 {offsets = [0, 0], sizes = [8, 128], strides = [1, 1]} : vector<8x512xf32> to vector<8x128xf32>
    %387 = arith.negf %386 : vector<8x128xf32>
    %388 = math.exp %387 : vector<8x128xf32>
    %cst_83 = arith.constant 1.000000e+00 : f32
    %389 = vector.broadcast %cst_83 : f32 to vector<8x128xf32>
    %390 = arith.addf %389, %388 : vector<8x128xf32>
    %391 = arith.divf %389, %390 : vector<8x128xf32>
    %392 = vector.extract_strided_slice %385 {offsets = [0, 128], sizes = [8, 128], strides = [1, 1]} : vector<8x512xf32> to vector<8x128xf32>
    %393 = arith.negf %392 : vector<8x128xf32>
    %394 = math.exp %393 : vector<8x128xf32>
    %cst_84 = arith.constant 1.000000e+00 : f32
    %395 = vector.broadcast %cst_84 : f32 to vector<8x128xf32>
    %396 = arith.addf %395, %394 : vector<8x128xf32>
    %397 = arith.divf %395, %396 : vector<8x128xf32>
    %398 = vector.extract_strided_slice %385 {offsets = [0, 256], sizes = [8, 128], strides = [1, 1]} : vector<8x512xf32> to vector<8x128xf32>
    %399 = math.tanh %398 : vector<8x128xf32>
    %400 = vector.extract_strided_slice %385 {offsets = [0, 384], sizes = [8, 128], strides = [1, 1]} : vector<8x512xf32> to vector<8x128xf32>
    %401 = arith.negf %400 : vector<8x128xf32>
    %402 = math.exp %401 : vector<8x128xf32>
    %cst_85 = arith.constant 1.000000e+00 : f32
    %403 = vector.broadcast %cst_85 : f32 to vector<8x128xf32>
    %404 = arith.addf %403, %402 : vector<8x128xf32>
    %405 = arith.divf %403, %404 : vector<8x128xf32>
    %406 = arith.mulf %397, %379 : vector<8x128xf32>
    %407 = arith.mulf %391, %399 : vector<8x128xf32>
    %408 = arith.addf %406, %407 : vector<8x128xf32>
    %409 = math.tanh %408 : vector<8x128xf32>
    %410 = arith.mulf %405, %409 : vector<8x128xf32>
    %411 = vector.extract_strided_slice %263 {offsets = [40, 0], sizes = [8, 512], strides = [1, 1]} : vector<64x512xf32> to vector<8x512xf32>
    %412 = arith.truncf %410 : vector<8x128xf32> to vector<8x128xbf16>
    %cst_86 = arith.constant dense<0.000000e+00> : vector<8x512xf32>
    %413 = tpu.matmul %412, %257, %cst_86 {dimension_numbers = #tpu.dot_dimension_numbers<[1], [0], [0], [1], [0, 0, 1, 1], [], []>} : vector<8x128xbf16>, vector<128x512xbf16>, vector<8x512xf32> -> vector<8x512xf32>
    %414 = arith.addf %411, %413 : vector<8x512xf32>
    %415 = vector.extract_strided_slice %414 {offsets = [0, 0], sizes = [8, 128], strides = [1, 1]} : vector<8x512xf32> to vector<8x128xf32>
    %416 = arith.negf %415 : vector<8x128xf32>
    %417 = math.exp %416 : vector<8x128xf32>
    %cst_87 = arith.constant 1.000000e+00 : f32
    %418 = vector.broadcast %cst_87 : f32 to vector<8x128xf32>
    %419 = arith.addf %418, %417 : vector<8x128xf32>
    %420 = arith.divf %418, %419 : vector<8x128xf32>
    %421 = vector.extract_strided_slice %414 {offsets = [0, 128], sizes = [8, 128], strides = [1, 1]} : vector<8x512xf32> to vector<8x128xf32>
    %422 = arith.negf %421 : vector<8x128xf32>
    %423 = math.exp %422 : vector<8x128xf32>
    %cst_88 = arith.constant 1.000000e+00 : f32
    %424 = vector.broadcast %cst_88 : f32 to vector<8x128xf32>
    %425 = arith.addf %424, %423 : vector<8x128xf32>
    %426 = arith.divf %424, %425 : vector<8x128xf32>
    %427 = vector.extract_strided_slice %414 {offsets = [0, 256], sizes = [8, 128], strides = [1, 1]} : vector<8x512xf32> to vector<8x128xf32>
    %428 = math.tanh %427 : vector<8x128xf32>
    %429 = vector.extract_strided_slice %414 {offsets = [0, 384], sizes = [8, 128], strides = [1, 1]} : vector<8x512xf32> to vector<8x128xf32>
    %430 = arith.negf %429 : vector<8x128xf32>
    %431 = math.exp %430 : vector<8x128xf32>
    %cst_89 = arith.constant 1.000000e+00 : f32
    %432 = vector.broadcast %cst_89 : f32 to vector<8x128xf32>
    %433 = arith.addf %432, %431 : vector<8x128xf32>
    %434 = arith.divf %432, %433 : vector<8x128xf32>
    %435 = arith.mulf %426, %408 : vector<8x128xf32>
    %436 = arith.mulf %420, %428 : vector<8x128xf32>
    %437 = arith.addf %435, %436 : vector<8x128xf32>
    %438 = math.tanh %437 : vector<8x128xf32>
    %439 = arith.mulf %434, %438 : vector<8x128xf32>
    %440 = vector.extract_strided_slice %263 {offsets = [48, 0], sizes = [8, 512], strides = [1, 1]} : vector<64x512xf32> to vector<8x512xf32>
    %441 = arith.truncf %439 : vector<8x128xf32> to vector<8x128xbf16>
    %cst_90 = arith.constant dense<0.000000e+00> : vector<8x512xf32>
    %442 = tpu.matmul %441, %257, %cst_90 {dimension_numbers = #tpu.dot_dimension_numbers<[1], [0], [0], [1], [0, 0, 1, 1], [], []>} : vector<8x128xbf16>, vector<128x512xbf16>, vector<8x512xf32> -> vector<8x512xf32>
    %443 = arith.addf %440, %442 : vector<8x512xf32>
    %444 = vector.extract_strided_slice %443 {offsets = [0, 0], sizes = [8, 128], strides = [1, 1]} : vector<8x512xf32> to vector<8x128xf32>
    %445 = arith.negf %444 : vector<8x128xf32>
    %446 = math.exp %445 : vector<8x128xf32>
    %cst_91 = arith.constant 1.000000e+00 : f32
    %447 = vector.broadcast %cst_91 : f32 to vector<8x128xf32>
    %448 = arith.addf %447, %446 : vector<8x128xf32>
    %449 = arith.divf %447, %448 : vector<8x128xf32>
    %450 = vector.extract_strided_slice %443 {offsets = [0, 128], sizes = [8, 128], strides = [1, 1]} : vector<8x512xf32> to vector<8x128xf32>
    %451 = arith.negf %450 : vector<8x128xf32>
    %452 = math.exp %451 : vector<8x128xf32>
    %cst_92 = arith.constant 1.000000e+00 : f32
    %453 = vector.broadcast %cst_92 : f32 to vector<8x128xf32>
    %454 = arith.addf %453, %452 : vector<8x128xf32>
    %455 = arith.divf %453, %454 : vector<8x128xf32>
    %456 = vector.extract_strided_slice %443 {offsets = [0, 256], sizes = [8, 128], strides = [1, 1]} : vector<8x512xf32> to vector<8x128xf32>
    %457 = math.tanh %456 : vector<8x128xf32>
    %458 = vector.extract_strided_slice %443 {offsets = [0, 384], sizes = [8, 128], strides = [1, 1]} : vector<8x512xf32> to vector<8x128xf32>
    %459 = arith.negf %458 : vector<8x128xf32>
    %460 = math.exp %459 : vector<8x128xf32>
    %cst_93 = arith.constant 1.000000e+00 : f32
    %461 = vector.broadcast %cst_93 : f32 to vector<8x128xf32>
    %462 = arith.addf %461, %460 : vector<8x128xf32>
    %463 = arith.divf %461, %462 : vector<8x128xf32>
    %464 = arith.mulf %455, %437 : vector<8x128xf32>
    %465 = arith.mulf %449, %457 : vector<8x128xf32>
    %466 = arith.addf %464, %465 : vector<8x128xf32>
    %467 = math.tanh %466 : vector<8x128xf32>
    %468 = arith.mulf %463, %467 : vector<8x128xf32>
    %469 = vector.extract_strided_slice %263 {offsets = [56, 0], sizes = [8, 512], strides = [1, 1]} : vector<64x512xf32> to vector<8x512xf32>
    %470 = arith.truncf %468 : vector<8x128xf32> to vector<8x128xbf16>
    %cst_94 = arith.constant dense<0.000000e+00> : vector<8x512xf32>
    %471 = tpu.matmul %470, %257, %cst_94 {dimension_numbers = #tpu.dot_dimension_numbers<[1], [0], [0], [1], [0, 0, 1, 1], [], []>} : vector<8x128xbf16>, vector<128x512xbf16>, vector<8x512xf32> -> vector<8x512xf32>
    %472 = arith.addf %469, %471 : vector<8x512xf32>
    %473 = vector.extract_strided_slice %472 {offsets = [0, 0], sizes = [8, 128], strides = [1, 1]} : vector<8x512xf32> to vector<8x128xf32>
    %474 = arith.negf %473 : vector<8x128xf32>
    %475 = math.exp %474 : vector<8x128xf32>
    %cst_95 = arith.constant 1.000000e+00 : f32
    %476 = vector.broadcast %cst_95 : f32 to vector<8x128xf32>
    %477 = arith.addf %476, %475 : vector<8x128xf32>
    %478 = arith.divf %476, %477 : vector<8x128xf32>
    %479 = vector.extract_strided_slice %472 {offsets = [0, 128], sizes = [8, 128], strides = [1, 1]} : vector<8x512xf32> to vector<8x128xf32>
    %480 = arith.negf %479 : vector<8x128xf32>
    %481 = math.exp %480 : vector<8x128xf32>
    %cst_96 = arith.constant 1.000000e+00 : f32
    %482 = vector.broadcast %cst_96 : f32 to vector<8x128xf32>
    %483 = arith.addf %482, %481 : vector<8x128xf32>
    %484 = arith.divf %482, %483 : vector<8x128xf32>
    %485 = vector.extract_strided_slice %472 {offsets = [0, 256], sizes = [8, 128], strides = [1, 1]} : vector<8x512xf32> to vector<8x128xf32>
    %486 = math.tanh %485 : vector<8x128xf32>
    %487 = vector.extract_strided_slice %472 {offsets = [0, 384], sizes = [8, 128], strides = [1, 1]} : vector<8x512xf32> to vector<8x128xf32>
    %488 = arith.negf %487 : vector<8x128xf32>
    %489 = math.exp %488 : vector<8x128xf32>
    %cst_97 = arith.constant 1.000000e+00 : f32
    %490 = vector.broadcast %cst_97 : f32 to vector<8x128xf32>
    %491 = arith.addf %490, %489 : vector<8x128xf32>
    %492 = arith.divf %490, %491 : vector<8x128xf32>
    %493 = arith.mulf %484, %466 : vector<8x128xf32>
    %494 = arith.mulf %478, %486 : vector<8x128xf32>
    %495 = arith.addf %493, %494 : vector<8x128xf32>
    %496 = math.tanh %495 : vector<8x128xf32>
    %497 = arith.mulf %492, %496 : vector<8x128xf32>
    %498 = arith.truncf %497 : vector<8x128xf32> to vector<8x128xbf16>
    %c0_98 = arith.constant 0 : index
    %c0_99 = arith.constant 0 : index
    %499 = vector.load %arg4[%c0_98, %c0_99] : memref<128x128xbf16, #tpu.memory_space<vmem>>, vector<128x128xbf16>
    %cst_100 = arith.constant dense<0.000000e+00> : vector<8x128xf32>
    %500 = tpu.matmul %498, %499, %cst_100 {dimension_numbers = #tpu.dot_dimension_numbers<[1], [0], [0], [1], [0, 0, 1, 1], [], []>} : vector<8x128xbf16>, vector<128x128xbf16>, vector<8x128xf32> -> vector<8x128xf32>
    %c0_101 = arith.constant 0 : index
    %c0_102 = arith.constant 0 : index
    %501 = vector.load %arg5[%c0_101, %c0_102] : memref<1x128xf32, #tpu.memory_space<vmem>>, vector<1x128xf32>
    %502 = vector.broadcast %501 : vector<1x128xf32> to vector<8x128xf32>
    %503 = arith.addf %500, %502 : vector<8x128xf32>
    %c0_103 = arith.constant 0 : index
    %c0_104 = arith.constant 0 : index
    %504 = vector.load %arg6[%c0_103, %c0_104] : memref<8x128xf32, #tpu.memory_space<vmem>>, vector<8x128xf32>
    tpu.vector_store %arg6[%c0_103, %c0_104], %503 {strides = array<i32>} : memref<8x128xf32, #tpu.memory_space<vmem>>, vector<8x128xf32>,
    return
  }
}

</mosaic_0001>

<bundles_post_ra>
// kernel: model_forward.1
= control target key start
LH: loop header
LB: loop body
LE: loop exit
PB: predicated region body
PF: predicated region fallthrough
CT: control target
= control target key end

     0   :  { %11 = vsyncpa [#allocation5], 0  ;;  %s5173_s0 = inlined_call_operand.vmem [shape: f32[64,128], index: 0, kind: input, shape index: {}]   ;;  %s5174_s1 = inlined_call_operand.hbm [shape: bf16[2,128,512], index: 1, kind: input, shape index: {}]   ;;  %s5175_s2 = inlined_call_operand.hbm [shape: bf16[2,128,512], index: 2, kind: input, shape index: {}]   ;;  %s5176_s3 = inlined_call_operand.vmem [shape: f32[2,1,512], index: 3, kind: input, shape index: {}]   ;;  %s5177_s4 = inlined_call_operand.vmem [shape: bf16[128,128], index: 4, kind: input, shape index: {}]   ;;  %s5178_s5 = inlined_call_operand.vmem [shape: f32[1,128], index: 5, kind: input, shape index: {}]   ;;  %s5179_s6 = inlined_call_operand.vmem [shape: f32[8,128], index: 6, kind: output, shape index: {}]  }
   0x1   :  { %12 = vsyncpa [#allocation7], 0  ;;  %s3874_s21 = smov [#allocation4]   ;;  %s3826_s25 = scalar_lea.hbm %s5174_s1, 8192 }
   0x2   :  { %s20_s22 = sshll.u32 %s3874_s21, 4  ;;  %p3827_p0 = scmp.ne.s32.totalorder %s5174_s1, %s3826_s25  ;;  %s21_s22 = int_to_ptr.vmem [resolvable:$true] %s20_s22 }
   0x3   :  { %p3830_p1 = scmp.lt.u32.totalorder %s3826_s25, %s5174_s1 }
   0x5   :  { %p3832_p2 = pnand %p3830_p1, %p3827_p0 }
   0x7   :  { %3835 = shalt.err (!%p3832_p2)
}
   0x8   :  { %s3836_s30 = scalar_lea.vmem %s21_s22, 8192  ;;  %p3841_p4 = scmp.lt.s32.totalorder %s21_s22, %s21_s22 }
   0x9   :  { %p3837_p3 = scmp.ne.s32.totalorder %s21_s22, %s3836_s30  ;;  %p3842_p5 = scmp.lt.s32.totalorder %s3836_s30, %s3836_s30 }
   0xb   :  { %p3843_p6 = por %p3842_p5, %p3841_p4 }
   0xd   :  { %p3844_p7 = pnand %p3843_p6, %p3837_p3 }
   0xf   :  { %3847 = shalt.err (!%p3844_p7)
}
  0x10   :  { %s3875_s7 = smov 256   ;;  %s3876_s8 = smov 16  }
  0x11   :  { %26 = dma.hbm_to_vmem [thread:$0]  %s5174_s1, 8192, %s21_s22, [#allocation5], %s3875_s7, %s3875_s7, %s3876_s8  }
  0x12   :  { %s3877_s11 = smov [#allocation6]   ;;  %s3848_s15 = scalar_lea.hbm %s5175_s2, 8192 }
  0x13   :  { %s32_s12 = sshll.u32 %s3877_s11, 4  ;;  %p3849_p8 = scmp.ne.s32.totalorder %s5175_s2, %s3848_s15  ;;  %s33_s12 = int_to_ptr.vmem [resolvable:$true] %s32_s12 }
  0x14   :  { %p3852_p9 = scmp.lt.u32.totalorder %s3848_s15, %s5175_s2 }
  0x16   :  { %p3854_p10 = pnand %p3852_p9, %p3849_p8 }
  0x18   :  { %3857 = shalt.err (!%p3854_p10)
}
  0x19   :  { %s3858_s20 = scalar_lea.vmem %s33_s12, 8192  ;;  %p3863_p12 = scmp.lt.s32.totalorder %s33_s12, %s33_s12 }
  0x1a   :  { %p3859_p11 = scmp.ne.s32.totalorder %s33_s12, %s3858_s20  ;;  %p3864_p13 = scmp.lt.s32.totalorder %s3858_s20, %s3858_s20 }
  0x1c   :  { %p3865_p0 = por %p3864_p13, %p3863_p12 }
  0x1e   :  { %p3866_p1 = pnand %p3865_p0, %p3859_p11 }
  0x20   :  { %3869 = shalt.err (!%p3866_p1)
}
  0x21   :  { %38 = dma.hbm_to_vmem [thread:$0]  %s5175_s2, 8192, %s33_s12, [#allocation7], %s3875_s7, %s3875_s7, %s3876_s8  }
  0x22   :  { %3870 = dma.done.wait [#allocation5], 8192  }
  0x23   :  { %3871 = vsyncadd [#allocation5], 4294959104 }
  0x24   :  { %3872 = dma.done.wait [#allocation7], 8192  }
  0x25   :  { %3873 = vsyncadd [#allocation7], 4294959104  ;;  %v5184_v0 = vmov 0   ;;  %v3306_v1 = vld [vmem:[#allocation4 + $0x4] ss:$16 sps:$4 sm:$0xff]   ;;  %v53_v34 = vld [vmem:[%s5173_s0 + $0x8] sm:$0xff] }
  0x26   :  { %342 = vmatprep.mubr.bf16.mxu0 %v5184_v0  ;;  %415 = vmatprep.mubr.bf16.mxu1 %v5184_v0  ;;  %v3308_v2 = vld [vmem:[#allocation4 + $0xc] ss:$16 sps:$4 sm:$0xff]   ;;  %v3310_v3 = vld [vmem:[#allocation4] ss:$16 sps:$4 sm:$0xff]   ;;  %v3311_v4 = vld [vmem:[#allocation4 + $0x8] ss:$16 sps:$4 sm:$0xff]  }
  0x27   :  { %310 = vmatprep.subr.bf16.mxu0 %v3306_v1  ;;  %383 = vmatprep.subr.bf16.mxu1 %v3308_v2  ;;  %v3312_v5 = vld [vmem:[#allocation4 + $0x24] ss:$16 sps:$4 sm:$0xff]   ;;  %v3314_v6 = vld [vmem:[#allocation4 + $0x2c] ss:$16 sps:$4 sm:$0xff]   ;;  %v3316_v7 = vld [vmem:[#allocation4 + $0x20] ss:$16 sps:$4 sm:$0xff]  }
  0x28   :  { %311 = vmatpush1.bf16.msra.mxu0 %v3310_v3  ;;  %384 = vmatpush1.bf16.msra.mxu1 %v3311_v4  ;;  %v3317_v8 = vld [vmem:[#allocation4 + $0x28] ss:$16 sps:$4 sm:$0xff]   ;;  %v3318_v9 = vld [vmem:[#allocation4 + $0x44] ss:$16 sps:$4 sm:$0xff]   ;;  %v3320_v10 = vld [vmem:[#allocation4 + $0x4c] ss:$16 sps:$4 sm:$0xff]  }
  0x29   :  { %312 = vmatprep.subr.bf16.mxu0 %v3312_v5  ;;  %385 = vmatprep.subr.bf16.mxu1 %v3314_v6  ;;  %v3322_v11 = vld [vmem:[#allocation4 + $0x40] ss:$16 sps:$4 sm:$0xff]   ;;  %v3323_v12 = vld [vmem:[#allocation4 + $0x48] ss:$16 sps:$4 sm:$0xff]   ;;  %v3324_v13 = vld [vmem:[#allocation4 + $0x64] ss:$16 sps:$4 sm:$0xff]  }
  0x2a   :  { %v3326_v14 = vld [vmem:[#allocation4 + $0x6c] ss:$16 sps:$4 sm:$0xff]   ;;  %v3328_v15 = vld [vmem:[#allocation4 + $0x60] ss:$16 sps:$4 sm:$0xff]   ;;  %v3329_v16 = vld [vmem:[#allocation4 + $0x68] ss:$16 sps:$4 sm:$0xff]  }
  0x2b   :  { %v3330_v17 = vld [vmem:[#allocation4 + $0x84] ss:$16 sps:$4 sm:$0xff]   ;;  %v3332_v18 = vld [vmem:[#allocation4 + $0x8c] ss:$16 sps:$4 sm:$0xff]   ;;  %v3334_v19 = vld [vmem:[#allocation4 + $0x80] ss:$16 sps:$4 sm:$0xff]  }
  0x2c   :  { %313 = vmatpush1.bf16.msra.mxu0 %v3316_v7  ;;  %386 = vmatpush1.bf16.msra.mxu1 %v3317_v8  ;;  %v3335_v20 = vld [vmem:[#allocation4 + $0x88] ss:$16 sps:$4 sm:$0xff]   ;;  %v3336_v21 = vld [vmem:[#allocation4 + $0xa4] ss:$16 sps:$4 sm:$0xff]   ;;  %v3338_v22 = vld [vmem:[#allocation4 + $0xac] ss:$16 sps:$4 sm:$0xff]  }
  0x2d   :  { %314 = vmatprep.subr.bf16.mxu0 %v3318_v9  ;;  %387 = vmatprep.subr.bf16.mxu1 %v3320_v10  ;;  %v3340_v23 = vld [vmem:[#allocation4 + $0xa0] ss:$16 sps:$4 sm:$0xff]   ;;  %v3341_v24 = vld [vmem:[#allocation4 + $0xa8] ss:$16 sps:$4 sm:$0xff]   ;;  %v3342_v25 = vld [vmem:[#allocation4 + $0xc4] ss:$16 sps:$4 sm:$0xff]  }
  0x2e   :  { %v3344_v26 = vld [vmem:[#allocation4 + $0xcc] ss:$16 sps:$4 sm:$0xff]   ;;  %v3346_v27 = vld [vmem:[#allocation4 + $0xc0] ss:$16 sps:$4 sm:$0xff]   ;;  %v3347_v28 = vld [vmem:[#allocation4 + $0xc8] ss:$16 sps:$4 sm:$0xff]  }
  0x2f   :  { %v3348_v29 = vld [vmem:[#allocation4 + $0xe4] ss:$16 sps:$4 sm:$0xff]   ;;  %v3350_v30 = vld [vmem:[#allocation4 + $0xec] ss:$16 sps:$4 sm:$0xff]   ;;  %v3352_v31 = vld [vmem:[#allocation4 + $0xe0] ss:$16 sps:$4 sm:$0xff]  }
  0x30   :  { %315 = vmatpush1.bf16.msra.mxu0 %v3322_v11  ;;  %388 = vmatpush1.bf16.msra.mxu1 %v3323_v12  ;;  %v3353_v32 = vld [vmem:[#allocation4 + $0xe8] ss:$16 sps:$4 sm:$0xff]   ;;  %v52_v33 = vld [vmem:[%s5173_s0] sm:$0xff]  ;;  %v3950_v36 = vld [vmem:[#allocation6 + $0xc] ss:$16 sps:$4 sm:$0xff]   ;;  %vm3880_vm0 = vmmov 0  }
  0x31   :  { %316 = vmatprep.subr.bf16.mxu0 %v3324_v13  ;;  %389 = vmatprep.subr.bf16.mxu1 %v3326_v14  ;;  %v3948_v35 = vld [vmem:[#allocation6 + $0x4] ss:$16 sps:$4 sm:$0xff]   ;;  %v125_v37 = vpack.c.bf16 %v53_v34, %v52_v33  ;;  %v3952_v38 = vld [vmem:[#allocation6] ss:$16 sps:$4 sm:$0xff]   ;;  %v3954_v39 = vld [vmem:[#allocation6 + $0x8] ss:$16 sps:$4 sm:$0xff]   ;;  %v130_v14 = vlaneseq }
  0x32   :  { %v3958_v40 = vld [vmem:[#allocation6 + $0x24] ss:$16 sps:$4 sm:$0xff]   ;;  %v3960_v41 = vld [vmem:[#allocation6 + $0x2c] ss:$16 sps:$4 sm:$0xff]   ;;  %v3962_v42 = vld [vmem:[#allocation6 + $0x20] ss:$16 sps:$4 sm:$0xff]  }
  0x33   :  { %v3964_v43 = vld [vmem:[#allocation6 + $0x28] ss:$16 sps:$4 sm:$0xff]   ;;  %v54_v44 = vld [vmem:[%s5173_s0 + $0x10] sm:$0xff]  ;;  %v3978_v47 = vld [vmem:[#allocation6 + $0x4c] ss:$16 sps:$4 sm:$0xff]  }
  0x34   :  { %317 = vmatpush1.bf16.msra.mxu0 %v3328_v15  ;;  %390 = vmatpush1.bf16.msra.mxu1 %v3329_v16  ;;  %v55_v45 = vld [vmem:[%s5173_s0 + $0x18] sm:$0xff]  ;;  %v3974_v46 = vld [vmem:[#allocation6 + $0x44] ss:$16 sps:$4 sm:$0xff]   ;;  %v3982_v49 = vld [vmem:[#allocation6 + $0x40] ss:$16 sps:$4 sm:$0xff]   ;;  %v4108_v15 = vshrl.u32 %v130_v14, 7 }
  0x35   :  { %318 = vmatprep.subr.bf16.mxu0 %v3330_v17  ;;  %391 = vmatprep.subr.bf16.mxu1 %v3332_v18  ;;  %v126_v48 = vpack.c.bf16 %v55_v45, %v54_v44  ;;  %v3984_v50 = vld [vmem:[#allocation6 + $0x48] ss:$16 sps:$4 sm:$0xff]   ;;  %v3988_v51 = vld [vmem:[#allocation6 + $0x64] ss:$16 sps:$4 sm:$0xff]   ;;  %v3992_v52 = vld [vmem:[#allocation6 + $0x6c] ss:$16 sps:$4 sm:$0xff]  }
  0x36   :  { %v3994_v53 = vld [vmem:[#allocation6 + $0x60] ss:$16 sps:$4 sm:$0xff]   ;;  %v3996_v54 = vld [vmem:[#allocation6 + $0x68] ss:$16 sps:$4 sm:$0xff]   ;;  %v4008_v57 = vld [vmem:[#allocation6 + $0x84] ss:$16 sps:$4 sm:$0xff]  }
  0x37   :  { %v56_v55 = vld [vmem:[%s5173_s0 + $0x20] sm:$0xff]  ;;  %v57_v56 = vld [vmem:[%s5173_s0 + $0x28] sm:$0xff]  ;;  %v58_v3 = vld [vmem:[%s5173_s0 + $0x30] sm:$0xff]  ;;  %5188 = vst [vmem:[#allocation10_spill] sm:$0xff] %v4108_v15  ;;  %v5182_v16 = vsub.s32 2, %v4108_v15  ;;  %v5180_v17 = vsub.s32 3, %v4108_v15 }
  0x38   :  { %319 = vmatpush1.bf16.msra.mxu0 %v3334_v19  ;;  %392 = vmatpush1.bf16.msra.mxu1 %v3335_v20  ;;  %v4010_v58 = vld [vmem:[#allocation6 + $0x8c] ss:$16 sps:$4 sm:$0xff]   ;;  %v4014_v59 = vld [vmem:[#allocation6 + $0x80] ss:$16 sps:$4 sm:$0xff]   ;;  %v4016_v60 = vld [vmem:[#allocation6 + $0x88] ss:$16 sps:$4 sm:$0xff]   ;;  %v127_v61 = vpack.c.bf16 %v57_v56, %v56_v55 }
  0x39   :  { %320 = vmatprep.subr.bf16.mxu0 %v3336_v21  ;;  %393 = vmatprep.subr.bf16.mxu1 %v3338_v22  ;;  %v4018_v62 = vld [vmem:[#allocation6 + $0xa4] ss:$16 sps:$4 sm:$0xff]   ;;  %v4020_v63 = vld [vmem:[#allocation6 + $0xac] ss:$16 sps:$4 sm:$0xff]   ;;  %v4026_v1 = vld [vmem:[#allocation6 + $0xa0] ss:$16 sps:$4 sm:$0xff]  }
  0x3a   :  { %v4028_v2 = vld [vmem:[#allocation6 + $0xa8] ss:$16 sps:$4 sm:$0xff]   ;;  %v4036_v5 = vld [vmem:[#allocation6 + $0xc4] ss:$16 sps:$4 sm:$0xff]   ;;  %v4038_v6 = vld [vmem:[#allocation6 + $0xcc] ss:$16 sps:$4 sm:$0xff]  }
  0x3b   :  { %v59_v4 = vld [vmem:[%s5173_s0 + $0x38] sm:$0xff]  ;;  %v4046_v7 = vld [vmem:[#allocation6 + $0xc0] ss:$16 sps:$4 sm:$0xff]   ;;  %v4050_v10 = vld [vmem:[#allocation6 + $0xe4] ss:$16 sps:$4 sm:$0xff]   ;;  %v5183_v18 = vsub.s32 0, %v4108_v15 }
  0x3c   :  { %321 = vmatpush1.bf16.msra.mxu0 %v3340_v23  ;;  %394 = vmatpush1.bf16.msra.mxu1 %v3341_v24  ;;  %v4048_v8 = vld [vmem:[#allocation6 + $0xc8] ss:$16 sps:$4 sm:$0xff]   ;;  %v128_v9 = vpack.c.bf16 %v59_v4, %v58_v3  ;;  %v4052_v11 = vld [vmem:[#allocation6 + $0xec] ss:$16 sps:$4 sm:$0xff]   ;;  %v4058_v12 = vld [vmem:[#allocation6 + $0xe0] ss:$16 sps:$4 sm:$0xff]  }
  0x3d   :  { %322 = vmatprep.subr.bf16.mxu0 %v3342_v25  ;;  %395 = vmatprep.subr.bf16.mxu1 %v3344_v26  ;;  %v4060_v13 = vld [vmem:[#allocation6 + $0xe8] ss:$16 sps:$4 sm:$0xff]   ;;  %v124_v19 = vld [vmem:[%s5176_s3] sm:$0xf]  ;;  %v5181_v20 = vsub.s32 1, %v4108_v15 }
  0x3e   :  { %v4119_v21 = vrot.slane %v124_v19, %v5182_v16  ;;  %v4127_v24 = vrot.slane %v124_v19, %v5180_v17  ;;  %v133_v25 = vrot.slane %v124_v19, %v5183_v18 }
  0x40   :  { %323 = vmatpush1.bf16.msra.mxu0 %v3346_v27  ;;  %396 = vmatpush1.bf16.msra.mxu1 %v3347_v28  ;;  %v137_v28 = vrot.slane %v124_v19, %v5181_v20 }
  0x41   :  { %324 = vmatprep.subr.bf16.mxu0 %v3348_v29  ;;  %397 = vmatprep.subr.bf16.mxu1 %v3350_v30 }
  0x44   :  { %325 = vmatpush1.bf16.msra.mxu0 %v3352_v31  ;;  %398 = vmatpush1.bf16.msra.mxu1 %v3353_v32 }
  0x45   :  { %616 = vmatprep.subr.bf16.mxu0 %v3948_v35  ;;  %657 = vmatprep.subr.bf16.mxu1 %v3950_v36 }
  0x47   :  { %343 = vmatmul.mubr.bf16.vlgmr.msra.gmra.mrb[0].mxu0 %v125_v37  ;;  %416 = vmatmul.mubr.bf16.vlgmr.msra.gmra.mrb[0].mxu1 %v125_v37 }
  0x48   :  { %617 = vmatpush1.bf16.msra.mxu0 %v3952_v38  ;;  %658 = vmatpush1.bf16.msra.mxu1 %v3954_v39 }
  0x49   :  { %618 = vmatprep.subr.bf16.mxu0 %v3958_v40  ;;  %659 = vmatprep.subr.bf16.mxu1 %v3960_v41 }
  0x4a   :  { %352 = vmatprep.mubr.bf16.mxu0 %v5184_v0  ;;  %425 = vmatprep.mubr.bf16.mxu1 %v5184_v0 }
  0x4c   :  { %619 = vmatpush1.bf16.msra.mxu0 %v3962_v42  ;;  %660 = vmatpush1.bf16.msra.mxu1 %v3964_v43 }
  0x4d   :  { %620 = vmatprep.subr.bf16.mxu0 %v3974_v46  ;;  %661 = vmatprep.subr.bf16.mxu1 %v3978_v47 }
  0x4f   :  { %353 = vmatmul.mubr.bf16.gmra.mrb[4].mxu0 %v126_v48  ;;  %426 = vmatmul.mubr.bf16.gmra.mrb[4].mxu1 %v126_v48 }
  0x50   :  { %621 = vmatpush1.bf16.msra.mxu0 %v3982_v49  ;;  %662 = vmatpush1.bf16.msra.mxu1 %v3984_v50 }
  0x51   :  { %622 = vmatprep.subr.bf16.mxu0 %v3988_v51  ;;  %663 = vmatprep.subr.bf16.mxu1 %v3992_v52 }
  0x52   :  { %362 = vmatprep.mubr.bf16.mxu0 %v5184_v0  ;;  %435 = vmatprep.mubr.bf16.mxu1 %v5184_v0 }
  0x54   :  { %623 = vmatpush1.bf16.msra.mxu0 %v3994_v53  ;;  %664 = vmatpush1.bf16.msra.mxu1 %v3996_v54 }
  0x55   :  { %624 = vmatprep.subr.bf16.mxu0 %v4008_v57  ;;  %665 = vmatprep.subr.bf16.mxu1 %v4010_v58 }
  0x57   :  { %363 = vmatmul.mubr.bf16.gmra.mrb[8].mxu0 %v127_v61  ;;  %436 = vmatmul.mubr.bf16.gmra.mrb[8].mxu1 %v127_v61 }
  0x58   :  { %625 = vmatpush1.bf16.msra.mxu0 %v4014_v59  ;;  %666 = vmatpush1.bf16.msra.mxu1 %v4016_v60 }
  0x59   :  { %626 = vmatprep.subr.bf16.mxu0 %v4018_v62  ;;  %667 = vmatprep.subr.bf16.mxu1 %v4020_v63 }
  0x5a   :  { %372 = vmatprep.mubr.bf16.mxu0 %v5184_v0  ;;  %445 = vmatprep.mubr.bf16.mxu1 %v5184_v0 }
  0x5c   :  { %627 = vmatpush1.bf16.msra.mxu0 %v4026_v1  ;;  %668 = vmatpush1.bf16.msra.mxu1 %v4028_v2 }
  0x5d   :  { %628 = vmatprep.subr.bf16.mxu0 %v4036_v5  ;;  %669 = vmatprep.subr.bf16.mxu1 %v4038_v6 }
  0x5f   :  { %373 = vmatmul.mubr.bf16.gmra.mrb[12].mxu0 %v128_v9  ;;  %446 = vmatmul.mubr.bf16.gmra.mrb[12].mxu1 %v128_v9 }
  0x60   :  { %629 = vmatpush1.bf16.msra.mxu0 %v4046_v7  ;;  %670 = vmatpush1.bf16.msra.mxu1 %v4048_v8 }
  0x61   :  { %630 = vmatprep.subr.bf16.mxu0 %v4050_v10  ;;  %671 = vmatprep.subr.bf16.mxu1 %v4052_v11 }
  0x62   :  { %648 = vmatprep.mubr.bf16.mxu0 %v5184_v0  ;;  %689 = vmatprep.mubr.bf16.mxu1 %v5184_v0 }
  0x64   :  { %631 = vmatpush1.bf16.msra.mxu0 %v4058_v12  ;;  %672 = vmatpush1.bf16.msra.mxu1 %v4060_v13 }
  0x65   :  { %728 = vmatprep.subr.bf16.mxu0 %v3948_v35  ;;  %769 = vmatprep.subr.bf16.mxu1 %v3950_v36 }
  0x67   :  { %649 = vmatmul.mubr.bf16.vlgmr.msra.gmra.mrb[16].mxu0 %v5184_v0  ;;  %690 = vmatmul.mubr.bf16.vlgmr.msra.gmra.mrb[16].mxu1 %v5184_v0 }
  0x68   :  { %729 = vmatpush1.bf16.msra.mxu0 %v3952_v38  ;;  %770 = vmatpush1.bf16.msra.mxu1 %v3954_v39 }
  0x69   :  { %730 = vmatprep.subr.bf16.mxu0 %v3958_v40  ;;  %771 = vmatprep.subr.bf16.mxu1 %v3960_v41 }
  0x6a   :  { %760 = vmatprep.mubr.bf16.mxu0 %v5184_v0  ;;  %801 = vmatprep.mubr.bf16.mxu1 %v5184_v0 }
  0x6c   :  { %731 = vmatpush1.bf16.msra.mxu0 %v3962_v42  ;;  %772 = vmatpush1.bf16.msra.mxu1 %v3964_v43 }
  0x6d   :  { %732 = vmatprep.subr.bf16.mxu0 %v3974_v46  ;;  %773 = vmatprep.subr.bf16.mxu1 %v3978_v47 }
  0x70   :  { %733 = vmatpush1.bf16.msra.mxu0 %v3982_v49  ;;  %774 = vmatpush1.bf16.msra.mxu1 %v3984_v50 }
  0x71   :  { %734 = vmatprep.subr.bf16.mxu0 %v3988_v51  ;;  %775 = vmatprep.subr.bf16.mxu1 %v3992_v52 }
  0x74   :  { %735 = vmatpush1.bf16.msra.mxu0 %v3994_v53  ;;  %776 = vmatpush1.bf16.msra.mxu1 %v3996_v54 }
  0x75   :  { %736 = vmatprep.subr.bf16.mxu0 %v4008_v57  ;;  %777 = vmatprep.subr.bf16.mxu1 %v4010_v58 }
  0x78   :  { %737 = vmatpush1.bf16.msra.mxu0 %v4014_v59  ;;  %778 = vmatpush1.bf16.msra.mxu1 %v4016_v60 }
  0x79   :  { %738 = vmatprep.subr.bf16.mxu0 %v4018_v62  ;;  %779 = vmatprep.subr.bf16.mxu1 %v4020_v63 }
  0x7c   :  { %739 = vmatpush1.bf16.msra.mxu0 %v4026_v1  ;;  %780 = vmatpush1.bf16.msra.mxu1 %v4028_v2 }
  0x7d   :  { %740 = vmatprep.subr.bf16.mxu0 %v4036_v5  ;;  %781 = vmatprep.subr.bf16.mxu1 %v4038_v6 }
  0x80   :  { %741 = vmatpush1.bf16.msra.mxu0 %v4046_v7  ;;  %782 = vmatpush1.bf16.msra.mxu1 %v4048_v8 }
  0x81   :  { %742 = vmatprep.subr.bf16.mxu0 %v4050_v10  ;;  %783 = vmatprep.subr.bf16.mxu1 %v4052_v11 }
  0x84   :  { %743 = vmatpush1.bf16.msra.mxu0 %v4058_v12  ;;  %784 = vmatpush1.bf16.msra.mxu1 %v4060_v13 }
  0x85   :  { %840 = vmatprep.subr.bf16.mxu0 %v3948_v35  ;;  %881 = vmatprep.subr.bf16.mxu1 %v3950_v36 }
 0x11a   :  { %v4121_v22 = vpop.f32.mrb[0].mxu0  ;;  %v4123_v23 = vpop.f32.mrb[0].mxu1 }
 0x11b   :  { %v346_v26 = vpop.f32.mrb[1].mxu0  ;;  %v419_v27 = vpop.f32.mrb[1].mxu1 }
 0x11c   :  { %v348_v29 = vpop.f32.mrb[2].mxu0  ;;  %v421_v30 = vpop.f32.mrb[2].mxu1 }
 0x11d   :  { %v4133_v31 = vadd.f32 %v348_v29, %v133_v25  ;;  %v350_v32 = vpop.f32.mrb[3].mxu0  ;;  %v4136_v33 = vadd.f32 %v421_v30, %v4119_v21  ;;  %v423_v34 = vpop.f32.mrb[3].mxu1 }
 0x11e   :  { %v4138_v37 = vadd.f32 %v350_v32, %v137_v28  ;;  %v4141_v44 = vadd.f32 %v423_v34, %v4127_v24 }
 0x122   :  { %v354_v45 = vpop.f32.mrb[4].mxu0  ;;  %v427_v48 = vpop.f32.mrb[4].mxu1 }
 0x123   :  { %v4143_v55 = vadd.f32 %v354_v45, %v133_v25  ;;  %v356_v56 = vpop.f32.mrb[5].mxu0  ;;  %v4146_v61 = vadd.f32 %v427_v48, %v4119_v21  ;;  %v429_v3 = vpop.f32.mrb[5].mxu1 }
 0x124   :  { %v4148_v4 = vadd.f32 %v356_v56, %v137_v28  ;;  %v358_v9 = vpop.f32.mrb[6].mxu0  ;;  %v4151_v14 = vadd.f32 %v429_v3, %v4127_v24  ;;  %v431_v19 = vpop.f32.mrb[6].mxu1 }
 0x125   :  { %v4153_v29 = vadd.f32 %v358_v9, %v133_v25  ;;  %v360_v30 = vpop.f32.mrb[7].mxu0  ;;  %v4156_v32 = vadd.f32 %v431_v19, %v4119_v21  ;;  %v433_v34 = vpop.f32.mrb[7].mxu1 }
 0x126   :  { %5189 = vst [vmem:[#allocation11_spill] sm:$0xff] %v4151_v14  ;;  %v4158_v45 = vadd.f32 %v360_v30, %v137_v28  ;;  %v4161_v48 = vadd.f32 %v433_v34, %v4127_v24 }
 0x127   :  { %5190 = vst [vmem:[#allocation12_spill] sm:$0xff] %v4153_v29  ;;  %5191 = vst [vmem:[#allocation13_spill] sm:$0xff] %v4156_v32 }
 0x128   :  { %5192 = vst [vmem:[#allocation14_spill] sm:$0xff] %v4158_v45  ;;  %5193 = vst [vmem:[#allocation15_spill] sm:$0xff] %v4161_v48 }
 0x12a   :  { %v364_v17 = vpop.f32.mrb[8].mxu0  ;;  %v437_v56 = vpop.f32.mrb[8].mxu1 }
 0x12b   :  { %v4163_v20 = vadd.f32 %v364_v17, %v133_v25  ;;  %v366_v16 = vpop.f32.mrb[9].mxu0  ;;  %v4166_v3 = vadd.f32 %v437_v56, %v4119_v21  ;;  %v439_v9 = vpop.f32.mrb[9].mxu1 }
 0x12c   :  { %v4168_v18 = vadd.f32 %v366_v16, %v137_v28  ;;  %v368_v0 = vpop.f32.mrb[10].mxu0  ;;  %v4171_v19 = vadd.f32 %v439_v9, %v4127_v24  ;;  %v441_v30 = vpop.f32.mrb[10].mxu1 }
 0x12d   :  { %5194 = vst [vmem:[#allocation16_spill] sm:$0xff] %v4163_v20  ;;  %5195 = vst [vmem:[#allocation17_spill] sm:$0xff] %v4166_v3  ;;  %v4173_v15 = vadd.f32 %v368_v0, %v133_v25  ;;  %v370_v34 = vpop.f32.mrb[11].mxu0  ;;  %v4176_v48 = vadd.f32 %v441_v30, %v4119_v21  ;;  %v443_v17 = vpop.f32.mrb[11].mxu1 }
 0x12e   :  { %5196 = vst [vmem:[#allocation18_spill] sm:$0xff] %v4168_v18  ;;  %5197 = vst [vmem:[#allocation19_spill] sm:$0xff] %v4171_v19  ;;  %v4178_v20 = vadd.f32 %v370_v34, %v137_v28  ;;  %v4181_v56 = vadd.f32 %v443_v17, %v4127_v24 }
 0x12f   :  { %5198 = vst [vmem:[#allocation20_spill] sm:$0xff] %v4173_v15  ;;  %5199 = vst [vmem:[#allocation21_spill] sm:$0xff] %v4176_v48 }
 0x130   :  { %5200 = vst [vmem:[#allocation22_spill] sm:$0xff] %v4178_v20  ;;  %5201 = vst [vmem:[#allocation23_spill] sm:$0xff] %v4181_v56 }
 0x132   :  { %v374_v3 = vpop.f32.mrb[12].mxu0  ;;  %v447_v16 = vpop.f32.mrb[12].mxu1 }
 0x133   :  { %v4183_v18 = vadd.f32 %v374_v3, %v133_v25  ;;  %v376_v45 = vpop.f32.mrb[13].mxu0  ;;  %v4186_v9 = vadd.f32 %v447_v16, %v4119_v21  ;;  %v449_v0 = vpop.f32.mrb[13].mxu1 }
 0x134   :  { %v4188_v15 = vadd.f32 %v376_v45, %v137_v28  ;;  %v378_v19 = vpop.f32.mrb[14].mxu0  ;;  %v4191_v30 = vadd.f32 %v449_v0, %v4127_v24  ;;  %v451_v34 = vpop.f32.mrb[14].mxu1  ;;  %v345_v45 = vadd.f32 %v4121_v22, %v133_v25  ;;  %v347_v0 = vadd.f32 %v346_v26, %v137_v28 }
 0x135   :  { %5202 = vst [vmem:[#allocation24_spill] sm:$0xff] %v4183_v18  ;;  %5203 = vst [vmem:[#allocation25_spill] sm:$0xff] %v4186_v9  ;;  %v4193_v20 = vadd.f32 %v378_v19, %v133_v25  ;;  %v380_v17 = vpop.f32.mrb[15].mxu0  ;;  %v4196_v56 = vadd.f32 %v451_v34, %v4119_v21  ;;  %v453_v3 = vpop.f32.mrb[15].mxu1 }
 0x136   :  { %5204 = vst [vmem:[#allocation26_spill] sm:$0xff] %v4188_v15  ;;  %5205 = vst [vmem:[#allocation27_spill] sm:$0xff] %v4191_v30  ;;  %v4198_v18 = vadd.f32 %v380_v17, %v137_v28  ;;  %v4201_v16 = vadd.f32 %v453_v3, %v4127_v24  ;;  %v418_v15 = vadd.f32 %v4123_v23, %v4119_v21 }
 0x137   :  { %5206 = vst [vmem:[#allocation28_spill] sm:$0xff] %v4193_v20  ;;  %5207 = vst [vmem:[#allocation29_spill] sm:$0xff] %v4196_v56  ;;  %v420_v30 = vadd.f32 %v419_v27, %v4127_v24 }
 0x138   :  { %5208 = vst [vmem:[#allocation30_spill] sm:$0xff] %v4198_v18  ;;  %5209 = vst [vmem:[#allocation31_spill] sm:$0xff] %v4201_v16 }
 0x13a   :  { %v650_v19 = vpop.f32.mrb[16].mxu0  ;;  %v691_v20 = vpop.f32.mrb[16].mxu1 }
 0x13b   :  { %v698_v9 = vadd.f32 %v650_v19, %v345_v45  ;;  %v700_v48 = vadd.f32 %v691_v20, %v418_v15  ;;  %v652_v34 = vpop.f32.mrb[17].mxu0  ;;  %v693_v56 = vpop.f32.mrb[17].mxu1 }
 0x13c   :  { %v699_v32 = vadd.f32 %v652_v34, %v347_v0  ;;  %v701_v17 = vadd.f32 %v693_v56, %v420_v30  ;;  %v654_v18 = vpop.f32.mrb[18].mxu0  ;;  %v695_v29 = vpop.f32.mrb[18].mxu1 }
 0x13d   :  { %v3148_v3 = vmul.f32 -1.442695, %v698_v9  ;;  %v655_v16 = vpop.f32.mrb[19].mxu0  ;;  %v696_v14 = vpop.f32.mrb[19].mxu1 }
 0x13e   :  { %v3149_v22 = vmul.f32 -1.442695, %v699_v32  ;;  %v3150_v21 = vmul.f32 -1.442695, %v701_v17  ;;  %v5210_v16 = vmov 0  }
 0x13f   :  { %3506 = vpow2.f32 %v3148_v3 }
 0x140   :  { %3508 = vpow2.f32 %v3149_v22 }
 0x141   :  { %3510 = vpow2.f32 %v3150_v21 }
 0x142   :  { %3512 = vtanh.f32 %v700_v48 }
 0x149   :  { %v3507_v23 = vpop.eup %3506 }
 0x14a   :  { %v3509_v25 = vpop.eup %3508  ;;  %v705_v24 = vadd.f32 1.0, %v3507_v23 }
 0x14b   :  { %v711_v26 = vadd.f32 1.0, %v3509_v25  ;;  %v3511_v15 = vpop.eup %3510 }
 0x14c   :  { %3514 = vrcp.f32 %v705_v24  ;;  %v3513_v20 = vpop.eup %3512  ;;  %v718_v29 = vadd.f32 1.0, %v3511_v15 }
 0x14d   :  { %3516 = vrcp.f32 %v711_v26 }
 0x14e   :  { %3518 = vrcp.f32 %v718_v29 }
 0x156   :  { %v3515_v27 = vpop.eup %3514 }
 0x157   :  { %v3517_v18 = vpop.eup %3516  ;;  %v722_v28 = vmul.f32 %v3515_v27, %v3513_v20 }
 0x158   :  { %v721_v56 = vmul.f32 0.0, %v3517_v18  ;;  %v3519_v32 = vpop.eup %3518 }
 0x15a   :  { %v4207_v14 = vadd.f32 %v722_v28, %v721_v56 }
 0x15c   :  { %3520 = vtanh.f32 %v4207_v14 }
 0x166   :  { %v3521_v9 = vpop.eup %3520 }
 0x167   :  { %v4210_v30 = vmul.f32 %v3521_v9, %v3519_v32 }
 0x169   :  { %v727_v48 = vpack.c.bf16 %v4210_v30, %v4210_v30 }
 0x16b   :  { %761 = vmatmul.mubr.bf16.vlgmr.msra.gmra.mrb[20].mxu0 %v727_v48  ;;  %802 = vmatmul.mubr.bf16.vlgmr.msra.gmra.mrb[20].mxu1 %v727_v48 }
 0x16c   :  { %841 = vmatpush1.bf16.msra.mxu0 %v3952_v38  ;;  %882 = vmatpush1.bf16.msra.mxu1 %v3954_v39 }
 0x16d   :  { %842 = vmatprep.subr.bf16.mxu0 %v3958_v40  ;;  %883 = vmatprep.subr.bf16.mxu1 %v3960_v41 }
 0x16e   :  { %872 = vmatprep.mubr.bf16.mxu0 %v5210_v16  ;;  %913 = vmatprep.mubr.bf16.mxu1 %v5210_v16 }
 0x170   :  { %843 = vmatpush1.bf16.msra.mxu0 %v3962_v42  ;;  %884 = vmatpush1.bf16.msra.mxu1 %v3964_v43 }
 0x171   :  { %844 = vmatprep.subr.bf16.mxu0 %v3974_v46  ;;  %885 = vmatprep.subr.bf16.mxu1 %v3978_v47 }
 0x174   :  { %845 = vmatpush1.bf16.msra.mxu0 %v3982_v49  ;;  %886 = vmatpush1.bf16.msra.mxu1 %v3984_v50 }
 0x175   :  { %846 = vmatprep.subr.bf16.mxu0 %v3988_v51  ;;  %887 = vmatprep.subr.bf16.mxu1 %v3992_v52 }
 0x178   :  { %847 = vmatpush1.bf16.msra.mxu0 %v3994_v53  ;;  %888 = vmatpush1.bf16.msra.mxu1 %v3996_v54 }
 0x179   :  { %848 = vmatprep.subr.bf16.mxu0 %v4008_v57  ;;  %889 = vmatprep.subr.bf16.mxu1 %v4010_v58 }
 0x17c   :  { %849 = vmatpush1.bf16.msra.mxu0 %v4014_v59  ;;  %890 = vmatpush1.bf16.msra.mxu1 %v4016_v60 }
 0x17d   :  { %850 = vmatprep.subr.bf16.mxu0 %v4018_v62  ;;  %891 = vmatprep.subr.bf16.mxu1 %v4020_v63 }
 0x180   :  { %851 = vmatpush1.bf16.msra.mxu0 %v4026_v1  ;;  %892 = vmatpush1.bf16.msra.mxu1 %v4028_v2 }
 0x181   :  { %852 = vmatprep.subr.bf16.mxu0 %v4036_v5  ;;  %893 = vmatprep.subr.bf16.mxu1 %v4038_v6 }
 0x184   :  { %853 = vmatpush1.bf16.msra.mxu0 %v4046_v7  ;;  %894 = vmatpush1.bf16.msra.mxu1 %v4048_v8 }
 0x185   :  { %854 = vmatprep.subr.bf16.mxu0 %v4050_v10  ;;  %895 = vmatprep.subr.bf16.mxu1 %v4052_v11 }
 0x188   :  { %855 = vmatpush1.bf16.msra.mxu0 %v4058_v12  ;;  %896 = vmatpush1.bf16.msra.mxu1 %v4060_v13 }
 0x189   :  { %952 = vmatprep.subr.bf16.mxu0 %v3948_v35  ;;  %993 = vmatprep.subr.bf16.mxu1 %v3950_v36 }
 0x23e   :  { %v762_v45 = vpop.f32.mrb[20].mxu0  ;;  %v803_v0 = vpop.f32.mrb[20].mxu1 }
 0x23f   :  { %v810_v19 = vadd.f32 %v762_v45, %v4133_v31  ;;  %v812_v34 = vadd.f32 %v803_v0, %v4136_v33  ;;  %v764_v17 = vpop.f32.mrb[21].mxu0  ;;  %v805_v3 = vpop.f32.mrb[21].mxu1 }
 0x240   :  { %v811_v22 = vadd.f32 %v764_v17, %v4138_v37  ;;  %v813_v21 = vadd.f32 %v805_v3, %v4141_v44  ;;  %v766_v23 = vpop.f32.mrb[22].mxu0  ;;  %v807_v25 = vpop.f32.mrb[22].mxu1 }
 0x241   :  { %v3151_v24 = vmul.f32 -1.442695, %v810_v19  ;;  %v767_v26 = vpop.f32.mrb[23].mxu0  ;;  %v808_v15 = vpop.f32.mrb[23].mxu1 }
 0x242   :  { %v3152_v20 = vmul.f32 -1.442695, %v811_v22  ;;  %v3153_v27 = vmul.f32 -1.442695, %v813_v21  ;;  %v5211_v26 = vld [vmem:[#allocation11_spill] sm:$0xff] }
 0x243   :  { %3522 = vpow2.f32 %v3151_v24 }
 0x244   :  { %3524 = vpow2.f32 %v3152_v20 }
 0x245   :  { %3526 = vpow2.f32 %v3153_v27 }
 0x246   :  { %3528 = vtanh.f32 %v812_v34 }
 0x24d   :  { %v3523_v18 = vpop.eup %3522 }
 0x24e   :  { %v3525_v28 = vpop.eup %3524  ;;  %v817_v31 = vadd.f32 1.0, %v3523_v18 }
 0x24f   :  { %v823_v33 = vadd.f32 1.0, %v3525_v28  ;;  %v3527_v37 = vpop.eup %3526 }
 0x250   :  { %3530 = vrcp.f32 %v817_v31  ;;  %v3529_v29 = vpop.eup %3528  ;;  %v830_v9 = vadd.f32 1.0, %v3527_v37 }
 0x251   :  { %3532 = vrcp.f32 %v823_v33 }
 0x252   :  { %3534 = vrcp.f32 %v830_v9 }
 0x25a   :  { %v3531_v44 = vpop.eup %3530 }
 0x25b   :  { %v3533_v56 = vpop.eup %3532  ;;  %v834_v32 = vmul.f32 %v3531_v44, %v3529_v29 }
 0x25c   :  { %v833_v48 = vmul.f32 %v3533_v56, %v4207_v14  ;;  %v3535_v0 = vpop.eup %3534 }
 0x25e   :  { %v4253_v45 = vadd.f32 %v834_v32, %v833_v48 }
 0x260   :  { %3536 = vtanh.f32 %v4253_v45 }
 0x26a   :  { %v3537_v19 = vpop.eup %3536 }
 0x26b   :  { %v4256_v17 = vmul.f32 %v3537_v19, %v3535_v0 }
 0x26d   :  { %v839_v34 = vpack.c.bf16 %v4256_v17, %v4256_v17 }
 0x26f   :  { %873 = vmatmul.mubr.bf16.vlgmr.msra.gmra.mrb[24].mxu0 %v839_v34  ;;  %914 = vmatmul.mubr.bf16.vlgmr.msra.gmra.mrb[24].mxu1 %v839_v34 }
 0x270   :  { %953 = vmatpush1.bf16.msra.mxu0 %v3952_v38  ;;  %994 = vmatpush1.bf16.msra.mxu1 %v3954_v39 }
 0x271   :  { %954 = vmatprep.subr.bf16.mxu0 %v3958_v40  ;;  %995 = vmatprep.subr.bf16.mxu1 %v3960_v41 }
 0x272   :  { %984 = vmatprep.mubr.bf16.mxu0 %v5210_v16  ;;  %1025 = vmatprep.mubr.bf16.mxu1 %v5210_v16 }
 0x274   :  { %955 = vmatpush1.bf16.msra.mxu0 %v3962_v42  ;;  %996 = vmatpush1.bf16.msra.mxu1 %v3964_v43 }
 0x275   :  { %956 = vmatprep.subr.bf16.mxu0 %v3974_v46  ;;  %997 = vmatprep.subr.bf16.mxu1 %v3978_v47 }
 0x278   :  { %957 = vmatpush1.bf16.msra.mxu0 %v3982_v49  ;;  %998 = vmatpush1.bf16.msra.mxu1 %v3984_v50 }
 0x279   :  { %958 = vmatprep.subr.bf16.mxu0 %v3988_v51  ;;  %999 = vmatprep.subr.bf16.mxu1 %v3992_v52 }
 0x27c   :  { %959 = vmatpush1.bf16.msra.mxu0 %v3994_v53  ;;  %1000 = vmatpush1.bf16.msra.mxu1 %v3996_v54 }
 0x27d   :  { %960 = vmatprep.subr.bf16.mxu0 %v4008_v57  ;;  %1001 = vmatprep.subr.bf16.mxu1 %v4010_v58 }
 0x280   :  { %961 = vmatpush1.bf16.msra.mxu0 %v4014_v59  ;;  %1002 = vmatpush1.bf16.msra.mxu1 %v4016_v60 }
 0x281   :  { %962 = vmatprep.subr.bf16.mxu0 %v4018_v62  ;;  %1003 = vmatprep.subr.bf16.mxu1 %v4020_v63 }
 0x284   :  { %963 = vmatpush1.bf16.msra.mxu0 %v4026_v1  ;;  %1004 = vmatpush1.bf16.msra.mxu1 %v4028_v2 }
 0x285   :  { %964 = vmatprep.subr.bf16.mxu0 %v4036_v5  ;;  %1005 = vmatprep.subr.bf16.mxu1 %v4038_v6 }
 0x288   :  { %965 = vmatpush1.bf16.msra.mxu0 %v4046_v7  ;;  %1006 = vmatpush1.bf16.msra.mxu1 %v4048_v8 }
 0x289   :  { %966 = vmatprep.subr.bf16.mxu0 %v4050_v10  ;;  %1007 = vmatprep.subr.bf16.mxu1 %v4052_v11 }
 0x28c   :  { %967 = vmatpush1.bf16.msra.mxu0 %v4058_v12  ;;  %1008 = vmatpush1.bf16.msra.mxu1 %v4060_v13 }
 0x28d   :  { %1064 = vmatprep.subr.bf16.mxu0 %v3948_v35  ;;  %1105 = vmatprep.subr.bf16.mxu1 %v3950_v36 }
 0x342   :  { %v874_v14 = vpop.f32.mrb[24].mxu0  ;;  %v915_v3 = vpop.f32.mrb[24].mxu1 }
 0x343   :  { %v922_v22 = vadd.f32 %v874_v14, %v4143_v55  ;;  %v924_v21 = vadd.f32 %v915_v3, %v4146_v61  ;;  %v876_v23 = vpop.f32.mrb[25].mxu0  ;;  %v917_v25 = vpop.f32.mrb[25].mxu1 }
 0x344   :  { %v923_v24 = vadd.f32 %v876_v23, %v4148_v4  ;;  %v925_v15 = vadd.f32 %v917_v25, %v5211_v26  ;;  %v878_v20 = vpop.f32.mrb[26].mxu0  ;;  %v919_v27 = vpop.f32.mrb[26].mxu1 }
 0x345   :  { %v3154_v18 = vmul.f32 -1.442695, %v922_v22  ;;  %v879_v28 = vpop.f32.mrb[27].mxu0  ;;  %v920_v31 = vpop.f32.mrb[27].mxu1 }
 0x346   :  { %v3155_v35 = vmul.f32 -1.442695, %v923_v24  ;;  %v3156_v36 = vmul.f32 -1.442695, %v925_v15 }
 0x347   :  { %3538 = vpow2.f32 %v3154_v18 }
 0x348   :  { %3540 = vpow2.f32 %v3155_v35 }
 0x349   :  { %3542 = vpow2.f32 %v3156_v36 }
 0x34a   :  { %3544 = vtanh.f32 %v924_v21 }
 0x351   :  { %v3539_v33 = vpop.eup %3538 }
 0x352   :  { %v3541_v37 = vpop.eup %3540  ;;  %v929_v55 = vadd.f32 1.0, %v3539_v33 }
 0x353   :  { %v935_v61 = vadd.f32 1.0, %v3541_v37  ;;  %v3543_v4 = vpop.eup %3542 }
 0x354   :  { %3546 = vrcp.f32 %v929_v55  ;;  %v3545_v29 = vpop.eup %3544  ;;  %v942_v9 = vadd.f32 1.0, %v3543_v4  ;;  %v4356_v55 = vld [vmem:[#allocation6] ss:$16 sps:$4 sm:$0xff]   ;;  %v4362_v4 = vld [vmem:[#allocation6 + $0x24] ss:$16 sps:$4 sm:$0xff]  }
 0x355   :  { %3548 = vrcp.f32 %v935_v61  ;;  %v4359_v61 = vld [vmem:[#allocation6 + $0x8] ss:$16 sps:$4 sm:$0xff]  }
 0x356   :  { %3550 = vrcp.f32 %v942_v9  ;;  %v4379_v9 = vld [vmem:[#allocation6 + $0x4c] ss:$16 sps:$4 sm:$0xff]  }
 0x35e   :  { %v3547_v44 = vpop.eup %3546 }
 0x35f   :  { %v3549_v56 = vpop.eup %3548  ;;  %v946_v32 = vmul.f32 %v3547_v44, %v3545_v29  ;;  %v4365_v29 = vld [vmem:[#allocation6 + $0x2c] ss:$16 sps:$4 sm:$0xff]   ;;  %v4370_v44 = vld [vmem:[#allocation6 + $0x20] ss:$16 sps:$4 sm:$0xff]  }
 0x360   :  { %v945_v48 = vmul.f32 %v3549_v56, %v4253_v45  ;;  %v3551_v19 = vpop.eup %3550  ;;  %v4373_v56 = vld [vmem:[#allocation6 + $0x28] ss:$16 sps:$4 sm:$0xff]  }
 0x362   :  { %v4299_v0 = vadd.f32 %v946_v32, %v945_v48  ;;  %v4376_v32 = vld [vmem:[#allocation6 + $0x44] ss:$16 sps:$4 sm:$0xff]   ;;  %v4382_v48 = vld [vmem:[#allocation6 + $0x40] ss:$16 sps:$4 sm:$0xff]  }
 0x364   :  { %3552 = vtanh.f32 %v4299_v0 }
 0x36e   :  { %v3553_v34 = vpop.eup %3552 }
 0x36f   :  { %v4302_v14 = vmul.f32 %v3553_v34, %v3551_v19  ;;  %v4388_v19 = vld [vmem:[#allocation6 + $0x64] ss:$16 sps:$4 sm:$0xff]   ;;  %v4391_v34 = vld [vmem:[#allocation6 + $0x6c] ss:$16 sps:$4 sm:$0xff]  }
 0x371   :  { %v951_v3 = vpack.c.bf16 %v4302_v14, %v4302_v14 }
 0x373   :  { %985 = vmatmul.mubr.bf16.vlgmr.msra.gmra.mrb[28].mxu0 %v951_v3  ;;  %1026 = vmatmul.mubr.bf16.vlgmr.msra.gmra.mrb[28].mxu1 %v951_v3  ;;  %v4394_v3 = vld [vmem:[#allocation6 + $0x60] ss:$16 sps:$4 sm:$0xff]  }
 0x374   :  { %1065 = vmatpush1.bf16.msra.mxu0 %v3952_v38  ;;  %1106 = vmatpush1.bf16.msra.mxu1 %v3954_v39  ;;  %v4338_v38 = vld [vmem:[#allocation6 + $0x4] ss:$16 sps:$4 sm:$0xff]   ;;  %v4341_v39 = vld [vmem:[#allocation6 + $0xc] ss:$16 sps:$4 sm:$0xff]  }
 0x375   :  { %1066 = vmatprep.subr.bf16.mxu0 %v3958_v40  ;;  %1107 = vmatprep.subr.bf16.mxu1 %v3960_v41 }
 0x376   :  { %1096 = vmatprep.mubr.bf16.mxu0 %v5210_v16  ;;  %1137 = vmatprep.mubr.bf16.mxu1 %v5210_v16 }
 0x378   :  { %1067 = vmatpush1.bf16.msra.mxu0 %v3962_v42  ;;  %1108 = vmatpush1.bf16.msra.mxu1 %v3964_v43  ;;  %v5212_v42 = vld [vmem:[#allocation12_spill] sm:$0xff] }
 0x379   :  { %1068 = vmatprep.subr.bf16.mxu0 %v3974_v46  ;;  %1109 = vmatprep.subr.bf16.mxu1 %v3978_v47  ;;  %v5213_v46 = vld [vmem:[#allocation13_spill] sm:$0xff] }
 0x37c   :  { %1069 = vmatpush1.bf16.msra.mxu0 %v3982_v49  ;;  %1110 = vmatpush1.bf16.msra.mxu1 %v3984_v50 }
 0x37d   :  { %1070 = vmatprep.subr.bf16.mxu0 %v3988_v51  ;;  %1111 = vmatprep.subr.bf16.mxu1 %v3992_v52  ;;  %v5214_v51 = vld [vmem:[#allocation14_spill] sm:$0xff] }
 0x380   :  { %1071 = vmatpush1.bf16.msra.mxu0 %v3994_v53  ;;  %1112 = vmatpush1.bf16.msra.mxu1 %v3996_v54  ;;  %v5215_v53 = vld [vmem:[#allocation15_spill] sm:$0xff] }
 0x381   :  { %1072 = vmatprep.subr.bf16.mxu0 %v4008_v57  ;;  %1113 = vmatprep.subr.bf16.mxu1 %v4010_v58 }
 0x384   :  { %1073 = vmatpush1.bf16.msra.mxu0 %v4014_v59  ;;  %1114 = vmatpush1.bf16.msra.mxu1 %v4016_v60 }
 0x385   :  { %1074 = vmatprep.subr.bf16.mxu0 %v4018_v62  ;;  %1115 = vmatprep.subr.bf16.mxu1 %v4020_v63 }
 0x388   :  { %1075 = vmatpush1.bf16.msra.mxu0 %v4026_v1  ;;  %1116 = vmatpush1.bf16.msra.mxu1 %v4028_v2 }
 0x389   :  { %1076 = vmatprep.subr.bf16.mxu0 %v4036_v5  ;;  %1117 = vmatprep.subr.bf16.mxu1 %v4038_v6 }
 0x38c   :  { %1077 = vmatpush1.bf16.msra.mxu0 %v4046_v7  ;;  %1118 = vmatpush1.bf16.msra.mxu1 %v4048_v8 }
 0x38d   :  { %1078 = vmatprep.subr.bf16.mxu0 %v4050_v10  ;;  %1119 = vmatprep.subr.bf16.mxu1 %v4052_v11 }
 0x390   :  { %1079 = vmatpush1.bf16.msra.mxu0 %v4058_v12  ;;  %1120 = vmatpush1.bf16.msra.mxu1 %v4060_v13 }
 0x391   :  { %1176 = vmatprep.subr.bf16.mxu0 %v4338_v38  ;;  %1217 = vmatprep.subr.bf16.mxu1 %v4341_v39 }
 0x446   :  { %v986_v40 = vpop.f32.mrb[28].mxu0  ;;  %v1027_v41 = vpop.f32.mrb[28].mxu1 }
 0x447   :  { %v1034_v43 = vadd.f32 %v986_v40, %v5212_v42  ;;  %v1036_v47 = vadd.f32 %v1027_v41, %v5213_v46  ;;  %v988_v49 = vpop.f32.mrb[29].mxu0  ;;  %v1029_v50 = vpop.f32.mrb[29].mxu1  ;;  %v4397_v40 = vld [vmem:[#allocation6 + $0x68] ss:$16 sps:$4 sm:$0xff]   ;;  %v4400_v41 = vld [vmem:[#allocation6 + $0x84] ss:$16 sps:$4 sm:$0xff]  }
 0x448   :  { %v1035_v52 = vadd.f32 %v988_v49, %v5214_v51  ;;  %v1037_v54 = vadd.f32 %v1029_v50, %v5215_v53  ;;  %v990_v57 = vpop.f32.mrb[30].mxu0  ;;  %v1031_v58 = vpop.f32.mrb[30].mxu1  ;;  %v4403_v42 = vld [vmem:[#allocation6 + $0x8c] ss:$16 sps:$4 sm:$0xff]   ;;  %v4409_v46 = vld [vmem:[#allocation6 + $0x88] ss:$16 sps:$4 sm:$0xff]  }
 0x449   :  { %v3157_v59 = vmul.f32 -1.442695, %v1034_v43  ;;  %v991_v60 = vpop.f32.mrb[31].mxu0  ;;  %v1032_v62 = vpop.f32.mrb[31].mxu1  ;;  %v4406_v43 = vld [vmem:[#allocation6 + $0x80] ss:$16 sps:$4 sm:$0xff]  }
 0x44a   :  { %v3158_v63 = vmul.f32 -1.442695, %v1035_v52  ;;  %v3159_v45 = vmul.f32 -1.442695, %v1037_v54  ;;  %v4415_v49 = vld [vmem:[#allocation6 + $0xac] ss:$16 sps:$4 sm:$0xff]  }
 0x44b   :  { %3554 = vpow2.f32 %v3157_v59  ;;  %v5217_v50 = vld [vmem:[#allocation17_spill] sm:$0xff]  ;;  %v5218_v52 = vld [vmem:[#allocation18_spill] sm:$0xff]  ;;  %v5219_v53 = vld [vmem:[#allocation19_spill] sm:$0xff] }
 0x44c   :  { %3556 = vpow2.f32 %v3158_v63 }
 0x44d   :  { %3558 = vpow2.f32 %v3159_v45 }
 0x44e   :  { %3560 = vtanh.f32 %v1036_v47  ;;  %v4412_v47 = vld [vmem:[#allocation6 + $0xa4] ss:$16 sps:$4 sm:$0xff]  }
 0x455   :  { %v3555_v22 = vpop.eup %3554 }
 0x456   :  { %v3557_v21 = vpop.eup %3556  ;;  %v1041_v23 = vadd.f32 1.0, %v3555_v22 }
 0x457   :  { %v1047_v25 = vadd.f32 1.0, %v3557_v21  ;;  %v3559_v24 = vpop.eup %3558 }
 0x458   :  { %3562 = vrcp.f32 %v1041_v23  ;;  %v3561_v26 = vpop.eup %3560  ;;  %v1054_v18 = vadd.f32 1.0, %v3559_v24 }
 0x459   :  { %3564 = vrcp.f32 %v1047_v25 }
 0x45a   :  { %3566 = vrcp.f32 %v1054_v18 }
 0x462   :  { %v3563_v15 = vpop.eup %3562 }
 0x463   :  { %v3565_v20 = vpop.eup %3564  ;;  %v1058_v27 = vmul.f32 %v3563_v15, %v3561_v26 }
 0x464   :  { %v1057_v28 = vmul.f32 %v3565_v20, %v4299_v0  ;;  %v3567_v35 = vpop.eup %3566  ;;  %v4385_v0 = vld [vmem:[#allocation6 + $0x48] ss:$16 sps:$4 sm:$0xff]  }
 0x466   :  { %v4349_v31 = vadd.f32 %v1058_v27, %v1057_v28 }
 0x468   :  { %3568 = vtanh.f32 %v4349_v31 }
 0x472   :  { %v3569_v36 = vpop.eup %3568 }
 0x473   :  { %v4352_v33 = vmul.f32 %v3569_v36, %v3567_v35 }
 0x475   :  { %v1063_v37 = vpack.c.bf16 %v4352_v33, %v4352_v33 }
 0x477   :  { %1097 = vmatmul.mubr.bf16.vlgmr.msra.gmra.mrb[32].mxu0 %v1063_v37  ;;  %1138 = vmatmul.mubr.bf16.vlgmr.msra.gmra.mrb[32].mxu1 %v1063_v37  ;;  %v4467_v37 = vld [vmem:[#allocation6 + $0xa8] ss:$16 sps:$4 sm:$0xff]  }
 0x478   :  { %1177 = vmatpush1.bf16.msra.mxu0 %v4356_v55  ;;  %1218 = vmatpush1.bf16.msra.mxu1 %v4359_v61 }
 0x479   :  { %1178 = vmatprep.subr.bf16.mxu0 %v4362_v4  ;;  %1219 = vmatprep.subr.bf16.mxu1 %v4365_v29 }
 0x47a   :  { %1208 = vmatprep.mubr.bf16.mxu0 %v5210_v16  ;;  %1249 = vmatprep.mubr.bf16.mxu1 %v5210_v16 }
 0x47c   :  { %1179 = vmatpush1.bf16.msra.mxu0 %v4370_v44  ;;  %1220 = vmatpush1.bf16.msra.mxu1 %v4373_v56 }
 0x47d   :  { %1180 = vmatprep.subr.bf16.mxu0 %v4376_v32  ;;  %1221 = vmatprep.subr.bf16.mxu1 %v4379_v9 }
 0x480   :  { %1181 = vmatpush1.bf16.msra.mxu0 %v4382_v48  ;;  %1222 = vmatpush1.bf16.msra.mxu1 %v4385_v0 }
 0x481   :  { %1182 = vmatprep.subr.bf16.mxu0 %v4388_v19  ;;  %1223 = vmatprep.subr.bf16.mxu1 %v4391_v34 }
 0x484   :  { %1183 = vmatpush1.bf16.msra.mxu0 %v4394_v3  ;;  %1224 = vmatpush1.bf16.msra.mxu1 %v4397_v40 }
 0x485   :  { %1184 = vmatprep.subr.bf16.mxu0 %v4400_v41  ;;  %1225 = vmatprep.subr.bf16.mxu1 %v4403_v42 }
 0x488   :  { %1185 = vmatpush1.bf16.msra.mxu0 %v4406_v43  ;;  %1226 = vmatpush1.bf16.msra.mxu1 %v4409_v46 }
 0x489   :  { %1186 = vmatprep.subr.bf16.mxu0 %v4412_v47  ;;  %1227 = vmatprep.subr.bf16.mxu1 %v4415_v49 }
 0x48c   :  { %1187 = vmatpush1.bf16.msra.mxu0 %v4026_v1  ;;  %1228 = vmatpush1.bf16.msra.mxu1 %v4028_v2 }
 0x48d   :  { %1188 = vmatprep.subr.bf16.mxu0 %v4036_v5  ;;  %1229 = vmatprep.subr.bf16.mxu1 %v4038_v6  ;;  %v5216_v5 = vld [vmem:[#allocation16_spill] sm:$0xff] }
 0x490   :  { %1189 = vmatpush1.bf16.msra.mxu0 %v4046_v7  ;;  %1230 = vmatpush1.bf16.msra.mxu1 %v4048_v8 }
 0x491   :  { %1190 = vmatprep.subr.bf16.mxu0 %v4050_v10  ;;  %1231 = vmatprep.subr.bf16.mxu1 %v4052_v11 }
 0x494   :  { %1191 = vmatpush1.bf16.msra.mxu0 %v4058_v12  ;;  %1232 = vmatpush1.bf16.msra.mxu1 %v4060_v13 }
 0x495   :  { %1288 = vmatprep.subr.bf16.mxu0 %v4338_v38  ;;  %1329 = vmatprep.subr.bf16.mxu1 %v4341_v39 }
 0x54a   :  { %v1098_v1 = vpop.f32.mrb[32].mxu0  ;;  %v1139_v2 = vpop.f32.mrb[32].mxu1 }
 0x54b   :  { %v1146_v6 = vadd.f32 %v1098_v1, %v5216_v5  ;;  %v1148_v7 = vadd.f32 %v1139_v2, %v5217_v50  ;;  %v1100_v51 = vpop.f32.mrb[33].mxu0  ;;  %v1141_v8 = vpop.f32.mrb[33].mxu1  ;;  %v4470_v1 = vld [vmem:[#allocation6 + $0xc4] ss:$16 sps:$4 sm:$0xff]   ;;  %v4473_v2 = vld [vmem:[#allocation6 + $0xcc] ss:$16 sps:$4 sm:$0xff]  }
 0x54c   :  { %v1147_v10 = vadd.f32 %v1100_v51, %v5218_v52  ;;  %v1149_v11 = vadd.f32 %v1141_v8, %v5219_v53  ;;  %v1102_v54 = vpop.f32.mrb[34].mxu0  ;;  %v1143_v12 = vpop.f32.mrb[34].mxu1  ;;  %v4476_v5 = vld [vmem:[#allocation6 + $0xc0] ss:$16 sps:$4 sm:$0xff]   ;;  %v4482_v50 = vld [vmem:[#allocation6 + $0xe4] ss:$16 sps:$4 sm:$0xff]  }
 0x54d   :  { %v3160_v57 = vmul.f32 -1.442695, %v1146_v6  ;;  %v1103_v13 = vpop.f32.mrb[35].mxu0  ;;  %v1144_v58 = vpop.f32.mrb[35].mxu1  ;;  %v4479_v6 = vld [vmem:[#allocation6 + $0xc8] ss:$16 sps:$4 sm:$0xff]  }
 0x54e   :  { %v3161_v59 = vmul.f32 -1.442695, %v1147_v10  ;;  %v3162_v60 = vmul.f32 -1.442695, %v1149_v11  ;;  %v4488_v51 = vld [vmem:[#allocation6 + $0xe0] ss:$16 sps:$4 sm:$0xff]  }
 0x54f   :  { %3570 = vpow2.f32 %v3160_v57  ;;  %v4491_v8 = vld [vmem:[#allocation6 + $0xe8] ss:$16 sps:$4 sm:$0xff]   ;;  %v5220_v53 = vld [vmem:[#allocation20_spill] sm:$0xff]  ;;  %v5222_v58 = vld [vmem:[#allocation22_spill] sm:$0xff] }
 0x550   :  { %3572 = vpow2.f32 %v3161_v59  ;;  %v5221_v54 = vld [vmem:[#allocation21_spill] sm:$0xff] }
 0x551   :  { %3574 = vpow2.f32 %v3162_v60  ;;  %v5223_v60 = vld [vmem:[#allocation23_spill] sm:$0xff] }
 0x552   :  { %3576 = vtanh.f32 %v1148_v7  ;;  %v4485_v7 = vld [vmem:[#allocation6 + $0xec] ss:$16 sps:$4 sm:$0xff]  }
 0x559   :  { %v3571_v62 = vpop.eup %3570 }
 0x55a   :  { %v3573_v63 = vpop.eup %3572  ;;  %v1153_v45 = vadd.f32 1.0, %v3571_v62 }
 0x55b   :  { %v1159_v22 = vadd.f32 1.0, %v3573_v63  ;;  %v3575_v21 = vpop.eup %3574 }
 0x55c   :  { %3578 = vrcp.f32 %v1153_v45  ;;  %v3577_v23 = vpop.eup %3576  ;;  %v1166_v15 = vadd.f32 1.0, %v3575_v21 }
 0x55d   :  { %3580 = vrcp.f32 %v1159_v22 }
 0x55e   :  { %3582 = vrcp.f32 %v1166_v15 }
 0x566   :  { %v3579_v25 = vpop.eup %3578 }
 0x567   :  { %v3581_v24 = vpop.eup %3580  ;;  %v1170_v26 = vmul.f32 %v3579_v25, %v3577_v23 }
 0x568   :  { %v1169_v20 = vmul.f32 %v3581_v24, %v4349_v31  ;;  %v3583_v18 = vpop.eup %3582  ;;  %v4464_v31 = vld [vmem:[#allocation6 + $0xa0] ss:$16 sps:$4 sm:$0xff]  }
 0x56a   :  { %v4435_v27 = vadd.f32 %v1170_v26, %v1169_v20 }
 0x56c   :  { %3584 = vtanh.f32 %v4435_v27 }
 0x576   :  { %v3585_v28 = vpop.eup %3584 }
 0x577   :  { %v4438_v35 = vmul.f32 %v3585_v28, %v3583_v18 }
 0x579   :  { %v1175_v36 = vpack.c.bf16 %v4438_v35, %v4438_v35 }
 0x57b   :  { %1209 = vmatmul.mubr.bf16.vlgmr.msra.gmra.mrb[36].mxu0 %v1175_v36  ;;  %1250 = vmatmul.mubr.bf16.vlgmr.msra.gmra.mrb[36].mxu1 %v1175_v36 }
 0x57c   :  { %1289 = vmatpush1.bf16.msra.mxu0 %v4356_v55  ;;  %1330 = vmatpush1.bf16.msra.mxu1 %v4359_v61 }
 0x57d   :  { %1290 = vmatprep.subr.bf16.mxu0 %v4362_v4  ;;  %1331 = vmatprep.subr.bf16.mxu1 %v4365_v29 }
 0x57e   :  { %1320 = vmatprep.mubr.bf16.mxu0 %v5210_v16  ;;  %1361 = vmatprep.mubr.bf16.mxu1 %v5210_v16 }
 0x580   :  { %1291 = vmatpush1.bf16.msra.mxu0 %v4370_v44  ;;  %1332 = vmatpush1.bf16.msra.mxu1 %v4373_v56 }
 0x581   :  { %1292 = vmatprep.subr.bf16.mxu0 %v4376_v32  ;;  %1333 = vmatprep.subr.bf16.mxu1 %v4379_v9 }
 0x584   :  { %1293 = vmatpush1.bf16.msra.mxu0 %v4382_v48  ;;  %1334 = vmatpush1.bf16.msra.mxu1 %v4385_v0 }
 0x585   :  { %1294 = vmatprep.subr.bf16.mxu0 %v4388_v19  ;;  %1335 = vmatprep.subr.bf16.mxu1 %v4391_v34 }
 0x588   :  { %1295 = vmatpush1.bf16.msra.mxu0 %v4394_v3  ;;  %1336 = vmatpush1.bf16.msra.mxu1 %v4397_v40 }
 0x589   :  { %1296 = vmatprep.subr.bf16.mxu0 %v4400_v41  ;;  %1337 = vmatprep.subr.bf16.mxu1 %v4403_v42 }
 0x58c   :  { %1297 = vmatpush1.bf16.msra.mxu0 %v4406_v43  ;;  %1338 = vmatpush1.bf16.msra.mxu1 %v4409_v46 }
 0x58d   :  { %1298 = vmatprep.subr.bf16.mxu0 %v4412_v47  ;;  %1339 = vmatprep.subr.bf16.mxu1 %v4415_v49 }
 0x590   :  { %1299 = vmatpush1.bf16.msra.mxu0 %v4464_v31  ;;  %1340 = vmatpush1.bf16.msra.mxu1 %v4467_v37 }
 0x591   :  { %1300 = vmatprep.subr.bf16.mxu0 %v4470_v1  ;;  %1341 = vmatprep.subr.bf16.mxu1 %v4473_v2 }
 0x594   :  { %1301 = vmatpush1.bf16.msra.mxu0 %v4476_v5  ;;  %1342 = vmatpush1.bf16.msra.mxu1 %v4479_v6 }
 0x595   :  { %1302 = vmatprep.subr.bf16.mxu0 %v4482_v50  ;;  %1343 = vmatprep.subr.bf16.mxu1 %v4485_v7 }
 0x598   :  { %1303 = vmatpush1.bf16.msra.mxu0 %v4488_v51  ;;  %1344 = vmatpush1.bf16.msra.mxu1 %v4491_v8 }
 0x599   :  { %1400 = vmatprep.subr.bf16.mxu0 %v4338_v38  ;;  %1441 = vmatprep.subr.bf16.mxu1 %v4341_v39 }
 0x64e   :  { %v1210_v52 = vpop.f32.mrb[36].mxu0  ;;  %v1251_v10 = vpop.f32.mrb[36].mxu1 }
 0x64f   :  { %v1258_v11 = vadd.f32 %v1210_v52, %v5220_v53  ;;  %v1260_v12 = vadd.f32 %v1251_v10, %v5221_v54  ;;  %v1212_v57 = vpop.f32.mrb[37].mxu0  ;;  %v1253_v13 = vpop.f32.mrb[37].mxu1 }
 0x650   :  { %v1259_v59 = vadd.f32 %v1212_v57, %v5222_v58  ;;  %v1261_v62 = vadd.f32 %v1253_v13, %v5223_v60  ;;  %v1214_v63 = vpop.f32.mrb[38].mxu0  ;;  %v1255_v45 = vpop.f32.mrb[38].mxu1 }
 0x651   :  { %v3163_v22 = vmul.f32 -1.442695, %v1258_v11  ;;  %v1215_v21 = vpop.f32.mrb[39].mxu0  ;;  %v1256_v23 = vpop.f32.mrb[39].mxu1  ;;  %v3402_v45 = vld [vmem:[#allocation4 + $0x100] ss:$16 sps:$4 sm:$0xff]  }
 0x652   :  { %v3164_v38 = vmul.f32 -1.442695, %v1259_v59  ;;  %v3165_v39 = vmul.f32 -1.442695, %v1261_v62  ;;  %v3410_v23 = vld [vmem:[#allocation4 + $0x124] ss:$16 sps:$4 sm:$0xff]  }
 0x653   :  { %3586 = vpow2.f32 %v3163_v22  ;;  %v3405_v22 = vld [vmem:[#allocation4 + $0x108] ss:$16 sps:$4 sm:$0xff]  }
 0x654   :  { %3588 = vpow2.f32 %v3164_v38  ;;  %v3413_v38 = vld [vmem:[#allocation4 + $0x12c] ss:$16 sps:$4 sm:$0xff]  }
 0x655   :  { %3590 = vpow2.f32 %v3165_v39  ;;  %v3408_v39 = vld [vmem:[#allocation4 + $0x120] ss:$16 sps:$4 sm:$0xff]  }
 0x656   :  { %3592 = vtanh.f32 %v1260_v12 }
 0x65d   :  { %v3587_v25 = vpop.eup %3586 }
 0x65e   :  { %v3589_v24 = vpop.eup %3588  ;;  %v1265_v26 = vadd.f32 1.0, %v3587_v25  ;;  %v3411_v25 = vld [vmem:[#allocation4 + $0x128] ss:$16 sps:$4 sm:$0xff]  }
 0x65f   :  { %v1271_v15 = vadd.f32 1.0, %v3589_v24  ;;  %v3591_v20 = vpop.eup %3590  ;;  %v3416_v24 = vld [vmem:[#allocation4 + $0x144] ss:$16 sps:$4 sm:$0xff]  }
 0x660   :  { %3594 = vrcp.f32 %v1265_v26  ;;  %v3593_v18 = vpop.eup %3592  ;;  %v1278_v10 = vadd.f32 1.0, %v3591_v20  ;;  %v3419_v26 = vld [vmem:[#allocation4 + $0x14c] ss:$16 sps:$4 sm:$0xff]   ;;  %v3417_v20 = vld [vmem:[#allocation4 + $0x148] ss:$16 sps:$4 sm:$0xff]  }
 0x661   :  { %3596 = vrcp.f32 %v1271_v15  ;;  %v3414_v15 = vld [vmem:[#allocation4 + $0x140] ss:$16 sps:$4 sm:$0xff]  }
 0x662   :  { %3598 = vrcp.f32 %v1278_v10  ;;  %v3428_v10 = vld [vmem:[#allocation4 + $0x184] ss:$16 sps:$4 sm:$0xff]  }
 0x66a   :  { %v3595_v28 = vpop.eup %3594 }
 0x66b   :  { %v3597_v36 = vpop.eup %3596  ;;  %v1282_v52 = vmul.f32 %v3595_v28, %v3593_v18  ;;  %v3422_v18 = vld [vmem:[#allocation4 + $0x164] ss:$16 sps:$4 sm:$0xff]   ;;  %v3425_v28 = vld [vmem:[#allocation4 + $0x16c] ss:$16 sps:$4 sm:$0xff]  }
 0x66c   :  { %v1281_v53 = vmul.f32 %v3597_v36, %v4435_v27  ;;  %v3599_v54 = vpop.eup %3598  ;;  %v3420_v36 = vld [vmem:[#allocation4 + $0x160] ss:$16 sps:$4 sm:$0xff]  }
 0x66e   :  { %v4501_v11 = vadd.f32 %v1282_v52, %v1281_v53  ;;  %v3423_v52 = vld [vmem:[#allocation4 + $0x168] ss:$16 sps:$4 sm:$0xff]   ;;  %v3431_v53 = vld [vmem:[#allocation4 + $0x18c] ss:$16 sps:$4 sm:$0xff]  }
 0x670   :  { %3600 = vtanh.f32 %v4501_v11 }
 0x67a   :  { %v3601_v57 = vpop.eup %3600 }
 0x67b   :  { %v4504_v13 = vmul.f32 %v3601_v57, %v3599_v54  ;;  %v3429_v54 = vld [vmem:[#allocation4 + $0x188] ss:$16 sps:$4 sm:$0xff]   ;;  %v3434_v57 = vld [vmem:[#allocation4 + $0x1a4] ss:$16 sps:$4 sm:$0xff]  }
 0x67d   :  { %v1287_v12 = vpack.c.bf16 %v4504_v13, %v4504_v13 }
 0x67f   :  { %1321 = vmatmul.mubr.bf16.vlgmr.msra.gmra.mrb[40].mxu0 %v1287_v12  ;;  %1362 = vmatmul.mubr.bf16.vlgmr.msra.gmra.mrb[40].mxu1 %v1287_v12  ;;  %v3437_v12 = vld [vmem:[#allocation4 + $0x1ac] ss:$16 sps:$4 sm:$0xff]  }
 0x680   :  { %1401 = vmatpush1.bf16.msra.mxu0 %v4356_v55  ;;  %1442 = vmatpush1.bf16.msra.mxu1 %v4359_v61  ;;  %v3404_v55 = vld [vmem:[#allocation4 + $0x104] ss:$16 sps:$4 sm:$0xff]   ;;  %v3407_v61 = vld [vmem:[#allocation4 + $0x10c] ss:$16 sps:$4 sm:$0xff]  }
 0x681   :  { %1402 = vmatprep.subr.bf16.mxu0 %v4362_v4  ;;  %1443 = vmatprep.subr.bf16.mxu1 %v4365_v29 }
 0x682   :  { %1432 = vmatprep.mubr.bf16.mxu0 %v5210_v16  ;;  %1473 = vmatprep.mubr.bf16.mxu1 %v5210_v16 }
 0x684   :  { %1403 = vmatpush1.bf16.msra.mxu0 %v4370_v44  ;;  %1444 = vmatpush1.bf16.msra.mxu1 %v4373_v56  ;;  %v5224_v44 = vld [vmem:[#allocation24_spill] sm:$0xff] }
 0x685   :  { %1404 = vmatprep.subr.bf16.mxu0 %v4376_v32  ;;  %1445 = vmatprep.subr.bf16.mxu1 %v4379_v9  ;;  %v5225_v32 = vld [vmem:[#allocation25_spill] sm:$0xff] }
 0x688   :  { %1405 = vmatpush1.bf16.msra.mxu0 %v4382_v48  ;;  %1446 = vmatpush1.bf16.msra.mxu1 %v4385_v0 }
 0x689   :  { %1406 = vmatprep.subr.bf16.mxu0 %v4388_v19  ;;  %1447 = vmatprep.subr.bf16.mxu1 %v4391_v34  ;;  %v5226_v19 = vld [vmem:[#allocation26_spill] sm:$0xff] }
 0x68c   :  { %1407 = vmatpush1.bf16.msra.mxu0 %v4394_v3  ;;  %1448 = vmatpush1.bf16.msra.mxu1 %v4397_v40  ;;  %v5227_v3 = vld [vmem:[#allocation27_spill] sm:$0xff] }
 0x68d   :  { %1408 = vmatprep.subr.bf16.mxu0 %v4400_v41  ;;  %1449 = vmatprep.subr.bf16.mxu1 %v4403_v42 }
 0x690   :  { %1409 = vmatpush1.bf16.msra.mxu0 %v4406_v43  ;;  %1450 = vmatpush1.bf16.msra.mxu1 %v4409_v46 }
 0x691   :  { %1410 = vmatprep.subr.bf16.mxu0 %v4412_v47  ;;  %1451 = vmatprep.subr.bf16.mxu1 %v4415_v49 }
 0x694   :  { %1411 = vmatpush1.bf16.msra.mxu0 %v4464_v31  ;;  %1452 = vmatpush1.bf16.msra.mxu1 %v4467_v37 }
 0x695   :  { %1412 = vmatprep.subr.bf16.mxu0 %v4470_v1  ;;  %1453 = vmatprep.subr.bf16.mxu1 %v4473_v2 }
 0x698   :  { %1413 = vmatpush1.bf16.msra.mxu0 %v4476_v5  ;;  %1454 = vmatpush1.bf16.msra.mxu1 %v4479_v6 }
 0x699   :  { %1414 = vmatprep.subr.bf16.mxu0 %v4482_v50  ;;  %1455 = vmatprep.subr.bf16.mxu1 %v4485_v7 }
 0x69c   :  { %1415 = vmatpush1.bf16.msra.mxu0 %v4488_v51  ;;  %1456 = vmatpush1.bf16.msra.mxu1 %v4491_v8 }
 0x69d   :  { %1772 = vmatprep.subr.bf16.mxu0 %v3404_v55  ;;  %1845 = vmatprep.subr.bf16.mxu1 %v3407_v61  ;;  %v3432_v55 = vld [vmem:[#allocation4 + $0x1a0] ss:$16 sps:$4 sm:$0xff]   ;;  %v3435_v61 = vld [vmem:[#allocation4 + $0x1a8] ss:$16 sps:$4 sm:$0xff]  }
 0x752   :  { %v1322_v4 = vpop.f32.mrb[40].mxu0  ;;  %v1363_v29 = vpop.f32.mrb[40].mxu1 }
 0x753   :  { %v1370_v56 = vadd.f32 %v1322_v4, %v5224_v44  ;;  %v1372_v9 = vadd.f32 %v1363_v29, %v5225_v32  ;;  %v1324_v48 = vpop.f32.mrb[41].mxu0  ;;  %v1365_v0 = vpop.f32.mrb[41].mxu1  ;;  %v3440_v4 = vld [vmem:[#allocation4 + $0x1c4] ss:$16 sps:$4 sm:$0xff]   ;;  %v3443_v29 = vld [vmem:[#allocation4 + $0x1cc] ss:$16 sps:$4 sm:$0xff]  }
 0x754   :  { %v1371_v34 = vadd.f32 %v1324_v48, %v5226_v19  ;;  %v1373_v40 = vadd.f32 %v1365_v0, %v5227_v3  ;;  %v1326_v41 = vpop.f32.mrb[42].mxu0  ;;  %v1367_v42 = vpop.f32.mrb[42].mxu1  ;;  %v3438_v44 = vld [vmem:[#allocation4 + $0x1c0] ss:$16 sps:$4 sm:$0xff]   ;;  %v3446_v32 = vld [vmem:[#allocation4 + $0x1e4] ss:$16 sps:$4 sm:$0xff]   ;;  %v1587_v19 = vpack.c.bf16 %v4256_v17, %v4210_v30  ;;  %v1589_v3 = vpack.c.bf16 %v4504_v13, %v4438_v35 }
 0x755   :  { %v3166_v43 = vmul.f32 -1.442695, %v1370_v56  ;;  %v1327_v46 = vpop.f32.mrb[43].mxu0  ;;  %v1368_v47 = vpop.f32.mrb[43].mxu1  ;;  %v3441_v56 = vld [vmem:[#allocation4 + $0x1c8] ss:$16 sps:$4 sm:$0xff]  }
 0x756   :  { %v3167_v49 = vmul.f32 -1.442695, %v1371_v34  ;;  %v3168_v27 = vmul.f32 -1.442695, %v1373_v40  ;;  %v3444_v48 = vld [vmem:[#allocation4 + $0x1e0] ss:$16 sps:$4 sm:$0xff]   ;;  %v1588_v34 = vpack.c.bf16 %v4352_v33, %v4302_v14 }
 0x757   :  { %3602 = vpow2.f32 %v3166_v43  ;;  %v3447_v0 = vld [vmem:[#allocation4 + $0x1e8] ss:$16 sps:$4 sm:$0xff]   ;;  %v4566_v30 = vld [vmem:[#allocation6 + $0x104] ss:$16 sps:$4 sm:$0xff]   ;;  %v4568_v17 = vld [vmem:[#allocation6 + $0x10c] ss:$16 sps:$4 sm:$0xff]  }
 0x758   :  { %3604 = vpow2.f32 %v3167_v49  ;;  %v4570_v14 = vld [vmem:[#allocation6 + $0x100] ss:$16 sps:$4 sm:$0xff]   ;;  %v4572_v33 = vld [vmem:[#allocation6 + $0x108] ss:$16 sps:$4 sm:$0xff]   ;;  %v4578_v35 = vld [vmem:[#allocation6 + $0x124] ss:$16 sps:$4 sm:$0xff]  }
 0x759   :  { %3606 = vpow2.f32 %v3168_v27  ;;  %v4580_v13 = vld [vmem:[#allocation6 + $0x12c] ss:$16 sps:$4 sm:$0xff]   ;;  %v4582_v40 = vld [vmem:[#allocation6 + $0x120] ss:$16 sps:$4 sm:$0xff]   ;;  %v4584_v41 = vld [vmem:[#allocation6 + $0x128] ss:$16 sps:$4 sm:$0xff]  }
 0x75a   :  { %3608 = vtanh.f32 %v1372_v9  ;;  %v3449_v9 = vld [vmem:[#allocation4 + $0x1ec] ss:$16 sps:$4 sm:$0xff]   ;;  %v4590_v42 = vld [vmem:[#allocation6 + $0x144] ss:$16 sps:$4 sm:$0xff]   ;;  %v4594_v46 = vld [vmem:[#allocation6 + $0x140] ss:$16 sps:$4 sm:$0xff]  }
 0x75b   :  { %v4592_v43 = vld [vmem:[#allocation6 + $0x14c] ss:$16 sps:$4 sm:$0xff]   ;;  %v4596_v47 = vld [vmem:[#allocation6 + $0x148] ss:$16 sps:$4 sm:$0xff]   ;;  %v4602_v49 = vld [vmem:[#allocation6 + $0x164] ss:$16 sps:$4 sm:$0xff]  }
 0x75c   :  { %v4604_v27 = vld [vmem:[#allocation6 + $0x16c] ss:$16 sps:$4 sm:$0xff]  }
 0x761   :  { %v3603_v31 = vpop.eup %3602 }
 0x762   :  { %v3605_v37 = vpop.eup %3604  ;;  %v1377_v1 = vadd.f32 1.0, %v3603_v31  ;;  %v4606_v31 = vld [vmem:[#allocation6 + $0x160] ss:$16 sps:$4 sm:$0xff]  }
 0x763   :  { %v1383_v2 = vadd.f32 1.0, %v3605_v37  ;;  %v3607_v5 = vpop.eup %3606  ;;  %v4608_v37 = vld [vmem:[#allocation6 + $0x168] ss:$16 sps:$4 sm:$0xff]  }
 0x764   :  { %3610 = vrcp.f32 %v1377_v1  ;;  %v3609_v6 = vpop.eup %3608  ;;  %v1390_v8 = vadd.f32 1.0, %v3607_v5  ;;  %v4614_v1 = vld [vmem:[#allocation6 + $0x184] ss:$16 sps:$4 sm:$0xff]   ;;  %v4618_v5 = vld [vmem:[#allocation6 + $0x180] ss:$16 sps:$4 sm:$0xff]  }
 0x765   :  { %3612 = vrcp.f32 %v1383_v2  ;;  %v4616_v2 = vld [vmem:[#allocation6 + $0x18c] ss:$16 sps:$4 sm:$0xff]  }
 0x766   :  { %3614 = vrcp.f32 %v1390_v8  ;;  %v4632_v8 = vld [vmem:[#allocation6 + $0x1a8] ss:$16 sps:$4 sm:$0xff]  }
 0x76e   :  { %v3611_v50 = vpop.eup %3610 }
 0x76f   :  { %v3613_v7 = vpop.eup %3612  ;;  %v1394_v51 = vmul.f32 %v3611_v50, %v3609_v6  ;;  %v4620_v6 = vld [vmem:[#allocation6 + $0x188] ss:$16 sps:$4 sm:$0xff]   ;;  %v4626_v50 = vld [vmem:[#allocation6 + $0x1a4] ss:$16 sps:$4 sm:$0xff]  }
 0x770   :  { %v1393_v58 = vmul.f32 %v3613_v7, %v4501_v11  ;;  %v3615_v60 = vpop.eup %3614  ;;  %v3426_v11 = vld [vmem:[#allocation4 + $0x180] ss:$16 sps:$4 sm:$0xff]   ;;  %v4628_v7 = vld [vmem:[#allocation6 + $0x1ac] ss:$16 sps:$4 sm:$0xff]  }
 0x772   :  { %v4545_v59 = vadd.f32 %v1394_v51, %v1393_v58  ;;  %v4630_v51 = vld [vmem:[#allocation6 + $0x1a0] ss:$16 sps:$4 sm:$0xff]   ;;  %v4638_v58 = vld [vmem:[#allocation6 + $0x1c4] ss:$16 sps:$4 sm:$0xff]  }
 0x774   :  { %3616 = vtanh.f32 %v4545_v59 }
 0x77e   :  { %v3617_v62 = vpop.eup %3616 }
 0x77f   :  { %v4548_v63 = vmul.f32 %v3617_v62, %v3615_v60  ;;  %v4640_v60 = vld [vmem:[#allocation6 + $0x1cc] ss:$16 sps:$4 sm:$0xff]   ;;  %v4642_v62 = vld [vmem:[#allocation6 + $0x1c0] ss:$16 sps:$4 sm:$0xff]  }
 0x781   :  { %v1399_v21 = vpack.c.bf16 %v4548_v63, %v4548_v63 }
 0x783   :  { %1433 = vmatmul.mubr.bf16.vlgmr.msra.gmra.mrb[44].mxu0 %v1399_v21  ;;  %1474 = vmatmul.mubr.bf16.vlgmr.msra.gmra.mrb[44].mxu1 %v1399_v21  ;;  %v4652_v21 = vld [vmem:[#allocation6 + $0x1ec] ss:$16 sps:$4 sm:$0xff]  }
 0x784   :  { %1773 = vmatpush1.bf16.msra.mxu0 %v3402_v45  ;;  %1846 = vmatpush1.bf16.msra.mxu1 %v3405_v22  ;;  %v4644_v45 = vld [vmem:[#allocation6 + $0x1c8] ss:$16 sps:$4 sm:$0xff]   ;;  %v4650_v22 = vld [vmem:[#allocation6 + $0x1e4] ss:$16 sps:$4 sm:$0xff]  }
 0x785   :  { %1774 = vmatprep.subr.bf16.mxu0 %v3410_v23  ;;  %1847 = vmatprep.subr.bf16.mxu1 %v3413_v38  ;;  %v4654_v23 = vld [vmem:[#allocation6 + $0x1e0] ss:$16 sps:$4 sm:$0xff]   ;;  %v4656_v38 = vld [vmem:[#allocation6 + $0x1e8] ss:$16 sps:$4 sm:$0xff]  }
 0x786   :  { %1804 = vmatprep.mubr.bf16.mxu0 %v5210_v16  ;;  %1877 = vmatprep.mubr.bf16.mxu1 %v5210_v16 }
 0x788   :  { %1775 = vmatpush1.bf16.msra.mxu0 %v3408_v39  ;;  %1848 = vmatpush1.bf16.msra.mxu1 %v3411_v25 }
 0x789   :  { %1776 = vmatprep.subr.bf16.mxu0 %v3416_v24  ;;  %1849 = vmatprep.subr.bf16.mxu1 %v3419_v26  ;;  %v5228_v24 = vld [vmem:[#allocation28_spill] sm:$0xff] }
 0x78c   :  { %1777 = vmatpush1.bf16.msra.mxu0 %v3414_v15  ;;  %1850 = vmatpush1.bf16.msra.mxu1 %v3417_v20  ;;  %v5229_v15 = vld [vmem:[#allocation29_spill] sm:$0xff] }
 0x78d   :  { %1778 = vmatprep.subr.bf16.mxu0 %v3422_v18  ;;  %1851 = vmatprep.subr.bf16.mxu1 %v3425_v28 }
 0x790   :  { %1779 = vmatpush1.bf16.msra.mxu0 %v3420_v36  ;;  %1852 = vmatpush1.bf16.msra.mxu1 %v3423_v52  ;;  %v5230_v36 = vld [vmem:[#allocation30_spill] sm:$0xff] }
 0x791   :  { %1780 = vmatprep.subr.bf16.mxu0 %v3428_v10  ;;  %1853 = vmatprep.subr.bf16.mxu1 %v3431_v53  ;;  %v5231_v10 = vld [vmem:[#allocation31_spill] sm:$0xff] }
 0x794   :  { %1781 = vmatpush1.bf16.msra.mxu0 %v3426_v11  ;;  %1854 = vmatpush1.bf16.msra.mxu1 %v3429_v54 }
 0x795   :  { %1782 = vmatprep.subr.bf16.mxu0 %v3434_v57  ;;  %1855 = vmatprep.subr.bf16.mxu1 %v3437_v12 }
 0x798   :  { %1783 = vmatpush1.bf16.msra.mxu0 %v3432_v55  ;;  %1856 = vmatpush1.bf16.msra.mxu1 %v3435_v61 }
 0x799   :  { %1784 = vmatprep.subr.bf16.mxu0 %v3440_v4  ;;  %1857 = vmatprep.subr.bf16.mxu1 %v3443_v29 }
 0x79c   :  { %1785 = vmatpush1.bf16.msra.mxu0 %v3438_v44  ;;  %1858 = vmatpush1.bf16.msra.mxu1 %v3441_v56 }
 0x79d   :  { %1786 = vmatprep.subr.bf16.mxu0 %v3446_v32  ;;  %1859 = vmatprep.subr.bf16.mxu1 %v3449_v9 }
 0x7a0   :  { %1787 = vmatpush1.bf16.msra.mxu0 %v3444_v48  ;;  %1860 = vmatpush1.bf16.msra.mxu1 %v3447_v0 }
 0x7a1   :  { %2078 = vmatprep.subr.bf16.mxu0 %v4566_v30  ;;  %2119 = vmatprep.subr.bf16.mxu1 %v4568_v17 }
 0x7a3   :  { %1805 = vmatmul.mubr.bf16.vlgmr.msra.gmra.mrb[48].mxu0 %v1587_v19  ;;  %1878 = vmatmul.mubr.bf16.vlgmr.msra.gmra.mrb[48].mxu1 %v1587_v19 }
 0x7a4   :  { %1814 = vmatprep.mubr.bf16.mxu0 %v5210_v16  ;;  %1887 = vmatprep.mubr.bf16.mxu1 %v5210_v16 }
 0x7a5   :  { %2079 = vmatpush1.bf16.msra.mxu0 %v4570_v14  ;;  %2120 = vmatpush1.bf16.msra.mxu1 %v4572_v33 }
 0x7a6   :  { %2080 = vmatprep.subr.bf16.mxu0 %v4578_v35  ;;  %2121 = vmatprep.subr.bf16.mxu1 %v4580_v13 }
 0x7a9   :  { %2081 = vmatpush1.bf16.msra.mxu0 %v4582_v40  ;;  %2122 = vmatpush1.bf16.msra.mxu1 %v4584_v41 }
 0x7aa   :  { %2082 = vmatprep.subr.bf16.mxu0 %v4590_v42  ;;  %2123 = vmatprep.subr.bf16.mxu1 %v4592_v43 }
 0x7ab   :  { %1815 = vmatmul.mubr.bf16.gmra.mrb[52].mxu0 %v1588_v34  ;;  %1888 = vmatmul.mubr.bf16.gmra.mrb[52].mxu1 %v1588_v34 }
 0x7ac   :  { %1824 = vmatprep.mubr.bf16.mxu0 %v5210_v16  ;;  %1897 = vmatprep.mubr.bf16.mxu1 %v5210_v16 }
 0x7ad   :  { %2083 = vmatpush1.bf16.msra.mxu0 %v4594_v46  ;;  %2124 = vmatpush1.bf16.msra.mxu1 %v4596_v47 }
 0x7ae   :  { %2084 = vmatprep.subr.bf16.mxu0 %v4602_v49  ;;  %2125 = vmatprep.subr.bf16.mxu1 %v4604_v27 }
 0x7b1   :  { %2085 = vmatpush1.bf16.msra.mxu0 %v4606_v31  ;;  %2126 = vmatpush1.bf16.msra.mxu1 %v4608_v37 }
 0x7b2   :  { %2086 = vmatprep.subr.bf16.mxu0 %v4614_v1  ;;  %2127 = vmatprep.subr.bf16.mxu1 %v4616_v2 }
 0x7b3   :  { %1825 = vmatmul.mubr.bf16.gmra.mrb[56].mxu0 %v1589_v3  ;;  %1898 = vmatmul.mubr.bf16.gmra.mrb[56].mxu1 %v1589_v3 }
 0x7b4   :  { %1834 = vmatprep.mubr.bf16.mxu0 %v5210_v16  ;;  %1907 = vmatprep.mubr.bf16.mxu1 %v5210_v16 }
 0x7b5   :  { %2087 = vmatpush1.bf16.msra.mxu0 %v4618_v5  ;;  %2128 = vmatpush1.bf16.msra.mxu1 %v4620_v6 }
 0x7b6   :  { %2088 = vmatprep.subr.bf16.mxu0 %v4626_v50  ;;  %2129 = vmatprep.subr.bf16.mxu1 %v4628_v7 }
 0x7b9   :  { %2089 = vmatpush1.bf16.msra.mxu0 %v4630_v51  ;;  %2130 = vmatpush1.bf16.msra.mxu1 %v4632_v8 }
 0x7ba   :  { %2090 = vmatprep.subr.bf16.mxu0 %v4638_v58  ;;  %2131 = vmatprep.subr.bf16.mxu1 %v4640_v60 }
 0x7bd   :  { %2091 = vmatpush1.bf16.msra.mxu0 %v4642_v62  ;;  %2132 = vmatpush1.bf16.msra.mxu1 %v4644_v45 }
 0x7be   :  { %2092 = vmatprep.subr.bf16.mxu0 %v4650_v22  ;;  %2133 = vmatprep.subr.bf16.mxu1 %v4652_v21 }
 0x7c1   :  { %2093 = vmatpush1.bf16.msra.mxu0 %v4654_v23  ;;  %2134 = vmatpush1.bf16.msra.mxu1 %v4656_v38 }
 0x7c2   :  { %2189 = vmatprep.subr.bf16.mxu0 %v4566_v30  ;;  %2230 = vmatprep.subr.bf16.mxu1 %v4568_v17 }
 0x856   :  { %v1434_v39 = vpop.f32.mrb[44].mxu0  ;;  %v1475_v25 = vpop.f32.mrb[44].mxu1 }
 0x857   :  { %v1482_v26 = vadd.f32 %v1434_v39, %v5228_v24  ;;  %v1484_v20 = vadd.f32 %v1475_v25, %v5229_v15  ;;  %v1436_v18 = vpop.f32.mrb[45].mxu0  ;;  %v1477_v28 = vpop.f32.mrb[45].mxu1 }
 0x858   :  { %v1483_v52 = vadd.f32 %v1436_v18, %v5230_v36  ;;  %v1485_v53 = vadd.f32 %v1477_v28, %v5231_v10  ;;  %v1438_v11 = vpop.f32.mrb[46].mxu0  ;;  %v1479_v54 = vpop.f32.mrb[46].mxu1 }
 0x859   :  { %v3169_v57 = vmul.f32 -1.442695, %v1482_v26  ;;  %v1439_v12 = vpop.f32.mrb[47].mxu0  ;;  %v1480_v55 = vpop.f32.mrb[47].mxu1 }
 0x85a   :  { %v3170_v61 = vmul.f32 -1.442695, %v1483_v52  ;;  %v3171_v4 = vmul.f32 -1.442695, %v1485_v53 }
 0x85b   :  { %3618 = vpow2.f32 %v3169_v57 }
 0x85c   :  { %3620 = vpow2.f32 %v3170_v61 }
 0x85d   :  { %3622 = vpow2.f32 %v3171_v4 }
 0x85e   :  { %3624 = vtanh.f32 %v1484_v20 }
 0x865   :  { %v3619_v29 = vpop.eup %3618 }
 0x866   :  { %v3621_v44 = vpop.eup %3620  ;;  %v1489_v56 = vadd.f32 1.0, %v3619_v29 }
 0x867   :  { %v1495_v32 = vadd.f32 1.0, %v3621_v44  ;;  %v3623_v9 = vpop.eup %3622 }
 0x868   :  { %3626 = vrcp.f32 %v1489_v56  ;;  %v3625_v48 = vpop.eup %3624  ;;  %v1502_v3 = vadd.f32 1.0, %v3623_v9 }
 0x869   :  { %3628 = vrcp.f32 %v1495_v32 }
 0x86a   :  { %3630 = vrcp.f32 %v1502_v3  ;;  %v3172_v3 = vld [vmem:[%s5176_s3 + $0x4] sm:$0xf] }
 0x872   :  { %v3627_v0 = vpop.eup %3626 }
 0x873   :  { %v3629_v19 = vpop.eup %3628  ;;  %v1506_v34 = vmul.f32 %v3627_v0, %v3625_v48 }
 0x874   :  { %v1505_v39 = vmul.f32 %v3629_v19, %v4545_v59  ;;  %v3631_v12 = vpop.eup %3630 }
 0x876   :  { %v4669_v25 = vpop.f32.mrb[48].mxu0  ;;  %v4671_v24 = vpop.f32.mrb[48].mxu1  ;;  %v1507_v26 = vadd.f32 %v1506_v34, %v1505_v39 }
 0x877   :  { %v4673_v15 = vpop.f32.mrb[49].mxu0  ;;  %v4675_v20 = vpop.f32.mrb[49].mxu1 }
 0x878   :  { %v4677_v18 = vpop.f32.mrb[50].mxu0  ;;  %v4679_v28 = vpop.f32.mrb[50].mxu1  ;;  %3632 = vtanh.f32 %v1507_v26 }
 0x879   :  { %v4681_v36 = vpop.f32.mrb[51].mxu0  ;;  %v4683_v52 = vpop.f32.mrb[51].mxu1 }
 0x87e   :  { %v4685_v59 = vpop.f32.mrb[52].mxu0  ;;  %v4687_v10 = vpop.f32.mrb[52].mxu1 }
 0x87f   :  { %5232 = vst [vmem:[#allocation11_spill] sm:$0xff] %v4687_v10  ;;  %v4689_v53 = vpop.f32.mrb[53].mxu0  ;;  %v4691_v11 = vpop.f32.mrb[53].mxu1 }
 0x880   :  { %5233 = vst [vmem:[#allocation12_spill] sm:$0xff] %v4689_v53  ;;  %5234 = vst [vmem:[#allocation13_spill] sm:$0xff] %v4691_v11  ;;  %v4693_v54 = vpop.f32.mrb[54].mxu0  ;;  %v4695_v57 = vpop.f32.mrb[54].mxu1 }
 0x881   :  { %5235 = vst [vmem:[#allocation14_spill] sm:$0xff] %v4693_v54  ;;  %5236 = vst [vmem:[#allocation15_spill] sm:$0xff] %v4695_v57  ;;  %v4697_v55 = vpop.f32.mrb[55].mxu0  ;;  %v4699_v61 = vpop.f32.mrb[55].mxu1 }
 0x882   :  { %5237 = vst [vmem:[#allocation16_spill] sm:$0xff] %v4697_v55  ;;  %5238 = vst [vmem:[#allocation17_spill] sm:$0xff] %v4699_v61  ;;  %v3633_v4 = vpop.eup %3632 }
 0x883   :  { %v1509_v29 = vmul.f32 %v3633_v4, %v3631_v12 }
 0x885   :  { %v1590_v44 = vpack.c.bf16 %v1509_v29, %v4548_v63 }
 0x886   :  { %v4702_v56 = vpop.f32.mrb[56].mxu0  ;;  %v4704_v32 = vpop.f32.mrb[56].mxu1 }
 0x887   :  { %5239 = vst [vmem:[#allocation18_spill] sm:$0xff] %v4702_v56  ;;  %5240 = vst [vmem:[#allocation19_spill] sm:$0xff] %v4704_v32  ;;  %v4706_v9 = vpop.f32.mrb[57].mxu0  ;;  %v4708_v48 = vpop.f32.mrb[57].mxu1  ;;  %1835 = vmatmul.mubr.bf16.gmra.mrb[60].mxu0 %v1590_v44  ;;  %1908 = vmatmul.mubr.bf16.gmra.mrb[60].mxu1 %v1590_v44 }
 0x888   :  { %5241 = vst [vmem:[#allocation20_spill] sm:$0xff] %v4706_v9  ;;  %5242 = vst [vmem:[#allocation21_spill] sm:$0xff] %v4708_v48  ;;  %v4710_v0 = vpop.f32.mrb[58].mxu0  ;;  %v4712_v19 = vpop.f32.mrb[58].mxu1  ;;  %2110 = vmatprep.mubr.bf16.mxu0 %v5210_v16  ;;  %2151 = vmatprep.mubr.bf16.mxu1 %v5210_v16 }
 0x889   :  { %5243 = vst [vmem:[#allocation22_spill] sm:$0xff] %v4710_v0  ;;  %5244 = vst [vmem:[#allocation23_spill] sm:$0xff] %v4712_v19  ;;  %v4716_v34 = vpop.f32.mrb[59].mxu0  ;;  %v4718_v63 = vpop.f32.mrb[59].mxu1 }
 0x88a   :  { %5245 = vst [vmem:[#allocation24_spill] sm:$0xff] %v4716_v34  ;;  %5246 = vst [vmem:[#allocation25_spill] sm:$0xff] %v4718_v63  ;;  %v5253_v63 = vld [vmem:[#allocation10_spill] sm:$0xff] }
 0x88b   :  { %v5254_v34 = vsub.s32 0, %v5253_v63  ;;  %v5255_v0 = vsub.s32 2, %v5253_v63 }
 0x88d   :  { %v4773_v19 = vrot.slane %v3172_v3, %v5254_v34  ;;  %v4777_v48 = vrot.slane %v3172_v3, %v5255_v0 }
 0x88f   :  { %2111 = vmatmul.mubr.bf16.vlgmr.msra.gmra.mrb[64].mxu0 %v5210_v16  ;;  %2152 = vmatmul.mubr.bf16.vlgmr.msra.gmra.mrb[64].mxu1 %v5210_v16  ;;  %v1807_v34 = vadd.f32 %v4669_v25, %v4773_v19 }
 0x890   :  { %2190 = vmatpush1.bf16.msra.mxu0 %v4570_v14  ;;  %2231 = vmatpush1.bf16.msra.mxu1 %v4572_v33 }
 0x891   :  { %2191 = vmatprep.subr.bf16.mxu0 %v4578_v35  ;;  %2232 = vmatprep.subr.bf16.mxu1 %v4580_v13 }
 0x892   :  { %2221 = vmatprep.mubr.bf16.mxu0 %v5210_v16  ;;  %2262 = vmatprep.mubr.bf16.mxu1 %v5210_v16 }
 0x894   :  { %2192 = vmatpush1.bf16.msra.mxu0 %v4582_v40  ;;  %2233 = vmatpush1.bf16.msra.mxu1 %v4584_v41 }
 0x895   :  { %2193 = vmatprep.subr.bf16.mxu0 %v4590_v42  ;;  %2234 = vmatprep.subr.bf16.mxu1 %v4592_v43 }
 0x898   :  { %2194 = vmatpush1.bf16.msra.mxu0 %v4594_v46  ;;  %2235 = vmatpush1.bf16.msra.mxu1 %v4596_v47 }
 0x899   :  { %2195 = vmatprep.subr.bf16.mxu0 %v4602_v49  ;;  %2236 = vmatprep.subr.bf16.mxu1 %v4604_v27 }
 0x89c   :  { %2196 = vmatpush1.bf16.msra.mxu0 %v4606_v31  ;;  %2237 = vmatpush1.bf16.msra.mxu1 %v4608_v37 }
 0x89d   :  { %2197 = vmatprep.subr.bf16.mxu0 %v4614_v1  ;;  %2238 = vmatprep.subr.bf16.mxu1 %v4616_v2 }
 0x8a0   :  { %2198 = vmatpush1.bf16.msra.mxu0 %v4618_v5  ;;  %2239 = vmatpush1.bf16.msra.mxu1 %v4620_v6 }
 0x8a1   :  { %2199 = vmatprep.subr.bf16.mxu0 %v4626_v50  ;;  %2240 = vmatprep.subr.bf16.mxu1 %v4628_v7 }
 0x8a4   :  { %2200 = vmatpush1.bf16.msra.mxu0 %v4630_v51  ;;  %2241 = vmatpush1.bf16.msra.mxu1 %v4632_v8 }
 0x8a5   :  { %2201 = vmatprep.subr.bf16.mxu0 %v4638_v58  ;;  %2242 = vmatprep.subr.bf16.mxu1 %v4640_v60 }
 0x8a8   :  { %2202 = vmatpush1.bf16.msra.mxu0 %v4642_v62  ;;  %2243 = vmatpush1.bf16.msra.mxu1 %v4644_v45 }
 0x8a9   :  { %2203 = vmatprep.subr.bf16.mxu0 %v4650_v22  ;;  %2244 = vmatprep.subr.bf16.mxu1 %v4652_v21 }
 0x8ac   :  { %2204 = vmatpush1.bf16.msra.mxu0 %v4654_v23  ;;  %2245 = vmatpush1.bf16.msra.mxu1 %v4656_v38 }
 0x8ad   :  { %2300 = vmatprep.subr.bf16.mxu0 %v4566_v30  ;;  %2341 = vmatprep.subr.bf16.mxu1 %v4568_v17 }
 0x95a   :  { %v4759_v39 = vpop.f32.mrb[60].mxu0  ;;  %v4761_v26 = vpop.f32.mrb[60].mxu1 }
 0x95b   :  { %5247 = vst [vmem:[#allocation26_spill] sm:$0xff] %v4759_v39  ;;  %5248 = vst [vmem:[#allocation27_spill] sm:$0xff] %v4761_v26  ;;  %v4763_v12 = vpop.f32.mrb[61].mxu0  ;;  %v4765_v4 = vpop.f32.mrb[61].mxu1 }
 0x95c   :  { %5249 = vst [vmem:[#allocation28_spill] sm:$0xff] %v4763_v12  ;;  %5250 = vst [vmem:[#allocation29_spill] sm:$0xff] %v4765_v4  ;;  %v4767_v29 = vpop.f32.mrb[62].mxu0  ;;  %v4769_v44 = vpop.f32.mrb[62].mxu1  ;;  %v5258_v12 = vsub.s32 1, %v5253_v63 }
 0x95d   :  { %5251 = vst [vmem:[#allocation30_spill] sm:$0xff] %v4767_v29  ;;  %5252 = vst [vmem:[#allocation31_spill] sm:$0xff] %v4769_v44  ;;  %v4779_v9 = vpop.f32.mrb[63].mxu0  ;;  %v4781_v39 = vpop.f32.mrb[63].mxu1  ;;  %v5259_v29 = vsub.s32 3, %v5253_v63  ;;  %v1880_v44 = vadd.f32 %v4671_v24, %v4777_v48 }
 0x95e   :  { %5256 = vst [vmem:[#allocation10_spill] sm:$0xff] %v4779_v9  ;;  %5257 = vst [vmem:[#allocation32_spill] sm:$0xff] %v4781_v39  ;;  %v4785_v26 = vrot.slane %v3172_v3, %v5258_v12 }
 0x95f   :  { %v4789_v4 = vrot.slane %v3172_v3, %v5259_v29 }
 0x960   :  { %v1809_v0 = vadd.f32 %v4673_v15, %v4785_v26 }
 0x961   :  { %v1882_v39 = vadd.f32 %v4675_v20, %v4789_v4 }
 0x962   :  { %v2112_v9 = vpop.f32.mrb[64].mxu0  ;;  %v2153_v32 = vpop.f32.mrb[64].mxu1 }
 0x963   :  { %v2160_v12 = vadd.f32 %v2112_v9, %v1807_v34  ;;  %v2162_v56 = vadd.f32 %v2153_v32, %v1880_v44  ;;  %v2114_v61 = vpop.f32.mrb[65].mxu0  ;;  %v2155_v63 = vpop.f32.mrb[65].mxu1 }
 0x964   :  { %v2161_v3 = vadd.f32 %v2114_v61, %v1809_v0  ;;  %v2163_v29 = vadd.f32 %v2155_v63, %v1882_v39  ;;  %v2116_v55 = vpop.f32.mrb[66].mxu0  ;;  %v2157_v57 = vpop.f32.mrb[66].mxu1  ;;  %v1813_v63 = vadd.f32 %v4681_v36, %v4785_v26 }
 0x965   :  { %v3237_v25 = vmul.f32 -1.442695, %v2160_v12  ;;  %v2117_v54 = vpop.f32.mrb[67].mxu0  ;;  %v2158_v11 = vpop.f32.mrb[67].mxu1 }
 0x966   :  { %v3238_v24 = vmul.f32 -1.442695, %v2161_v3  ;;  %v3239_v15 = vmul.f32 -1.442695, %v2163_v29  ;;  %v1886_v3 = vadd.f32 %v4683_v52, %v4789_v4 }
 0x967   :  { %3634 = vpow2.f32 %v3237_v25 }
 0x968   :  { %3636 = vpow2.f32 %v3238_v24 }
 0x969   :  { %3638 = vpow2.f32 %v3239_v15 }
 0x96a   :  { %3640 = vtanh.f32 %v2162_v56  ;;  %v1884_v56 = vadd.f32 %v4679_v28, %v4777_v48 }
 0x971   :  { %v3635_v53 = vpop.eup %3634 }
 0x972   :  { %v3637_v10 = vpop.eup %3636  ;;  %v2167_v20 = vadd.f32 1.0, %v3635_v53 }
 0x973   :  { %v2173_v9 = vadd.f32 1.0, %v3637_v10  ;;  %v3639_v32 = vpop.eup %3638  ;;  %v1811_v10 = vadd.f32 %v4677_v18, %v4773_v19 }
 0x974   :  { %3642 = vrcp.f32 %v2167_v20  ;;  %v3641_v61 = vpop.eup %3640  ;;  %v2180_v44 = vadd.f32 1.0, %v3639_v32 }
 0x975   :  { %3644 = vrcp.f32 %v2173_v9 }
 0x976   :  { %3646 = vrcp.f32 %v2180_v44 }
 0x97e   :  { %v3643_v39 = vpop.eup %3642 }
 0x97f   :  { %v3645_v55 = vpop.eup %3644  ;;  %v2184_v57 = vmul.f32 %v3643_v39, %v3641_v61 }
 0x980   :  { %v2183_v54 = vmul.f32 0.0, %v3645_v55  ;;  %v3647_v34 = vpop.eup %3646 }
 0x982   :  { %v4799_v11 = vadd.f32 %v2184_v57, %v2183_v54 }
 0x984   :  { %3648 = vtanh.f32 %v4799_v11 }
 0x98e   :  { %v3649_v0 = vpop.eup %3648 }
 0x98f   :  { %v2187_v53 = vmul.f32 %v3649_v0, %v3647_v34 }
 0x991   :  { %v2188_v12 = vpack.c.bf16 %v2187_v53, %v2187_v53 }
 0x993   :  { %2222 = vmatmul.mubr.bf16.vlgmr.msra.gmra.mrb[68].mxu0 %v2188_v12  ;;  %2263 = vmatmul.mubr.bf16.vlgmr.msra.gmra.mrb[68].mxu1 %v2188_v12 }
 0x994   :  { %2301 = vmatpush1.bf16.msra.mxu0 %v4570_v14  ;;  %2342 = vmatpush1.bf16.msra.mxu1 %v4572_v33 }
 0x995   :  { %2302 = vmatprep.subr.bf16.mxu0 %v4578_v35  ;;  %2343 = vmatprep.subr.bf16.mxu1 %v4580_v13 }
 0x996   :  { %2332 = vmatprep.mubr.bf16.mxu0 %v5210_v16  ;;  %2373 = vmatprep.mubr.bf16.mxu1 %v5210_v16 }
 0x998   :  { %2303 = vmatpush1.bf16.msra.mxu0 %v4582_v40  ;;  %2344 = vmatpush1.bf16.msra.mxu1 %v4584_v41 }
 0x999   :  { %2304 = vmatprep.subr.bf16.mxu0 %v4590_v42  ;;  %2345 = vmatprep.subr.bf16.mxu1 %v4592_v43 }
 0x99c   :  { %2305 = vmatpush1.bf16.msra.mxu0 %v4594_v46  ;;  %2346 = vmatpush1.bf16.msra.mxu1 %v4596_v47 }
 0x99d   :  { %2306 = vmatprep.subr.bf16.mxu0 %v4602_v49  ;;  %2347 = vmatprep.subr.bf16.mxu1 %v4604_v27 }
 0x9a0   :  { %2307 = vmatpush1.bf16.msra.mxu0 %v4606_v31  ;;  %2348 = vmatpush1.bf16.msra.mxu1 %v4608_v37 }
 0x9a1   :  { %2308 = vmatprep.subr.bf16.mxu0 %v4614_v1  ;;  %2349 = vmatprep.subr.bf16.mxu1 %v4616_v2 }
 0x9a4   :  { %2309 = vmatpush1.bf16.msra.mxu0 %v4618_v5  ;;  %2350 = vmatpush1.bf16.msra.mxu1 %v4620_v6 }
 0x9a5   :  { %2310 = vmatprep.subr.bf16.mxu0 %v4626_v50  ;;  %2351 = vmatprep.subr.bf16.mxu1 %v4628_v7 }
 0x9a8   :  { %2311 = vmatpush1.bf16.msra.mxu0 %v4630_v51  ;;  %2352 = vmatpush1.bf16.msra.mxu1 %v4632_v8 }
 0x9a9   :  { %2312 = vmatprep.subr.bf16.mxu0 %v4638_v58  ;;  %2353 = vmatprep.subr.bf16.mxu1 %v4640_v60 }
 0x9ac   :  { %2313 = vmatpush1.bf16.msra.mxu0 %v4642_v62  ;;  %2354 = vmatpush1.bf16.msra.mxu1 %v4644_v45 }
 0x9ad   :  { %2314 = vmatprep.subr.bf16.mxu0 %v4650_v22  ;;  %2355 = vmatprep.subr.bf16.mxu1 %v4652_v21 }
 0x9b0   :  { %2315 = vmatpush1.bf16.msra.mxu0 %v4654_v23  ;;  %2356 = vmatpush1.bf16.msra.mxu1 %v4656_v38 }
 0x9b1   :  { %2411 = vmatprep.subr.bf16.mxu0 %v4566_v30  ;;  %2452 = vmatprep.subr.bf16.mxu1 %v4568_v17 }
 0xa66   :  { %v2223_v29 = vpop.f32.mrb[68].mxu0  ;;  %v2264_v25 = vpop.f32.mrb[68].mxu1 }
 0xa67   :  { %v2271_v24 = vadd.f32 %v2223_v29, %v1811_v10  ;;  %v2273_v15 = vadd.f32 %v2264_v25, %v1884_v56  ;;  %v2225_v20 = vpop.f32.mrb[69].mxu0  ;;  %v2266_v9 = vpop.f32.mrb[69].mxu1 }
 0xa68   :  { %v2272_v32 = vadd.f32 %v2225_v20, %v1813_v63  ;;  %v2274_v61 = vadd.f32 %v2266_v9, %v1886_v3  ;;  %v2227_v39 = vpop.f32.mrb[70].mxu0  ;;  %v2268_v55 = vpop.f32.mrb[70].mxu1 }
 0xa69   :  { %v3240_v18 = vmul.f32 -1.442695, %v2271_v24  ;;  %v2228_v57 = vpop.f32.mrb[71].mxu0  ;;  %v2269_v44 = vpop.f32.mrb[71].mxu1  ;;  %v5261_v39 = vld [vmem:[#allocation12_spill] sm:$0xff] }
 0xa6a   :  { %v3241_v28 = vmul.f32 -1.442695, %v2272_v32  ;;  %v3242_v36 = vmul.f32 -1.442695, %v2274_v61  ;;  %v5260_v32 = vld [vmem:[#allocation11_spill] sm:$0xff]  ;;  %v1819_v55 = vadd.f32 %v5261_v39, %v4785_v26 }
 0xa6b   :  { %3650 = vpow2.f32 %v3240_v18  ;;  %v1890_v61 = vadd.f32 %v5260_v32, %v4777_v48  ;;  %v5262_v18 = vld [vmem:[#allocation13_spill] sm:$0xff] }
 0xa6c   :  { %3652 = vpow2.f32 %v3241_v28  ;;  %v1892_v57 = vadd.f32 %v5262_v18, %v4789_v4 }
 0xa6d   :  { %3654 = vpow2.f32 %v3242_v36 }
 0xa6e   :  { %3656 = vtanh.f32 %v2273_v15 }
 0xa75   :  { %v3651_v54 = vpop.eup %3650 }
 0xa76   :  { %v3653_v34 = vpop.eup %3652  ;;  %v2278_v52 = vadd.f32 1.0, %v3651_v54 }
 0xa77   :  { %v2284_v0 = vadd.f32 1.0, %v3653_v34  ;;  %v3655_v53 = vpop.eup %3654 }
 0xa78   :  { %3658 = vrcp.f32 %v2278_v52  ;;  %v3657_v12 = vpop.eup %3656  ;;  %v2291_v3 = vadd.f32 1.0, %v3655_v53 }
 0xa79   :  { %3660 = vrcp.f32 %v2284_v0 }
 0xa7a   :  { %3662 = vrcp.f32 %v2291_v3 }
 0xa82   :  { %v3659_v10 = vpop.eup %3658 }
 0xa83   :  { %v3661_v56 = vpop.eup %3660  ;;  %v2295_v63 = vmul.f32 %v3659_v10, %v3657_v12 }
 0xa84   :  { %v2294_v29 = vmul.f32 %v3661_v56, %v4799_v11  ;;  %v3663_v24 = vpop.eup %3662  ;;  %v1817_v11 = vadd.f32 %v4685_v59, %v4773_v19 }
 0xa86   :  { %v4845_v25 = vadd.f32 %v2295_v63, %v2294_v29 }
 0xa88   :  { %3664 = vtanh.f32 %v4845_v25 }
 0xa92   :  { %v3665_v20 = vpop.eup %3664 }
 0xa93   :  { %v2298_v9 = vmul.f32 %v3665_v20, %v3663_v24 }
 0xa95   :  { %v2299_v15 = vpack.c.bf16 %v2298_v9, %v2298_v9 }
 0xa97   :  { %2333 = vmatmul.mubr.bf16.vlgmr.msra.gmra.mrb[72].mxu0 %v2299_v15  ;;  %2374 = vmatmul.mubr.bf16.vlgmr.msra.gmra.mrb[72].mxu1 %v2299_v15 }
 0xa98   :  { %2412 = vmatpush1.bf16.msra.mxu0 %v4570_v14  ;;  %2453 = vmatpush1.bf16.msra.mxu1 %v4572_v33 }
 0xa99   :  { %2413 = vmatprep.subr.bf16.mxu0 %v4578_v35  ;;  %2454 = vmatprep.subr.bf16.mxu1 %v4580_v13 }
 0xa9a   :  { %2443 = vmatprep.mubr.bf16.mxu0 %v5210_v16  ;;  %2484 = vmatprep.mubr.bf16.mxu1 %v5210_v16 }
 0xa9c   :  { %2414 = vmatpush1.bf16.msra.mxu0 %v4582_v40  ;;  %2455 = vmatpush1.bf16.msra.mxu1 %v4584_v41 }
 0xa9d   :  { %2415 = vmatprep.subr.bf16.mxu0 %v4590_v42  ;;  %2456 = vmatprep.subr.bf16.mxu1 %v4592_v43 }
 0xaa0   :  { %2416 = vmatpush1.bf16.msra.mxu0 %v4594_v46  ;;  %2457 = vmatpush1.bf16.msra.mxu1 %v4596_v47 }
 0xaa1   :  { %2417 = vmatprep.subr.bf16.mxu0 %v4602_v49  ;;  %2458 = vmatprep.subr.bf16.mxu1 %v4604_v27 }
 0xaa4   :  { %2418 = vmatpush1.bf16.msra.mxu0 %v4606_v31  ;;  %2459 = vmatpush1.bf16.msra.mxu1 %v4608_v37 }
 0xaa5   :  { %2419 = vmatprep.subr.bf16.mxu0 %v4614_v1  ;;  %2460 = vmatprep.subr.bf16.mxu1 %v4616_v2 }
 0xaa8   :  { %2420 = vmatpush1.bf16.msra.mxu0 %v4618_v5  ;;  %2461 = vmatpush1.bf16.msra.mxu1 %v4620_v6 }
 0xaa9   :  { %2421 = vmatprep.subr.bf16.mxu0 %v4626_v50  ;;  %2462 = vmatprep.subr.bf16.mxu1 %v4628_v7 }
 0xaac   :  { %2422 = vmatpush1.bf16.msra.mxu0 %v4630_v51  ;;  %2463 = vmatpush1.bf16.msra.mxu1 %v4632_v8 }
 0xaad   :  { %2423 = vmatprep.subr.bf16.mxu0 %v4638_v58  ;;  %2464 = vmatprep.subr.bf16.mxu1 %v4640_v60 }
 0xab0   :  { %2424 = vmatpush1.bf16.msra.mxu0 %v4642_v62  ;;  %2465 = vmatpush1.bf16.msra.mxu1 %v4644_v45 }
 0xab1   :  { %2425 = vmatprep.subr.bf16.mxu0 %v4650_v22  ;;  %2466 = vmatprep.subr.bf16.mxu1 %v4652_v21 }
 0xab4   :  { %2426 = vmatpush1.bf16.msra.mxu0 %v4654_v23  ;;  %2467 = vmatpush1.bf16.msra.mxu1 %v4656_v38 }
 0xab5   :  { %2522 = vmatprep.subr.bf16.mxu0 %v4566_v30  ;;  %2563 = vmatprep.subr.bf16.mxu1 %v4568_v17 }
 0xb6a   :  { %v2334_v44 = vpop.f32.mrb[72].mxu0  ;;  %v2375_v28 = vpop.f32.mrb[72].mxu1 }
 0xb6b   :  { %v2382_v36 = vadd.f32 %v2334_v44, %v1817_v11  ;;  %v2384_v54 = vadd.f32 %v2375_v28, %v1890_v61  ;;  %v2336_v34 = vpop.f32.mrb[73].mxu0  ;;  %v2377_v52 = vpop.f32.mrb[73].mxu1 }
 0xb6c   :  { %v2383_v0 = vadd.f32 %v2336_v34, %v1819_v55  ;;  %v2385_v53 = vadd.f32 %v2377_v52, %v1892_v57  ;;  %v2338_v12 = vpop.f32.mrb[74].mxu0  ;;  %v2379_v10 = vpop.f32.mrb[74].mxu1 }
 0xb6d   :  { %v3243_v59 = vmul.f32 -1.442695, %v2382_v36  ;;  %v2339_v56 = vpop.f32.mrb[75].mxu0  ;;  %v2380_v63 = vpop.f32.mrb[75].mxu1  ;;  %v5265_v12 = vld [vmem:[#allocation16_spill] sm:$0xff] }
 0xb6e   :  { %v3244_v3 = vmul.f32 -1.442695, %v2383_v0  ;;  %v3245_v29 = vmul.f32 -1.442695, %v2385_v53  ;;  %v5264_v0 = vld [vmem:[#allocation15_spill] sm:$0xff]  ;;  %v1823_v10 = vadd.f32 %v5265_v12, %v4785_v26 }
 0xb6f   :  { %3666 = vpow2.f32 %v3243_v59  ;;  %v1894_v53 = vadd.f32 %v5264_v0, %v4777_v48  ;;  %v5266_v59 = vld [vmem:[#allocation17_spill] sm:$0xff] }
 0xb70   :  { %3668 = vpow2.f32 %v3244_v3  ;;  %v1896_v56 = vadd.f32 %v5266_v59, %v4789_v4 }
 0xb71   :  { %3670 = vpow2.f32 %v3245_v29 }
 0xb72   :  { %3672 = vtanh.f32 %v2384_v54 }
 0xb79   :  { %v3667_v24 = vpop.eup %3666 }
 0xb7a   :  { %v3669_v20 = vpop.eup %3668  ;;  %v2389_v9 = vadd.f32 1.0, %v3667_v24 }
 0xb7b   :  { %v2395_v15 = vadd.f32 1.0, %v3669_v20  ;;  %v3671_v11 = vpop.eup %3670 }
 0xb7c   :  { %3674 = vrcp.f32 %v2389_v9  ;;  %v3673_v32 = vpop.eup %3672  ;;  %v2402_v18 = vadd.f32 1.0, %v3671_v11 }
 0xb7d   :  { %3676 = vrcp.f32 %v2395_v15 }
 0xb7e   :  { %3678 = vrcp.f32 %v2402_v18 }
 0xb86   :  { %v3675_v61 = vpop.eup %3674 }
 0xb87   :  { %v3677_v39 = vpop.eup %3676  ;;  %v2406_v55 = vmul.f32 %v3675_v61, %v3673_v32 }
 0xb88   :  { %v2405_v57 = vmul.f32 %v3677_v39, %v4845_v25  ;;  %v3679_v28 = vpop.eup %3678  ;;  %v5263_v25 = vld [vmem:[#allocation14_spill] sm:$0xff] }
 0xb89   :  { %v1821_v52 = vadd.f32 %v5263_v25, %v4773_v19 }
 0xb8a   :  { %v4891_v44 = vadd.f32 %v2406_v55, %v2405_v57 }
 0xb8c   :  { %3680 = vtanh.f32 %v4891_v44 }
 0xb96   :  { %v3681_v36 = vpop.eup %3680 }
 0xb97   :  { %v2409_v34 = vmul.f32 %v3681_v36, %v3679_v28 }
 0xb99   :  { %v2410_v54 = vpack.c.bf16 %v2409_v34, %v2409_v34 }
 0xb9b   :  { %2444 = vmatmul.mubr.bf16.vlgmr.msra.gmra.mrb[76].mxu0 %v2410_v54  ;;  %2485 = vmatmul.mubr.bf16.vlgmr.msra.gmra.mrb[76].mxu1 %v2410_v54 }
 0xb9c   :  { %2523 = vmatpush1.bf16.msra.mxu0 %v4570_v14  ;;  %2564 = vmatpush1.bf16.msra.mxu1 %v4572_v33 }
 0xb9d   :  { %2524 = vmatprep.subr.bf16.mxu0 %v4578_v35  ;;  %2565 = vmatprep.subr.bf16.mxu1 %v4580_v13 }
 0xb9e   :  { %2554 = vmatprep.mubr.bf16.mxu0 %v5210_v16  ;;  %2595 = vmatprep.mubr.bf16.mxu1 %v5210_v16 }
 0xba0   :  { %2525 = vmatpush1.bf16.msra.mxu0 %v4582_v40  ;;  %2566 = vmatpush1.bf16.msra.mxu1 %v4584_v41 }
 0xba1   :  { %2526 = vmatprep.subr.bf16.mxu0 %v4590_v42  ;;  %2567 = vmatprep.subr.bf16.mxu1 %v4592_v43 }
 0xba4   :  { %2527 = vmatpush1.bf16.msra.mxu0 %v4594_v46  ;;  %2568 = vmatpush1.bf16.msra.mxu1 %v4596_v47 }
 0xba5   :  { %2528 = vmatprep.subr.bf16.mxu0 %v4602_v49  ;;  %2569 = vmatprep.subr.bf16.mxu1 %v4604_v27 }
 0xba8   :  { %2529 = vmatpush1.bf16.msra.mxu0 %v4606_v31  ;;  %2570 = vmatpush1.bf16.msra.mxu1 %v4608_v37 }
 0xba9   :  { %2530 = vmatprep.subr.bf16.mxu0 %v4614_v1  ;;  %2571 = vmatprep.subr.bf16.mxu1 %v4616_v2 }
 0xbac   :  { %2531 = vmatpush1.bf16.msra.mxu0 %v4618_v5  ;;  %2572 = vmatpush1.bf16.msra.mxu1 %v4620_v6 }
 0xbad   :  { %2532 = vmatprep.subr.bf16.mxu0 %v4626_v50  ;;  %2573 = vmatprep.subr.bf16.mxu1 %v4628_v7 }
 0xbb0   :  { %2533 = vmatpush1.bf16.msra.mxu0 %v4630_v51  ;;  %2574 = vmatpush1.bf16.msra.mxu1 %v4632_v8 }
 0xbb1   :  { %2534 = vmatprep.subr.bf16.mxu0 %v4638_v58  ;;  %2575 = vmatprep.subr.bf16.mxu1 %v4640_v60 }
 0xbb4   :  { %2535 = vmatpush1.bf16.msra.mxu0 %v4642_v62  ;;  %2576 = vmatpush1.bf16.msra.mxu1 %v4644_v45 }
 0xbb5   :  { %2536 = vmatprep.subr.bf16.mxu0 %v4650_v22  ;;  %2577 = vmatprep.subr.bf16.mxu1 %v4652_v21 }
 0xbb8   :  { %2537 = vmatpush1.bf16.msra.mxu0 %v4654_v23  ;;  %2578 = vmatpush1.bf16.msra.mxu1 %v4656_v38 }
 0xbb9   :  { %2633 = vmatprep.subr.bf16.mxu0 %v4566_v30  ;;  %2674 = vmatprep.subr.bf16.mxu1 %v4568_v17 }
 0xc6e   :  { %v2445_v63 = vpop.f32.mrb[76].mxu0  ;;  %v2486_v3 = vpop.f32.mrb[76].mxu1 }
 0xc6f   :  { %v2493_v29 = vadd.f32 %v2445_v63, %v1821_v52  ;;  %v2495_v24 = vadd.f32 %v2486_v3, %v1894_v53  ;;  %v2447_v20 = vpop.f32.mrb[77].mxu0  ;;  %v2488_v9 = vpop.f32.mrb[77].mxu1 }
 0xc70   :  { %v2494_v15 = vadd.f32 %v2447_v20, %v1823_v10  ;;  %v2496_v11 = vadd.f32 %v2488_v9, %v1896_v56  ;;  %v2449_v32 = vpop.f32.mrb[78].mxu0  ;;  %v2490_v61 = vpop.f32.mrb[78].mxu1 }
 0xc71   :  { %v3246_v39 = vmul.f32 -1.442695, %v2493_v29  ;;  %v2450_v55 = vpop.f32.mrb[79].mxu0  ;;  %v2491_v18 = vpop.f32.mrb[79].mxu1 }
 0xc72   :  { %v3247_v57 = vmul.f32 -1.442695, %v2494_v15  ;;  %v3248_v28 = vmul.f32 -1.442695, %v2496_v11  ;;  %v4986_v55 = vld [vmem:[#allocation6 + $0x100] ss:$16 sps:$4 sm:$0xff]  }
 0xc73   :  { %3682 = vpow2.f32 %v3246_v39  ;;  %v4989_v18 = vld [vmem:[#allocation6 + $0x108] ss:$16 sps:$4 sm:$0xff]  }
 0xc74   :  { %3684 = vpow2.f32 %v3247_v57  ;;  %v4992_v57 = vld [vmem:[#allocation6 + $0x124] ss:$16 sps:$4 sm:$0xff]  }
 0xc75   :  { %3686 = vpow2.f32 %v3248_v28  ;;  %v4995_v28 = vld [vmem:[#allocation6 + $0x12c] ss:$16 sps:$4 sm:$0xff]  }
 0xc76   :  { %3688 = vtanh.f32 %v2495_v24 }
 0xc7d   :  { %v3683_v36 = vpop.eup %3682 }
 0xc7e   :  { %v3685_v34 = vpop.eup %3684  ;;  %v2500_v54 = vadd.f32 1.0, %v3683_v36  ;;  %v5000_v36 = vld [vmem:[#allocation6 + $0x120] ss:$16 sps:$4 sm:$0xff]  }
 0xc7f   :  { %v2506_v25 = vadd.f32 1.0, %v3685_v34  ;;  %v3687_v52 = vpop.eup %3686  ;;  %v5003_v34 = vld [vmem:[#allocation6 + $0x128] ss:$16 sps:$4 sm:$0xff]  }
 0xc80   :  { %3690 = vrcp.f32 %v2500_v54  ;;  %v3689_v0 = vpop.eup %3688  ;;  %v2513_v59 = vadd.f32 1.0, %v3687_v52  ;;  %v5006_v54 = vld [vmem:[#allocation6 + $0x144] ss:$16 sps:$4 sm:$0xff]   ;;  %v5012_v52 = vld [vmem:[#allocation6 + $0x140] ss:$16 sps:$4 sm:$0xff]  }
 0xc81   :  { %3692 = vrcp.f32 %v2506_v25  ;;  %v5009_v25 = vld [vmem:[#allocation6 + $0x14c] ss:$16 sps:$4 sm:$0xff]  }
 0xc82   :  { %3694 = vrcp.f32 %v2513_v59  ;;  %v5027_v59 = vld [vmem:[#allocation6 + $0x168] ss:$16 sps:$4 sm:$0xff]  }
 0xc8a   :  { %v3691_v53 = vpop.eup %3690 }
 0xc8b   :  { %v3693_v12 = vpop.eup %3692  ;;  %v2517_v10 = vmul.f32 %v3691_v53, %v3689_v0  ;;  %v5015_v0 = vld [vmem:[#allocation6 + $0x148] ss:$16 sps:$4 sm:$0xff]   ;;  %v5018_v53 = vld [vmem:[#allocation6 + $0x164] ss:$16 sps:$4 sm:$0xff]  }
 0xc8c   :  { %v2516_v56 = vmul.f32 %v3693_v12, %v4891_v44  ;;  %v3695_v3 = vpop.eup %3694  ;;  %v5021_v12 = vld [vmem:[#allocation6 + $0x16c] ss:$16 sps:$4 sm:$0xff]  }
 0xc8e   :  { %v4937_v63 = vadd.f32 %v2517_v10, %v2516_v56  ;;  %v5024_v10 = vld [vmem:[#allocation6 + $0x160] ss:$16 sps:$4 sm:$0xff]   ;;  %v5030_v56 = vld [vmem:[#allocation6 + $0x184] ss:$16 sps:$4 sm:$0xff]  }
 0xc90   :  { %3696 = vtanh.f32 %v4937_v63 }
 0xc9a   :  { %v3697_v29 = vpop.eup %3696 }
 0xc9b   :  { %v2520_v20 = vmul.f32 %v3697_v29, %v3695_v3  ;;  %v5036_v3 = vld [vmem:[#allocation6 + $0x180] ss:$16 sps:$4 sm:$0xff]   ;;  %v5039_v29 = vld [vmem:[#allocation6 + $0x188] ss:$16 sps:$4 sm:$0xff]  }
 0xc9d   :  { %v2521_v24 = vpack.c.bf16 %v2520_v20, %v2520_v20  ;;  %v5042_v20 = vld [vmem:[#allocation6 + $0x1a4] ss:$16 sps:$4 sm:$0xff]  }
 0xc9f   :  { %2555 = vmatmul.mubr.bf16.vlgmr.msra.gmra.mrb[80].mxu0 %v2521_v24  ;;  %2596 = vmatmul.mubr.bf16.vlgmr.msra.gmra.mrb[80].mxu1 %v2521_v24  ;;  %v5045_v24 = vld [vmem:[#allocation6 + $0x1ac] ss:$16 sps:$4 sm:$0xff]  }
 0xca0   :  { %2634 = vmatpush1.bf16.msra.mxu0 %v4570_v14  ;;  %2675 = vmatpush1.bf16.msra.mxu1 %v4572_v33  ;;  %v5267_v14 = vld [vmem:[#allocation18_spill] sm:$0xff] }
 0xca1   :  { %2635 = vmatprep.subr.bf16.mxu0 %v4578_v35  ;;  %2676 = vmatprep.subr.bf16.mxu1 %v4580_v13  ;;  %v1827_v33 = vadd.f32 %v5267_v14, %v4773_v19  ;;  %v5268_v35 = vld [vmem:[#allocation19_spill] sm:$0xff]  ;;  %v5048_v14 = vld [vmem:[#allocation6 + $0x1a0] ss:$16 sps:$4 sm:$0xff]  }
 0xca2   :  { %2665 = vmatprep.mubr.bf16.mxu0 %v5210_v16  ;;  %2706 = vmatprep.mubr.bf16.mxu1 %v5210_v16  ;;  %v1900_v13 = vadd.f32 %v5268_v35, %v4777_v48  ;;  %v5054_v35 = vld [vmem:[#allocation6 + $0x1c4] ss:$16 sps:$4 sm:$0xff]  }
 0xca4   :  { %2636 = vmatpush1.bf16.msra.mxu0 %v4582_v40  ;;  %2677 = vmatpush1.bf16.msra.mxu1 %v4584_v41  ;;  %v5269_v40 = vld [vmem:[#allocation20_spill] sm:$0xff] }
 0xca5   :  { %2637 = vmatprep.subr.bf16.mxu0 %v4590_v42  ;;  %2678 = vmatprep.subr.bf16.mxu1 %v4592_v43  ;;  %v1829_v41 = vadd.f32 %v5269_v40, %v4785_v26  ;;  %v5270_v42 = vld [vmem:[#allocation21_spill] sm:$0xff]  ;;  %v5060_v40 = vld [vmem:[#allocation6 + $0x1c0] ss:$16 sps:$4 sm:$0xff]  }
 0xca6   :  { %v1902_v43 = vadd.f32 %v5270_v42, %v4789_v4  ;;  %v5066_v42 = vld [vmem:[#allocation6 + $0x1e4] ss:$16 sps:$4 sm:$0xff]  }
 0xca8   :  { %2638 = vmatpush1.bf16.msra.mxu0 %v4594_v46  ;;  %2679 = vmatpush1.bf16.msra.mxu1 %v4596_v47 }
 0xca9   :  { %2639 = vmatprep.subr.bf16.mxu0 %v4602_v49  ;;  %2680 = vmatprep.subr.bf16.mxu1 %v4604_v27 }
 0xcac   :  { %2640 = vmatpush1.bf16.msra.mxu0 %v4606_v31  ;;  %2681 = vmatpush1.bf16.msra.mxu1 %v4608_v37 }
 0xcad   :  { %2641 = vmatprep.subr.bf16.mxu0 %v4614_v1  ;;  %2682 = vmatprep.subr.bf16.mxu1 %v4616_v2 }
 0xcb0   :  { %2642 = vmatpush1.bf16.msra.mxu0 %v4618_v5  ;;  %2683 = vmatpush1.bf16.msra.mxu1 %v4620_v6 }
 0xcb1   :  { %2643 = vmatprep.subr.bf16.mxu0 %v4626_v50  ;;  %2684 = vmatprep.subr.bf16.mxu1 %v4628_v7 }
 0xcb4   :  { %2644 = vmatpush1.bf16.msra.mxu0 %v4630_v51  ;;  %2685 = vmatpush1.bf16.msra.mxu1 %v4632_v8 }
 0xcb5   :  { %2645 = vmatprep.subr.bf16.mxu0 %v4638_v58  ;;  %2686 = vmatprep.subr.bf16.mxu1 %v4640_v60 }
 0xcb8   :  { %2646 = vmatpush1.bf16.msra.mxu0 %v4642_v62  ;;  %2687 = vmatpush1.bf16.msra.mxu1 %v4644_v45 }
 0xcb9   :  { %2647 = vmatprep.subr.bf16.mxu0 %v4650_v22  ;;  %2688 = vmatprep.subr.bf16.mxu1 %v4652_v21 }
 0xcbc   :  { %2648 = vmatpush1.bf16.msra.mxu0 %v4654_v23  ;;  %2689 = vmatpush1.bf16.msra.mxu1 %v4656_v38 }
 0xcbd   :  { %2744 = vmatprep.subr.bf16.mxu0 %v4566_v30  ;;  %2785 = vmatprep.subr.bf16.mxu1 %v4568_v17 }
 0xd72   :  { %v2556_v46 = vpop.f32.mrb[80].mxu0  ;;  %v2597_v47 = vpop.f32.mrb[80].mxu1 }
 0xd73   :  { %v2604_v49 = vadd.f32 %v2556_v46, %v1827_v33  ;;  %v2606_v27 = vadd.f32 %v2597_v47, %v1900_v13  ;;  %v2558_v31 = vpop.f32.mrb[81].mxu0  ;;  %v2599_v30 = vpop.f32.mrb[81].mxu1  ;;  %v5051_v33 = vld [vmem:[#allocation6 + $0x1a8] ss:$16 sps:$4 sm:$0xff]   ;;  %v5057_v13 = vld [vmem:[#allocation6 + $0x1cc] ss:$16 sps:$4 sm:$0xff]  }
 0xd74   :  { %v2605_v37 = vadd.f32 %v2558_v31, %v1829_v41  ;;  %v2607_v17 = vadd.f32 %v2599_v30, %v1902_v43  ;;  %v2560_v1 = vpop.f32.mrb[82].mxu0  ;;  %v2601_v2 = vpop.f32.mrb[82].mxu1  ;;  %v5063_v41 = vld [vmem:[#allocation6 + $0x1c8] ss:$16 sps:$4 sm:$0xff]   ;;  %v5069_v43 = vld [vmem:[#allocation6 + $0x1ec] ss:$16 sps:$4 sm:$0xff]  }
 0xd75   :  { %v3249_v5 = vmul.f32 -1.442695, %v2604_v49  ;;  %v2561_v6 = vpop.f32.mrb[83].mxu0  ;;  %v2602_v50 = vpop.f32.mrb[83].mxu1  ;;  %v5072_v46 = vld [vmem:[#allocation6 + $0x1e0] ss:$16 sps:$4 sm:$0xff]  }
 0xd76   :  { %v3250_v7 = vmul.f32 -1.442695, %v2605_v37  ;;  %v3251_v51 = vmul.f32 -1.442695, %v2607_v17  ;;  %v5075_v47 = vld [vmem:[#allocation6 + $0x1e8] ss:$16 sps:$4 sm:$0xff]  }
 0xd77   :  { %3698 = vpow2.f32 %v3249_v5  ;;  %v3824_v49 = vld [vmem:[#allocation6 + $0x104] ss:$16 sps:$4 sm:$0xff]   ;;  %v5272_v37 = vld [vmem:[#allocation23_spill] sm:$0xff]  ;;  %v5274_v5 = vld [vmem:[#allocation25_spill] sm:$0xff] }
 0xd78   :  { %3700 = vpow2.f32 %v3250_v7  ;;  %v5271_v31 = vld [vmem:[#allocation22_spill] sm:$0xff]  ;;  %v1904_v17 = vadd.f32 %v5272_v37, %v4777_v48  ;;  %v5273_v1 = vld [vmem:[#allocation24_spill] sm:$0xff]  ;;  %v1906_v6 = vadd.f32 %v5274_v5, %v4789_v4 }
 0xd79   :  { %3702 = vpow2.f32 %v3251_v51  ;;  %v1831_v30 = vadd.f32 %v5271_v31, %v4773_v19  ;;  %v1833_v2 = vadd.f32 %v5273_v1, %v4785_v26 }
 0xd7a   :  { %3704 = vtanh.f32 %v2606_v27  ;;  %v3825_v27 = vld [vmem:[#allocation6 + $0x10c] ss:$16 sps:$4 sm:$0xff]  }
 0xd81   :  { %v3699_v8 = vpop.eup %3698 }
 0xd82   :  { %v3701_v58 = vpop.eup %3700  ;;  %v2611_v60 = vadd.f32 1.0, %v3699_v8 }
 0xd83   :  { %v2617_v62 = vadd.f32 1.0, %v3701_v58  ;;  %v3703_v45 = vpop.eup %3702 }
 0xd84   :  { %3706 = vrcp.f32 %v2611_v60  ;;  %v3705_v22 = vpop.eup %3704  ;;  %v2624_v44 = vadd.f32 1.0, %v3703_v45 }
 0xd85   :  { %3708 = vrcp.f32 %v2617_v62 }
 0xd86   :  { %3710 = vrcp.f32 %v2624_v44 }
 0xd8e   :  { %v3707_v21 = vpop.eup %3706 }
 0xd8f   :  { %v3709_v23 = vpop.eup %3708  ;;  %v2628_v38 = vmul.f32 %v3707_v21, %v3705_v22 }
 0xd90   :  { %v2627_v9 = vmul.f32 %v3709_v23, %v4937_v63  ;;  %v3711_v11 = vpop.eup %3710  ;;  %v5033_v63 = vld [vmem:[#allocation6 + $0x18c] ss:$16 sps:$4 sm:$0xff]  }
 0xd92   :  { %v4983_v15 = vadd.f32 %v2628_v38, %v2627_v9 }
 0xd94   :  { %3712 = vtanh.f32 %v4983_v15 }
 0xd9e   :  { %v3713_v32 = vpop.eup %3712 }
 0xd9f   :  { %v2631_v61 = vmul.f32 %v3713_v32, %v3711_v11 }
 0xda1   :  { %v2632_v39 = vpack.c.bf16 %v2631_v61, %v2631_v61 }
 0xda3   :  { %2666 = vmatmul.mubr.bf16.vlgmr.msra.gmra.mrb[84].mxu0 %v2632_v39  ;;  %2707 = vmatmul.mubr.bf16.vlgmr.msra.gmra.mrb[84].mxu1 %v2632_v39 }
 0xda4   :  { %2745 = vmatpush1.bf16.msra.mxu0 %v4986_v55  ;;  %2786 = vmatpush1.bf16.msra.mxu1 %v4989_v18 }
 0xda5   :  { %2746 = vmatprep.subr.bf16.mxu0 %v4992_v57  ;;  %2787 = vmatprep.subr.bf16.mxu1 %v4995_v28 }
 0xda6   :  { %2776 = vmatprep.mubr.bf16.mxu0 %v5210_v16  ;;  %2817 = vmatprep.mubr.bf16.mxu1 %v5210_v16 }
 0xda8   :  { %2747 = vmatpush1.bf16.msra.mxu0 %v5000_v36  ;;  %2788 = vmatpush1.bf16.msra.mxu1 %v5003_v34 }
 0xda9   :  { %2748 = vmatprep.subr.bf16.mxu0 %v5006_v54  ;;  %2789 = vmatprep.subr.bf16.mxu1 %v5009_v25 }
 0xdac   :  { %2749 = vmatpush1.bf16.msra.mxu0 %v5012_v52  ;;  %2790 = vmatpush1.bf16.msra.mxu1 %v5015_v0 }
 0xdad   :  { %2750 = vmatprep.subr.bf16.mxu0 %v5018_v53  ;;  %2791 = vmatprep.subr.bf16.mxu1 %v5021_v12 }
 0xdb0   :  { %2751 = vmatpush1.bf16.msra.mxu0 %v5024_v10  ;;  %2792 = vmatpush1.bf16.msra.mxu1 %v5027_v59 }
 0xdb1   :  { %2752 = vmatprep.subr.bf16.mxu0 %v5030_v56  ;;  %2793 = vmatprep.subr.bf16.mxu1 %v5033_v63 }
 0xdb4   :  { %2753 = vmatpush1.bf16.msra.mxu0 %v5036_v3  ;;  %2794 = vmatpush1.bf16.msra.mxu1 %v5039_v29 }
 0xdb5   :  { %2754 = vmatprep.subr.bf16.mxu0 %v5042_v20  ;;  %2795 = vmatprep.subr.bf16.mxu1 %v5045_v24 }
 0xdb8   :  { %2755 = vmatpush1.bf16.msra.mxu0 %v5048_v14  ;;  %2796 = vmatpush1.bf16.msra.mxu1 %v5051_v33 }
 0xdb9   :  { %2756 = vmatprep.subr.bf16.mxu0 %v5054_v35  ;;  %2797 = vmatprep.subr.bf16.mxu1 %v5057_v13 }
 0xdbc   :  { %2757 = vmatpush1.bf16.msra.mxu0 %v5060_v40  ;;  %2798 = vmatpush1.bf16.msra.mxu1 %v5063_v41 }
 0xdbd   :  { %2758 = vmatprep.subr.bf16.mxu0 %v5066_v42  ;;  %2799 = vmatprep.subr.bf16.mxu1 %v5069_v43 }
 0xdc0   :  { %2759 = vmatpush1.bf16.msra.mxu0 %v5072_v46  ;;  %2800 = vmatpush1.bf16.msra.mxu1 %v5075_v47 }
 0xdc1   :  { %2855 = vmatprep.subr.bf16.mxu0 %v3824_v49  ;;  %2896 = vmatprep.subr.bf16.mxu1 %v3825_v27 }
 0xe76   :  { %v2667_v50 = vpop.f32.mrb[84].mxu0  ;;  %v2708_v7 = vpop.f32.mrb[84].mxu1 }
 0xe77   :  { %v2715_v51 = vadd.f32 %v2667_v50, %v1831_v30  ;;  %v2717_v8 = vadd.f32 %v2708_v7, %v1904_v17  ;;  %v2669_v58 = vpop.f32.mrb[85].mxu0  ;;  %v2710_v60 = vpop.f32.mrb[85].mxu1 }
 0xe78   :  { %v2716_v62 = vadd.f32 %v2669_v58, %v1833_v2  ;;  %v2718_v45 = vadd.f32 %v2710_v60, %v1906_v6  ;;  %v2671_v22 = vpop.f32.mrb[86].mxu0  ;;  %v2712_v21 = vpop.f32.mrb[86].mxu1 }
 0xe79   :  { %v3252_v23 = vmul.f32 -1.442695, %v2715_v51  ;;  %v2672_v38 = vpop.f32.mrb[87].mxu0  ;;  %v2713_v44 = vpop.f32.mrb[87].mxu1 }
 0xe7a   :  { %v3253_v9 = vmul.f32 -1.442695, %v2716_v62  ;;  %v3254_v11 = vmul.f32 -1.442695, %v2718_v45  ;;  %v3879_v38 = vmov 0.0   ;;  %v3499_v44 = vld [vmem:[%s5177_s4 + $0x8] sm:$0xff]  }
 0xe7b   :  { %3714 = vpow2.f32 %v3252_v23  ;;  %v3498_v23 = vld [vmem:[%s5177_s4] sm:$0xff]  }
 0xe7c   :  { %3716 = vpow2.f32 %v3253_v9  ;;  %v3500_v9 = vld [vmem:[%s5177_s4 + $0x10] sm:$0xff]  }
 0xe7d   :  { %3718 = vpow2.f32 %v3254_v11  ;;  %v3501_v11 = vld [vmem:[%s5177_s4 + $0x18] sm:$0xff]  }
 0xe7e   :  { %3720 = vtanh.f32 %v2717_v8 }
 0xe85   :  { %v3715_v32 = vpop.eup %3714 }
 0xe86   :  { %v3717_v61 = vpop.eup %3716  ;;  %v2722_v39 = vadd.f32 1.0, %v3715_v32  ;;  %v3502_v32 = vld [vmem:[%s5177_s4 + $0x20] sm:$0xff]  }
 0xe87   :  { %v2728_v49 = vadd.f32 1.0, %v3717_v61  ;;  %v3719_v27 = vpop.eup %3718  ;;  %v3503_v61 = vld [vmem:[%s5177_s4 + $0x28] sm:$0xff]  }
 0xe88   :  { %3722 = vrcp.f32 %v2722_v39  ;;  %v3721_v31 = vpop.eup %3720  ;;  %v2735_v1 = vadd.f32 1.0, %v3719_v27  ;;  %v3504_v39 = vld [vmem:[%s5177_s4 + $0x30] sm:$0xff]   ;;  %v5279_v27 = vld [vmem:[#allocation30_spill] sm:$0xff] }
 0xe89   :  { %3724 = vrcp.f32 %v2728_v49  ;;  %v3505_v49 = vld [vmem:[%s5177_s4 + $0x38] sm:$0xff]  }
 0xe8a   :  { %3726 = vrcp.f32 %v2735_v1 }
 0xe92   :  { %v3723_v30 = vpop.eup %3722 }
 0xe93   :  { %v3725_v37 = vpop.eup %3724  ;;  %v2739_v17 = vmul.f32 %v3723_v30, %v3721_v31  ;;  %v1841_v31 = vadd.f32 %v5279_v27, %v4773_v19  ;;  %v5280_v30 = vld [vmem:[#allocation31_spill] sm:$0xff] }
 0xe94   :  { %v2738_v2 = vmul.f32 %v3725_v37, %v4983_v15  ;;  %v3727_v6 = vpop.eup %3726  ;;  %v1914_v37 = vadd.f32 %v5280_v30, %v4777_v48 }
 0xe96   :  { %v5087_v5 = vadd.f32 %v2739_v17, %v2738_v2  ;;  %v5281_v17 = vld [vmem:[#allocation10_spill] sm:$0xff]  ;;  %v5282_v2 = vld [vmem:[#allocation32_spill] sm:$0xff] }
 0xe97   :  { %v1843_v1 = vadd.f32 %v5281_v17, %v4785_v26 }
 0xe98   :  { %3728 = vtanh.f32 %v5087_v5 }
 0xea2   :  { %v3729_v50 = vpop.eup %3728 }
 0xea3   :  { %v2742_v7 = vmul.f32 %v3729_v50, %v3727_v6 }
 0xea5   :  { %v2743_v51 = vpack.c.bf16 %v2742_v7, %v2742_v7 }
 0xea7   :  { %2777 = vmatmul.mubr.bf16.vlgmr.msra.gmra.mrb[88].mxu0 %v2743_v51  ;;  %2818 = vmatmul.mubr.bf16.vlgmr.msra.gmra.mrb[88].mxu1 %v2743_v51 }
 0xea8   :  { %2856 = vmatpush1.bf16.msra.mxu0 %v4986_v55  ;;  %2897 = vmatpush1.bf16.msra.mxu1 %v4989_v18  ;;  %v5276_v55 = vld [vmem:[#allocation27_spill] sm:$0xff] }
 0xea9   :  { %2857 = vmatprep.subr.bf16.mxu0 %v4992_v57  ;;  %2898 = vmatprep.subr.bf16.mxu1 %v4995_v28  ;;  %v1910_v18 = vadd.f32 %v5276_v55, %v4777_v48  ;;  %v5277_v57 = vld [vmem:[#allocation28_spill] sm:$0xff] }
 0xeaa   :  { %2887 = vmatprep.mubr.bf16.mxu0 %v5210_v16  ;;  %2928 = vmatprep.mubr.bf16.mxu1 %v5210_v16  ;;  %v5275_v16 = vld [vmem:[#allocation26_spill] sm:$0xff]  ;;  %v1839_v28 = vadd.f32 %v5277_v57, %v4785_v26 }
 0xeab   :  { %v1837_v15 = vadd.f32 %v5275_v16, %v4773_v19 }
 0xeac   :  { %2858 = vmatpush1.bf16.msra.mxu0 %v5000_v36  ;;  %2899 = vmatpush1.bf16.msra.mxu1 %v5003_v34  ;;  %v5278_v36 = vld [vmem:[#allocation29_spill] sm:$0xff] }
 0xead   :  { %2859 = vmatprep.subr.bf16.mxu0 %v5006_v54  ;;  %2900 = vmatprep.subr.bf16.mxu1 %v5009_v25  ;;  %v1912_v34 = vadd.f32 %v5278_v36, %v4789_v4 }
 0xeb0   :  { %2860 = vmatpush1.bf16.msra.mxu0 %v5012_v52  ;;  %2901 = vmatpush1.bf16.msra.mxu1 %v5015_v0 }
 0xeb1   :  { %2861 = vmatprep.subr.bf16.mxu0 %v5018_v53  ;;  %2902 = vmatprep.subr.bf16.mxu1 %v5021_v12 }
 0xeb4   :  { %2862 = vmatpush1.bf16.msra.mxu0 %v5024_v10  ;;  %2903 = vmatpush1.bf16.msra.mxu1 %v5027_v59 }
 0xeb5   :  { %2863 = vmatprep.subr.bf16.mxu0 %v5030_v56  ;;  %2904 = vmatprep.subr.bf16.mxu1 %v5033_v63 }
 0xeb8   :  { %2864 = vmatpush1.bf16.msra.mxu0 %v5036_v3  ;;  %2905 = vmatpush1.bf16.msra.mxu1 %v5039_v29 }
 0xeb9   :  { %2865 = vmatprep.subr.bf16.mxu0 %v5042_v20  ;;  %2906 = vmatprep.subr.bf16.mxu1 %v5045_v24 }
 0xebc   :  { %2866 = vmatpush1.bf16.msra.mxu0 %v5048_v14  ;;  %2907 = vmatpush1.bf16.msra.mxu1 %v5051_v33 }
 0xebd   :  { %2867 = vmatprep.subr.bf16.mxu0 %v5054_v35  ;;  %2908 = vmatprep.subr.bf16.mxu1 %v5057_v13 }
 0xec0   :  { %2868 = vmatpush1.bf16.msra.mxu0 %v5060_v40  ;;  %2909 = vmatpush1.bf16.msra.mxu1 %v5063_v41 }
 0xec1   :  { %2869 = vmatprep.subr.bf16.mxu0 %v5066_v42  ;;  %2910 = vmatprep.subr.bf16.mxu1 %v5069_v43 }
 0xec4   :  { %2870 = vmatpush1.bf16.msra.mxu0 %v5072_v46  ;;  %2911 = vmatpush1.bf16.msra.mxu1 %v5075_v47 }
 0xec5   :  { %3279 = vmatprep.subr.bf16.mxu0 %v3879_v38 }
 0xf7a   :  { %v2778_v54 = vpop.f32.mrb[88].mxu0  ;;  %v2819_v25 = vpop.f32.mrb[88].mxu1 }
 0xf7b   :  { %v2826_v52 = vadd.f32 %v2778_v54, %v1837_v15  ;;  %v2828_v0 = vadd.f32 %v2819_v25, %v1910_v18  ;;  %v2780_v53 = vpop.f32.mrb[89].mxu0  ;;  %v2821_v12 = vpop.f32.mrb[89].mxu1 }
 0xf7c   :  { %v2827_v10 = vadd.f32 %v2780_v53, %v1839_v28  ;;  %v2829_v59 = vadd.f32 %v2821_v12, %v1912_v34  ;;  %v2782_v56 = vpop.f32.mrb[90].mxu0  ;;  %v2823_v63 = vpop.f32.mrb[90].mxu1 }
 0xf7d   :  { %v3255_v3 = vmul.f32 -1.442695, %v2826_v52  ;;  %v2783_v29 = vpop.f32.mrb[91].mxu0  ;;  %v2824_v20 = vpop.f32.mrb[91].mxu1 }
 0xf7e   :  { %v3256_v24 = vmul.f32 -1.442695, %v2827_v10  ;;  %v3257_v14 = vmul.f32 -1.442695, %v2829_v59 }
 0xf7f   :  { %3730 = vpow2.f32 %v3255_v3 }
 0xf80   :  { %3732 = vpow2.f32 %v3256_v24 }
 0xf81   :  { %3734 = vpow2.f32 %v3257_v14 }
 0xf82   :  { %3736 = vtanh.f32 %v2828_v0 }
 0xf89   :  { %v3731_v33 = vpop.eup %3730 }
 0xf8a   :  { %v3733_v35 = vpop.eup %3732  ;;  %v2833_v13 = vadd.f32 1.0, %v3731_v33  ;;  %v3261_v33 = vld [vmem:[%s5178_s5] ss:$0 sm:$0xff] }
 0xf8b   :  { %v2839_v40 = vadd.f32 1.0, %v3733_v35  ;;  %v3735_v41 = vpop.eup %3734 }
 0xf8c   :  { %3738 = vrcp.f32 %v2833_v13  ;;  %v3737_v42 = vpop.eup %3736  ;;  %v2846_v8 = vadd.f32 1.0, %v3735_v41 }
 0xf8d   :  { %3740 = vrcp.f32 %v2839_v40 }
 0xf8e   :  { %3742 = vrcp.f32 %v2846_v8 }
 0xf96   :  { %v3739_v43 = vpop.eup %3738 }
 0xf97   :  { %v3741_v46 = vpop.eup %3740  ;;  %v2850_v47 = vmul.f32 %v3739_v43, %v3737_v42 }
 0xf98   :  { %v2849_v58 = vmul.f32 %v3741_v46, %v5087_v5  ;;  %v3743_v62 = vpop.eup %3742  ;;  %v1916_v5 = vadd.f32 %v5282_v2, %v4789_v4 }
 0xf9a   :  { %v5131_v60 = vadd.f32 %v2850_v47, %v2849_v58 }
 0xf9c   :  { %3744 = vtanh.f32 %v5131_v60 }
 0xfa6   :  { %v3745_v45 = vpop.eup %3744 }
 0xfa7   :  { %v2853_v22 = vmul.f32 %v3745_v45, %v3743_v62 }
 0xfa9   :  { %v2854_v21 = vpack.c.bf16 %v2853_v22, %v2853_v22 }
 0xfab   :  { %2888 = vmatmul.mubr.bf16.vlgmr.msra.gmra.mrb[92].mxu0 %v2854_v21  ;;  %2929 = vmatmul.mubr.bf16.vlgmr.msra.gmra.mrb[92].mxu1 %v2854_v21 }
 0xfac   :  { %3280 = vmatpush3.bf16.msra.mxu0 %v3498_v23  ;;  %3295 = vmatprep.mubr.msk.bf16.mxu0 %vm3880_vm0, %v3879_v38 }
 0xfad   :  { %3281 = vmatprep.subr.bf16.mxu0 %v3879_v38 }
 0xfb0   :  { %3282 = vmatpush3.bf16.msra.mxu0 %v3499_v44 }
 0xfb1   :  { %3283 = vmatprep.subr.bf16.mxu0 %v3879_v38 }
 0xfb4   :  { %3284 = vmatpush3.bf16.msra.mxu0 %v3500_v9 }
 0xfb5   :  { %3285 = vmatprep.subr.bf16.mxu0 %v3879_v38 }
 0xfb8   :  { %3286 = vmatpush3.bf16.msra.mxu0 %v3501_v11 }
 0xfb9   :  { %3287 = vmatprep.subr.bf16.mxu0 %v3879_v38 }
 0xfbc   :  { %3288 = vmatpush3.bf16.msra.mxu0 %v3502_v32 }
 0xfbd   :  { %3289 = vmatprep.subr.bf16.mxu0 %v3879_v38 }
 0xfc0   :  { %3290 = vmatpush3.bf16.msra.mxu0 %v3503_v61 }
 0xfc1   :  { %3291 = vmatprep.subr.bf16.mxu0 %v3879_v38 }
 0xfc4   :  { %3292 = vmatpush3.bf16.msra.mxu0 %v3504_v39 }
 0xfc5   :  { %3293 = vmatprep.subr.bf16.mxu0 %v3879_v38 }
 0xfc8   :  { %3294 = vmatpush3.bf16.msra.mxu0 %v3505_v49 }
0x107e   :  { %v2889_v6 = vpop.f32.mrb[92].mxu0  ;;  %v2930_v50 = vpop.f32.mrb[92].mxu1 }
0x107f   :  { %v2937_v7 = vadd.f32 %v2889_v6, %v1841_v31  ;;  %v2939_v51 = vadd.f32 %v2930_v50, %v1914_v37  ;;  %v2891_v16 = vpop.f32.mrb[93].mxu0  ;;  %v2932_v15 = vpop.f32.mrb[93].mxu1 }
0x1080   :  { %v2938_v55 = vadd.f32 %v2891_v16, %v1843_v1  ;;  %v2940_v18 = vadd.f32 %v2932_v15, %v1916_v5  ;;  %v2893_v57 = vpop.f32.mrb[94].mxu0  ;;  %v2934_v28 = vpop.f32.mrb[94].mxu1 }
0x1081   :  { %v3258_v19 = vmul.f32 -1.442695, %v2937_v7  ;;  %v2894_v36 = vpop.f32.mrb[95].mxu0  ;;  %v2935_v34 = vpop.f32.mrb[95].mxu1 }
0x1082   :  { %v3259_v48 = vmul.f32 -1.442695, %v2938_v55  ;;  %v3260_v26 = vmul.f32 -1.442695, %v2940_v18 }
0x1083   :  { %3746 = vpow2.f32 %v3258_v19 }
0x1084   :  { %3748 = vpow2.f32 %v3259_v48 }
0x1085   :  { %3750 = vpow2.f32 %v3260_v26 }
0x1086   :  { %3752 = vtanh.f32 %v2939_v51 }
0x108d   :  { %v3747_v54 = vpop.eup %3746 }
0x108e   :  { %v3749_v25 = vpop.eup %3748  ;;  %v2944_v4 = vadd.f32 1.0, %v3747_v54 }
0x108f   :  { %v2950_v52 = vadd.f32 1.0, %v3749_v25  ;;  %v3751_v0 = vpop.eup %3750 }
0x1090   :  { %3754 = vrcp.f32 %v2944_v4  ;;  %v3753_v53 = vpop.eup %3752  ;;  %v2957_v56 = vadd.f32 1.0, %v3751_v0 }
0x1091   :  { %3756 = vrcp.f32 %v2950_v52 }
0x1092   :  { %3758 = vrcp.f32 %v2957_v56 }
0x109a   :  { %v3755_v12 = vpop.eup %3754 }
0x109b   :  { %v3757_v10 = vpop.eup %3756  ;;  %v2961_v59 = vmul.f32 %v3755_v12, %v3753_v53 }
0x109c   :  { %v2960_v63 = vmul.f32 %v3757_v10, %v5131_v60  ;;  %v3759_v29 = vpop.eup %3758 }
0x109e   :  { %v2962_v3 = vadd.f32 %v2961_v59, %v2960_v63 }
0x10a0   :  { %3760 = vtanh.f32 %v2962_v3 }
0x10aa   :  { %v3761_v20 = vpop.eup %3760 }
0x10ab   :  { %v2964_v24 = vmul.f32 %v3761_v20, %v3759_v29 }
0x10ad   :  { %v2965_v14 = vpack.c.bf16 %v2964_v24, %v2964_v24 }
0x10af   :  { %3296 = vmatmul.mubr.bf16.vlgmr.msra.gmra.mrb[96].mxu0 %v2965_v14 }
0x1182   :  { %v3071_v35 = vpop.f32.mrb[96].mxu0 }
0x1183   :  { %v3072_v13 = vadd.f32 %v3261_v33, %v3071_v35  ;;  %v3297_v40 = vpop.f32.mrb[97].mxu0 }
0x1184   :  { %v3074_v41 = vpop.f32.mrb[98].mxu0 }
0x1185   :  { %3077 = vst [vmem:[%s5179_s6] sm:$0xff] %v3072_v13  ;;  %v3298_v42 = vpop.f32.mrb[99].mxu0 }
0x1186   :  { %3082 = vsyncpa [#allocation5], 1 }
0x1187   :  { %3083 = vsyncpa [#allocation7], 1 }

</bundles_post_ra>
